<compile_context>
chip_gen: v7x
topology: tpu7x:2x2x1
jax: 0.10.0
libtpu: 0.0.40
codegen_flags: <defaults>
</compile_context>

<pallas_src>
import functools

import jax
import jax.numpy as jnp
from jax.experimental import pallas as pl
from jax.experimental.pallas import tpu as pltpu

HEADS = 4
CHANNELS = [16, 32, 32]   # -> two FeaStResBlocks: 16->32, 32->32
N_NODES = 64
MXU_BF16 = True           # cast MXU operands to bf16, accumulate in f32


# --------------------------------------------------------------------------- #
# Fused Pallas kernel: the entire encoder block in a single pallas_call.
# --------------------------------------------------------------------------- #
def _encoder_kernel(*refs, treedef, heads, use_bf16):
    """refs = (x_ref, adj_norm_ref, c_smem_ref, *param_leaf_refs, out_ref)."""
    x_ref, adjn_ref, c_ref = refs[0], refs[1], refs[2]
    out_ref = refs[-1]
    blocks = jax.tree_util.tree_unflatten(treedef, refs[3:-1])

    adjn = adjn_ref[...]                       # [N, N]  (A + I) row-scaled by 1/deg

    def mxu(a, b):
        if use_bf16:
            a = a.astype(jnp.bfloat16)
            b = b.astype(jnp.bfloat16)
        return jnp.dot(a, b, preferred_element_type=jnp.float32)

    def feast_conv(x, p, conv_idx):
        """One FeaStConv (mean aggregation); returns pre-activation [N, Cout]."""
        w = p["W"][...]                                  # [Cin, H*Cout]
        u = p["u"][...]                                  # [Cin, H]
        cout = w.shape[1] // heads

        xw = mxu(x, w)                                   # [N, H*Cout]  f32
        xu = mxu(x, u)                                   # [N, H]       f32
        xu_t = xu.T                                      # [H, N] — single small transpose

        def logit(h):
            # logit_h[i, j] = xu[j, h] - xu[i, h] + c[h]   (c read as SMEM scalar)
            return xu_t[h:h + 1, :] - xu[:, h:h + 1] + c_ref[conv_idx, h]

        # Streaming softmax over heads: pass 1 = running max, pass 2 = masked exp
        # + denominator.  Keeps only m, denom, adjn and the H masked exps live.
        m = logit(0)
        for h in range(1, heads):
            m = jnp.maximum(m, logit(h))
        denom = jnp.zeros_like(m)
        q_masked = []
        for h in range(heads):
            e = jnp.exp(logit(h) - m)
            denom = denom + e
            q_masked.append(e * adjn)                    # fold adjacency + 1/deg mask
        inv = pl.reciprocal(denom, approx=True)          # one EUP reciprocal

        # One K = heads*N matmul instead of `heads` K=N matmuls:
        #   acc = [q_0 | q_1 | ... ] @ [xw_0 ; xw_1 ; ...]
        q_cat = jnp.concatenate([q * inv for q in q_masked], axis=1)          # [N, H*N]
        xw_cat = jnp.concatenate(
            [xw[:, h * cout:(h + 1) * cout] for h in range(heads)], axis=0)   # [H*N, Cout]
        acc = mxu(q_cat, xw_cat)                         # [N, Cout], K = heads*N
        return acc + p["b"][...]

    x = x_ref[...].astype(jnp.float32)
    conv_idx = 0
    for blk in blocks:
        if "shortcut" in blk:                            # Linear shortcut iff Cin != Cout
            skip = mxu(x, blk["shortcut"]["W"][...]) + blk["shortcut"]["b"][...]
        else:
            skip = x
        h = jnp.maximum(feast_conv(x, blk["conv1"], conv_idx), 0.0)           # ReLU
        x = jnp.maximum(feast_conv(h, blk["conv2"], conv_idx + 1) + skip, 0.0)
        conv_idx += 2

    # TODO(synk): with a batch of graphs, add a "parallel" grid axis (megacore on
    # v7x) and pack outputs lane-dense (last dim multiple of 128); if N is ever
    # scaled up, row-block the [N, N] adjacency (VMEM holds ~(H+3) N^2 f32 here).
    out_ref[...] = x.astype(out_ref.dtype)


# --------------------------------------------------------------------------- #
# Wrappers
# --------------------------------------------------------------------------- #
def _strip_c(params):
    """Remove per-conv 'c' from the param tree; return (stripped, c_all[nconv, H])."""
    stripped, c_rows = [], []
    for blk in params:
        new_blk = {}
        for name in ("conv1", "conv2"):
            conv = dict(blk[name])
            c_rows.append(conv.pop("c"))
            new_blk[name] = conv
        if "shortcut" in blk:
            new_blk["shortcut"] = dict(blk["shortcut"])
        stripped.append(new_blk)
    return stripped, jnp.concatenate(c_rows, axis=0)


def feast_encoder_forward(x, adj_norm, params, heads=HEADS, use_bf16=MXU_BF16):
    n = x.shape[0]
    c_last = params[-1]["conv1"]["W"].shape[1] // heads
    stripped, c_all = _strip_c(params)
    leaves, treedef = jax.tree_util.tree_flatten(stripped)

    kern = functools.partial(_encoder_kernel, treedef=treedef,
                             heads=heads, use_bf16=use_bf16)
    vmem = pl.BlockSpec(memory_space=pltpu.MemorySpace.VMEM)
    smem = pl.BlockSpec(memory_space=pltpu.MemorySpace.SMEM)
    return pl.pallas_call(
        kern,
        out_shape=jax.ShapeDtypeStruct((n, c_last), jnp.float32),
        in_specs=[vmem, vmem, smem] + [vmem] * len(leaves),
        out_specs=vmem,
    )(x, adj_norm, c_all, *leaves)


def build_adj_norm(edge_index, num_nodes):
    """Dense adjacency with self-loops, row-scaled by 1/deg (aggr='mean').

    For a static graph this is hoisted out of the per-step forward: the scatter
    dwarfs the fused kernel at N=64.
    NOTE: jnp.maximum(adj, eye) deduplicates pre-existing self-loops, whereas PyG
    add_self_loops appends unconditionally — identical here (no self-loops given).
    """
    src, dst = edge_index[0], edge_index[1]
    adj = jnp.zeros((num_nodes, num_nodes), jnp.float32)
    adj = adj.at[dst, src].set(1.0)
    adj = jnp.maximum(adj, jnp.eye(num_nodes, dtype=jnp.float32))   # add_self_loops
    deg = jnp.sum(adj, axis=1, keepdims=True)                       # >= 1 (self-loops)
    return adj / deg


def feast_encoder_block(x, edge_index, params, heads=HEADS):
    """Module-equivalent API: forward(x, edge_index) -> (x, edge_index)."""
    adj_norm = build_adj_norm(edge_index, x.shape[0])
    return feast_encoder_forward(x, adj_norm, params, heads=heads), edge_index


# --------------------------------------------------------------------------- #
# Parameter initialization (deterministic, synthetic)
# --------------------------------------------------------------------------- #
def _glorot(key, shape):
    scale = jnp.sqrt(6.0 / (shape[0] + shape[-1]))
    return jax.random.uniform(key, shape, jnp.float32, -scale, scale)


def init_feast_conv(key, cin, cout, heads):
    k1, k2, k3 = jax.random.split(key, 3)
    return {
        "W": _glorot(k1, (cin, heads * cout)),      # lin:  Linear(cin, heads*cout)
        "u": _glorot(k2, (cin, heads)),             # u:    Linear(cin, heads)
        "c": jax.random.normal(k3, (1, heads), jnp.float32) * 0.1,
        "b": jnp.zeros((1, cout), jnp.float32),
    }


def init_res_block(key, cin, cout, heads):
    k1, k2, k3 = jax.random.split(key, 3)
    p = {"conv1": init_feast_conv(k1, cin, cout, heads),
         "conv2": init_feast_conv(k2, cout, cout, heads)}
    if cin != cout:
        k3a, _ = jax.random.split(k3)
        p["shortcut"] = {"W": _glorot(k3a, (cin, cout)),
                         "b": jnp.zeros((1, cout), jnp.float32)}
    return p


def init_encoder(key, channels, heads):
    keys = jax.random.split(key, len(channels) - 1)
    return [init_res_block(k, ci, co, heads)
            for k, ci, co in zip(keys, channels, channels[1:])]


# --------------------------------------------------------------------------- #
if __name__ == "__main__":
    key = jax.random.PRNGKey(0)
    kx, kp = jax.random.split(key)

    x = jax.random.normal(kx, (N_NODES, CHANNELS[0]), jnp.float32)

    # Deterministic bidirectional ring graph; edge_index[0]=source, [1]=target.
    idx = jnp.arange(N_NODES)
    nxt = (idx + 1) % N_NODES
    edge_index = jnp.stack([jnp.concatenate([idx, nxt]),
                            jnp.concatenate([nxt, idx])]).astype(jnp.int32)

    params = init_encoder(kp, CHANNELS, HEADS)

    # Static graph: build the normalized dense adjacency once, outside the hot jit.
    adj_norm = jax.block_until_ready(build_adj_norm(edge_index, N_NODES))

    fwd = jax.jit(functools.partial(feast_encoder_forward, heads=HEADS))
    out_x = jax.block_until_ready(fwd(x, adj_norm, params))
    out_ei = edge_index   # module forward returns (x, edge_index) unchanged

    assert out_x.shape == (N_NODES, CHANNELS[-1])
    assert out_ei.shape == edge_index.shape
    assert bool(jnp.all(jnp.isfinite(out_x)))
    print("KERNEL_OK")
</pallas_src>

<mosaic_0001>
module attributes {stable_mosaic.version = 11 : i64} {
  func.func @_encoder_kernel(%arg0: memref<64x16xf32, #tpu.memory_space<vmem>>, %arg1: memref<64x64xf32, #tpu.memory_space<vmem>>, %arg2: memref<4x4xf32, #tpu.memory_space<smem>>, %arg3: memref<16x128xf32, #tpu.memory_space<vmem>>, %arg4: memref<1x32xf32, #tpu.memory_space<vmem>>, %arg5: memref<16x4xf32, #tpu.memory_space<vmem>>, %arg6: memref<32x128xf32, #tpu.memory_space<vmem>>, %arg7: memref<1x32xf32, #tpu.memory_space<vmem>>, %arg8: memref<32x4xf32, #tpu.memory_space<vmem>>, %arg9: memref<16x32xf32, #tpu.memory_space<vmem>>, %arg10: memref<1x32xf32, #tpu.memory_space<vmem>>, %arg11: memref<32x128xf32, #tpu.memory_space<vmem>>, %arg12: memref<1x32xf32, #tpu.memory_space<vmem>>, %arg13: memref<32x4xf32, #tpu.memory_space<vmem>>, %arg14: memref<32x128xf32, #tpu.memory_space<vmem>>, %arg15: memref<1x32xf32, #tpu.memory_space<vmem>>, %arg16: memref<32x4xf32, #tpu.memory_space<vmem>>, %arg17: memref<64x32xf32, #tpu.memory_space<vmem>>) attributes {dimension_semantics = [], scalar_prefetch = 0 : i64, scratch_operands = 0 : i64, tpu.core_type = #tpu.core_type<tc>} {
    %c0 = arith.constant 0 : index
    %c0_0 = arith.constant 0 : index
    %0 = vector.load %arg1[%c0, %c0_0] : memref<64x64xf32, #tpu.memory_space<vmem>>, vector<64x64xf32>
    %c0_1 = arith.constant 0 : index
    %c0_2 = arith.constant 0 : index
    %1 = vector.load %arg0[%c0_1, %c0_2] : memref<64x16xf32, #tpu.memory_space<vmem>>, vector<64x16xf32>
    %c0_3 = arith.constant 0 : index
    %c0_4 = arith.constant 0 : index
    %2 = vector.load %arg9[%c0_3, %c0_4] : memref<16x32xf32, #tpu.memory_space<vmem>>, vector<16x32xf32>
    %3 = arith.truncf %1 : vector<64x16xf32> to vector<64x16xbf16>
    %4 = arith.truncf %2 : vector<16x32xf32> to vector<16x32xbf16>
    %cst = arith.constant dense<0.000000e+00> : vector<64x32xf32>
    %5 = tpu.matmul %3, %4, %cst {dimension_numbers = #tpu.dot_dimension_numbers<[1], [0], [0], [1], [0, 0, 1, 1], [], []>} : vector<64x16xbf16>, vector<16x32xbf16>, vector<64x32xf32> -> vector<64x32xf32>
    %c0_5 = arith.constant 0 : index
    %c0_6 = arith.constant 0 : index
    %6 = vector.load %arg10[%c0_5, %c0_6] : memref<1x32xf32, #tpu.memory_space<vmem>>, vector<1x32xf32>
    %7 = vector.broadcast %6 : vector<1x32xf32> to vector<64x32xf32>
    %8 = arith.addf %5, %7 : vector<64x32xf32>
    %c0_7 = arith.constant 0 : index
    %c0_8 = arith.constant 0 : index
    %9 = vector.load %arg3[%c0_7, %c0_8] : memref<16x128xf32, #tpu.memory_space<vmem>>, vector<16x128xf32>
    %c0_9 = arith.constant 0 : index
    %c0_10 = arith.constant 0 : index
    %10 = vector.load %arg5[%c0_9, %c0_10] : memref<16x4xf32, #tpu.memory_space<vmem>>, vector<16x4xf32>
    %11 = arith.truncf %1 : vector<64x16xf32> to vector<64x16xbf16>
    %12 = arith.truncf %9 : vector<16x128xf32> to vector<16x128xbf16>
    %cst_11 = arith.constant dense<0.000000e+00> : vector<64x128xf32>
    %13 = tpu.matmul %11, %12, %cst_11 {dimension_numbers = #tpu.dot_dimension_numbers<[1], [0], [0], [1], [0, 0, 1, 1], [], []>} : vector<64x16xbf16>, vector<16x128xbf16>, vector<64x128xf32> -> vector<64x128xf32>
    %14 = arith.truncf %1 : vector<64x16xf32> to vector<64x16xbf16>
    %15 = arith.truncf %10 : vector<16x4xf32> to vector<16x4xbf16>
    %cst_12 = arith.constant dense<0.000000e+00> : vector<64x4xf32>
    %16 = tpu.matmul %14, %15, %cst_12 {dimension_numbers = #tpu.dot_dimension_numbers<[1], [0], [0], [1], [0, 0, 1, 1], [], []>} : vector<64x16xbf16>, vector<16x4xbf16>, vector<64x4xf32> -> vector<64x4xf32>
    %17 = tpu.transpose %16, [1, 0] : vector<64x4xf32> -> vector<4x64xf32>
    %18 = vector.extract_strided_slice %17 {offsets = [0, 0], sizes = [1, 64], strides = [1, 1]} : vector<4x64xf32> to vector<1x64xf32>
    %19 = vector.extract_strided_slice %16 {offsets = [0, 0], sizes = [64, 1], strides = [1, 1]} : vector<64x4xf32> to vector<64x1xf32>
    %20 = vector.broadcast %18 : vector<1x64xf32> to vector<64x64xf32>
    %21 = vector.broadcast %19 : vector<64x1xf32> to vector<64x64xf32>
    %22 = arith.subf %20, %21 : vector<64x64xf32>
    %c0_13 = arith.constant 0 : index
    %c0_14 = arith.constant 0 : index
    %23 = memref.load %arg2[%c0_13, %c0_14] : memref<4x4xf32, #tpu.memory_space<smem>>
    %24 = vector.broadcast %23 : f32 to vector<64x64xf32>
    %25 = arith.addf %22, %24 : vector<64x64xf32>
    %26 = vector.extract_strided_slice %17 {offsets = [1, 0], sizes = [1, 64], strides = [1, 1]} : vector<4x64xf32> to vector<1x64xf32>
    %27 = vector.extract_strided_slice %16 {offsets = [0, 1], sizes = [64, 1], strides = [1, 1]} : vector<64x4xf32> to vector<64x1xf32>
    %28 = vector.broadcast %26 : vector<1x64xf32> to vector<64x64xf32>
    %29 = vector.broadcast %27 : vector<64x1xf32> to vector<64x64xf32>
    %30 = arith.subf %28, %29 : vector<64x64xf32>
    %c0_15 = arith.constant 0 : index
    %c1 = arith.constant 1 : index
    %31 = memref.load %arg2[%c0_15, %c1] : memref<4x4xf32, #tpu.memory_space<smem>>
    %32 = vector.broadcast %31 : f32 to vector<64x64xf32>
    %33 = arith.addf %30, %32 : vector<64x64xf32>
    %34 = arith.maximumf %25, %33 : vector<64x64xf32>
    %35 = vector.extract_strided_slice %17 {offsets = [2, 0], sizes = [1, 64], strides = [1, 1]} : vector<4x64xf32> to vector<1x64xf32>
    %36 = vector.extract_strided_slice %16 {offsets = [0, 2], sizes = [64, 1], strides = [1, 1]} : vector<64x4xf32> to vector<64x1xf32>
    %37 = vector.broadcast %35 : vector<1x64xf32> to vector<64x64xf32>
    %38 = vector.broadcast %36 : vector<64x1xf32> to vector<64x64xf32>
    %39 = arith.subf %37, %38 : vector<64x64xf32>
    %c0_16 = arith.constant 0 : index
    %c2 = arith.constant 2 : index
    %40 = memref.load %arg2[%c0_16, %c2] : memref<4x4xf32, #tpu.memory_space<smem>>
    %41 = vector.broadcast %40 : f32 to vector<64x64xf32>
    %42 = arith.addf %39, %41 : vector<64x64xf32>
    %43 = arith.maximumf %34, %42 : vector<64x64xf32>
    %44 = vector.extract_strided_slice %17 {offsets = [3, 0], sizes = [1, 64], strides = [1, 1]} : vector<4x64xf32> to vector<1x64xf32>
    %45 = vector.extract_strided_slice %16 {offsets = [0, 3], sizes = [64, 1], strides = [1, 1]} : vector<64x4xf32> to vector<64x1xf32>
    %46 = vector.broadcast %44 : vector<1x64xf32> to vector<64x64xf32>
    %47 = vector.broadcast %45 : vector<64x1xf32> to vector<64x64xf32>
    %48 = arith.subf %46, %47 : vector<64x64xf32>
    %c0_17 = arith.constant 0 : index
    %c3 = arith.constant 3 : index
    %49 = memref.load %arg2[%c0_17, %c3] : memref<4x4xf32, #tpu.memory_space<smem>>
    %50 = vector.broadcast %49 : f32 to vector<64x64xf32>
    %51 = arith.addf %48, %50 : vector<64x64xf32>
    %52 = arith.maximumf %43, %51 : vector<64x64xf32>
    %cst_18 = arith.constant 0.000000e+00 : f32
    %53 = vector.broadcast %cst_18 : f32 to vector<64x64xf32>
    %54 = vector.extract_strided_slice %17 {offsets = [0, 0], sizes = [1, 64], strides = [1, 1]} : vector<4x64xf32> to vector<1x64xf32>
    %55 = vector.extract_strided_slice %16 {offsets = [0, 0], sizes = [64, 1], strides = [1, 1]} : vector<64x4xf32> to vector<64x1xf32>
    %56 = vector.broadcast %54 : vector<1x64xf32> to vector<64x64xf32>
    %57 = vector.broadcast %55 : vector<64x1xf32> to vector<64x64xf32>
    %58 = arith.subf %56, %57 : vector<64x64xf32>
    %c0_19 = arith.constant 0 : index
    %c0_20 = arith.constant 0 : index
    %59 = memref.load %arg2[%c0_19, %c0_20] : memref<4x4xf32, #tpu.memory_space<smem>>
    %60 = vector.broadcast %59 : f32 to vector<64x64xf32>
    %61 = arith.addf %58, %60 : vector<64x64xf32>
    %62 = arith.subf %61, %52 : vector<64x64xf32>
    %63 = math.exp %62 : vector<64x64xf32>
    %64 = arith.addf %53, %63 : vector<64x64xf32>
    %65 = arith.mulf %63, %0 : vector<64x64xf32>
    %66 = vector.extract_strided_slice %17 {offsets = [1, 0], sizes = [1, 64], strides = [1, 1]} : vector<4x64xf32> to vector<1x64xf32>
    %67 = vector.extract_strided_slice %16 {offsets = [0, 1], sizes = [64, 1], strides = [1, 1]} : vector<64x4xf32> to vector<64x1xf32>
    %68 = vector.broadcast %66 : vector<1x64xf32> to vector<64x64xf32>
    %69 = vector.broadcast %67 : vector<64x1xf32> to vector<64x64xf32>
    %70 = arith.subf %68, %69 : vector<64x64xf32>
    %c0_21 = arith.constant 0 : index
    %c1_22 = arith.constant 1 : index
    %71 = memref.load %arg2[%c0_21, %c1_22] : memref<4x4xf32, #tpu.memory_space<smem>>
    %72 = vector.broadcast %71 : f32 to vector<64x64xf32>
    %73 = arith.addf %70, %72 : vector<64x64xf32>
    %74 = arith.subf %73, %52 : vector<64x64xf32>
    %75 = math.exp %74 : vector<64x64xf32>
    %76 = arith.addf %64, %75 : vector<64x64xf32>
    %77 = arith.mulf %75, %0 : vector<64x64xf32>
    %78 = vector.extract_strided_slice %17 {offsets = [2, 0], sizes = [1, 64], strides = [1, 1]} : vector<4x64xf32> to vector<1x64xf32>
    %79 = vector.extract_strided_slice %16 {offsets = [0, 2], sizes = [64, 1], strides = [1, 1]} : vector<64x4xf32> to vector<64x1xf32>
    %80 = vector.broadcast %78 : vector<1x64xf32> to vector<64x64xf32>
    %81 = vector.broadcast %79 : vector<64x1xf32> to vector<64x64xf32>
    %82 = arith.subf %80, %81 : vector<64x64xf32>
    %c0_23 = arith.constant 0 : index
    %c2_24 = arith.constant 2 : index
    %83 = memref.load %arg2[%c0_23, %c2_24] : memref<4x4xf32, #tpu.memory_space<smem>>
    %84 = vector.broadcast %83 : f32 to vector<64x64xf32>
    %85 = arith.addf %82, %84 : vector<64x64xf32>
    %86 = arith.subf %85, %52 : vector<64x64xf32>
    %87 = math.exp %86 : vector<64x64xf32>
    %88 = arith.addf %76, %87 : vector<64x64xf32>
    %89 = arith.mulf %87, %0 : vector<64x64xf32>
    %90 = vector.extract_strided_slice %17 {offsets = [3, 0], sizes = [1, 64], strides = [1, 1]} : vector<4x64xf32> to vector<1x64xf32>
    %91 = vector.extract_strided_slice %16 {offsets = [0, 3], sizes = [64, 1], strides = [1, 1]} : vector<64x4xf32> to vector<64x1xf32>
    %92 = vector.broadcast %90 : vector<1x64xf32> to vector<64x64xf32>
    %93 = vector.broadcast %91 : vector<64x1xf32> to vector<64x64xf32>
    %94 = arith.subf %92, %93 : vector<64x64xf32>
    %c0_25 = arith.constant 0 : index
    %c3_26 = arith.constant 3 : index
    %95 = memref.load %arg2[%c0_25, %c3_26] : memref<4x4xf32, #tpu.memory_space<smem>>
    %96 = vector.broadcast %95 : f32 to vector<64x64xf32>
    %97 = arith.addf %94, %96 : vector<64x64xf32>
    %98 = arith.subf %97, %52 : vector<64x64xf32>
    %99 = math.exp %98 : vector<64x64xf32>
    %100 = arith.addf %88, %99 : vector<64x64xf32>
    %101 = arith.mulf %99, %0 : vector<64x64xf32>
    %102 = tpu.reciprocal %100 {approx = true} : vector<64x64xf32> -> vector<64x64xf32>
    %103 = arith.mulf %65, %102 : vector<64x64xf32>
    %104 = arith.mulf %77, %102 : vector<64x64xf32>
    %105 = arith.mulf %89, %102 : vector<64x64xf32>
    %106 = arith.mulf %101, %102 : vector<64x64xf32>
    %107 = tpu.concatenate %103, %104, %105, %106 in 1 : vector<64x64xf32>, vector<64x64xf32>, vector<64x64xf32>, vector<64x64xf32> -> vector<64x256xf32>
    %108 = vector.extract_strided_slice %13 {offsets = [0, 0], sizes = [64, 32], strides = [1, 1]} : vector<64x128xf32> to vector<64x32xf32>
    %109 = vector.extract_strided_slice %13 {offsets = [0, 32], sizes = [64, 32], strides = [1, 1]} : vector<64x128xf32> to vector<64x32xf32>
    %110 = vector.extract_strided_slice %13 {offsets = [0, 64], sizes = [64, 32], strides = [1, 1]} : vector<64x128xf32> to vector<64x32xf32>
    %111 = vector.extract_strided_slice %13 {offsets = [0, 96], sizes = [64, 32], strides = [1, 1]} : vector<64x128xf32> to vector<64x32xf32>
    %112 = tpu.concatenate %108, %109, %110, %111 in 0 : vector<64x32xf32>, vector<64x32xf32>, vector<64x32xf32>, vector<64x32xf32> -> vector<256x32xf32>
    %113 = arith.truncf %107 : vector<64x256xf32> to vector<64x256xbf16>
    %114 = arith.truncf %112 : vector<256x32xf32> to vector<256x32xbf16>
    %cst_27 = arith.constant dense<0.000000e+00> : vector<64x32xf32>
    %115 = tpu.matmul %113, %114, %cst_27 {dimension_numbers = #tpu.dot_dimension_numbers<[1], [0], [0], [1], [0, 0, 1, 1], [], []>} : vector<64x256xbf16>, vector<256x32xbf16>, vector<64x32xf32> -> vector<64x32xf32>
    %c0_28 = arith.constant 0 : index
    %c0_29 = arith.constant 0 : index
    %116 = vector.load %arg4[%c0_28, %c0_29] : memref<1x32xf32, #tpu.memory_space<vmem>>, vector<1x32xf32>
    %117 = vector.broadcast %116 : vector<1x32xf32> to vector<64x32xf32>
    %118 = arith.addf %115, %117 : vector<64x32xf32>
    %cst_30 = arith.constant 0.000000e+00 : f32
    %119 = vector.broadcast %cst_30 : f32 to vector<64x32xf32>
    %120 = arith.maximumf %118, %119 : vector<64x32xf32>
    %c0_31 = arith.constant 0 : index
    %c0_32 = arith.constant 0 : index
    %121 = vector.load %arg6[%c0_31, %c0_32] : memref<32x128xf32, #tpu.memory_space<vmem>>, vector<32x128xf32>
    %c0_33 = arith.constant 0 : index
    %c0_34 = arith.constant 0 : index
    %122 = vector.load %arg8[%c0_33, %c0_34] : memref<32x4xf32, #tpu.memory_space<vmem>>, vector<32x4xf32>
    %123 = arith.truncf %120 : vector<64x32xf32> to vector<64x32xbf16>
    %124 = arith.truncf %121 : vector<32x128xf32> to vector<32x128xbf16>
    %cst_35 = arith.constant dense<0.000000e+00> : vector<64x128xf32>
    %125 = tpu.matmul %123, %124, %cst_35 {dimension_numbers = #tpu.dot_dimension_numbers<[1], [0], [0], [1], [0, 0, 1, 1], [], []>} : vector<64x32xbf16>, vector<32x128xbf16>, vector<64x128xf32> -> vector<64x128xf32>
    %126 = arith.truncf %120 : vector<64x32xf32> to vector<64x32xbf16>
    %127 = arith.truncf %122 : vector<32x4xf32> to vector<32x4xbf16>
    %cst_36 = arith.constant dense<0.000000e+00> : vector<64x4xf32>
    %128 = tpu.matmul %126, %127, %cst_36 {dimension_numbers = #tpu.dot_dimension_numbers<[1], [0], [0], [1], [0, 0, 1, 1], [], []>} : vector<64x32xbf16>, vector<32x4xbf16>, vector<64x4xf32> -> vector<64x4xf32>
    %129 = tpu.transpose %128, [1, 0] : vector<64x4xf32> -> vector<4x64xf32>
    %130 = vector.extract_strided_slice %129 {offsets = [0, 0], sizes = [1, 64], strides = [1, 1]} : vector<4x64xf32> to vector<1x64xf32>
    %131 = vector.extract_strided_slice %128 {offsets = [0, 0], sizes = [64, 1], strides = [1, 1]} : vector<64x4xf32> to vector<64x1xf32>
    %132 = vector.broadcast %130 : vector<1x64xf32> to vector<64x64xf32>
    %133 = vector.broadcast %131 : vector<64x1xf32> to vector<64x64xf32>
    %134 = arith.subf %132, %133 : vector<64x64xf32>
    %c1_37 = arith.constant 1 : index
    %c0_38 = arith.constant 0 : index
    %135 = memref.load %arg2[%c1_37, %c0_38] : memref<4x4xf32, #tpu.memory_space<smem>>
    %136 = vector.broadcast %135 : f32 to vector<64x64xf32>
    %137 = arith.addf %134, %136 : vector<64x64xf32>
    %138 = vector.extract_strided_slice %129 {offsets = [1, 0], sizes = [1, 64], strides = [1, 1]} : vector<4x64xf32> to vector<1x64xf32>
    %139 = vector.extract_strided_slice %128 {offsets = [0, 1], sizes = [64, 1], strides = [1, 1]} : vector<64x4xf32> to vector<64x1xf32>
    %140 = vector.broadcast %138 : vector<1x64xf32> to vector<64x64xf32>
    %141 = vector.broadcast %139 : vector<64x1xf32> to vector<64x64xf32>
    %142 = arith.subf %140, %141 : vector<64x64xf32>
    %c1_39 = arith.constant 1 : index
    %c1_40 = arith.constant 1 : index
    %143 = memref.load %arg2[%c1_39, %c1_40] : memref<4x4xf32, #tpu.memory_space<smem>>
    %144 = vector.broadcast %143 : f32 to vector<64x64xf32>
    %145 = arith.addf %142, %144 : vector<64x64xf32>
    %146 = arith.maximumf %137, %145 : vector<64x64xf32>
    %147 = vector.extract_strided_slice %129 {offsets = [2, 0], sizes = [1, 64], strides = [1, 1]} : vector<4x64xf32> to vector<1x64xf32>
    %148 = vector.extract_strided_slice %128 {offsets = [0, 2], sizes = [64, 1], strides = [1, 1]} : vector<64x4xf32> to vector<64x1xf32>
    %149 = vector.broadcast %147 : vector<1x64xf32> to vector<64x64xf32>
    %150 = vector.broadcast %148 : vector<64x1xf32> to vector<64x64xf32>
    %151 = arith.subf %149, %150 : vector<64x64xf32>
    %c1_41 = arith.constant 1 : index
    %c2_42 = arith.constant 2 : index
    %152 = memref.load %arg2[%c1_41, %c2_42] : memref<4x4xf32, #tpu.memory_space<smem>>
    %153 = vector.broadcast %152 : f32 to vector<64x64xf32>
    %154 = arith.addf %151, %153 : vector<64x64xf32>
    %155 = arith.maximumf %146, %154 : vector<64x64xf32>
    %156 = vector.extract_strided_slice %129 {offsets = [3, 0], sizes = [1, 64], strides = [1, 1]} : vector<4x64xf32> to vector<1x64xf32>
    %157 = vector.extract_strided_slice %128 {offsets = [0, 3], sizes = [64, 1], strides = [1, 1]} : vector<64x4xf32> to vector<64x1xf32>
    %158 = vector.broadcast %156 : vector<1x64xf32> to vector<64x64xf32>
    %159 = vector.broadcast %157 : vector<64x1xf32> to vector<64x64xf32>
    %160 = arith.subf %158, %159 : vector<64x64xf32>
    %c1_43 = arith.constant 1 : index
    %c3_44 = arith.constant 3 : index
    %161 = memref.load %arg2[%c1_43, %c3_44] : memref<4x4xf32, #tpu.memory_space<smem>>
    %162 = vector.broadcast %161 : f32 to vector<64x64xf32>
    %163 = arith.addf %160, %162 : vector<64x64xf32>
    %164 = arith.maximumf %155, %163 : vector<64x64xf32>
    %cst_45 = arith.constant 0.000000e+00 : f32
    %165 = vector.broadcast %cst_45 : f32 to vector<64x64xf32>
    %166 = vector.extract_strided_slice %129 {offsets = [0, 0], sizes = [1, 64], strides = [1, 1]} : vector<4x64xf32> to vector<1x64xf32>
    %167 = vector.extract_strided_slice %128 {offsets = [0, 0], sizes = [64, 1], strides = [1, 1]} : vector<64x4xf32> to vector<64x1xf32>
    %168 = vector.broadcast %166 : vector<1x64xf32> to vector<64x64xf32>
    %169 = vector.broadcast %167 : vector<64x1xf32> to vector<64x64xf32>
    %170 = arith.subf %168, %169 : vector<64x64xf32>
    %c1_46 = arith.constant 1 : index
    %c0_47 = arith.constant 0 : index
    %171 = memref.load %arg2[%c1_46, %c0_47] : memref<4x4xf32, #tpu.memory_space<smem>>
    %172 = vector.broadcast %171 : f32 to vector<64x64xf32>
    %173 = arith.addf %170, %172 : vector<64x64xf32>
    %174 = arith.subf %173, %164 : vector<64x64xf32>
    %175 = math.exp %174 : vector<64x64xf32>
    %176 = arith.addf %165, %175 : vector<64x64xf32>
    %177 = arith.mulf %175, %0 : vector<64x64xf32>
    %178 = vector.extract_strided_slice %129 {offsets = [1, 0], sizes = [1, 64], strides = [1, 1]} : vector<4x64xf32> to vector<1x64xf32>
    %179 = vector.extract_strided_slice %128 {offsets = [0, 1], sizes = [64, 1], strides = [1, 1]} : vector<64x4xf32> to vector<64x1xf32>
    %180 = vector.broadcast %178 : vector<1x64xf32> to vector<64x64xf32>
    %181 = vector.broadcast %179 : vector<64x1xf32> to vector<64x64xf32>
    %182 = arith.subf %180, %181 : vector<64x64xf32>
    %c1_48 = arith.constant 1 : index
    %c1_49 = arith.constant 1 : index
    %183 = memref.load %arg2[%c1_48, %c1_49] : memref<4x4xf32, #tpu.memory_space<smem>>
    %184 = vector.broadcast %183 : f32 to vector<64x64xf32>
    %185 = arith.addf %182, %184 : vector<64x64xf32>
    %186 = arith.subf %185, %164 : vector<64x64xf32>
    %187 = math.exp %186 : vector<64x64xf32>
    %188 = arith.addf %176, %187 : vector<64x64xf32>
    %189 = arith.mulf %187, %0 : vector<64x64xf32>
    %190 = vector.extract_strided_slice %129 {offsets = [2, 0], sizes = [1, 64], strides = [1, 1]} : vector<4x64xf32> to vector<1x64xf32>
    %191 = vector.extract_strided_slice %128 {offsets = [0, 2], sizes = [64, 1], strides = [1, 1]} : vector<64x4xf32> to vector<64x1xf32>
    %192 = vector.broadcast %190 : vector<1x64xf32> to vector<64x64xf32>
    %193 = vector.broadcast %191 : vector<64x1xf32> to vector<64x64xf32>
    %194 = arith.subf %192, %193 : vector<64x64xf32>
    %c1_50 = arith.constant 1 : index
    %c2_51 = arith.constant 2 : index
    %195 = memref.load %arg2[%c1_50, %c2_51] : memref<4x4xf32, #tpu.memory_space<smem>>
    %196 = vector.broadcast %195 : f32 to vector<64x64xf32>
    %197 = arith.addf %194, %196 : vector<64x64xf32>
    %198 = arith.subf %197, %164 : vector<64x64xf32>
    %199 = math.exp %198 : vector<64x64xf32>
    %200 = arith.addf %188, %199 : vector<64x64xf32>
    %201 = arith.mulf %199, %0 : vector<64x64xf32>
    %202 = vector.extract_strided_slice %129 {offsets = [3, 0], sizes = [1, 64], strides = [1, 1]} : vector<4x64xf32> to vector<1x64xf32>
    %203 = vector.extract_strided_slice %128 {offsets = [0, 3], sizes = [64, 1], strides = [1, 1]} : vector<64x4xf32> to vector<64x1xf32>
    %204 = vector.broadcast %202 : vector<1x64xf32> to vector<64x64xf32>
    %205 = vector.broadcast %203 : vector<64x1xf32> to vector<64x64xf32>
    %206 = arith.subf %204, %205 : vector<64x64xf32>
    %c1_52 = arith.constant 1 : index
    %c3_53 = arith.constant 3 : index
    %207 = memref.load %arg2[%c1_52, %c3_53] : memref<4x4xf32, #tpu.memory_space<smem>>
    %208 = vector.broadcast %207 : f32 to vector<64x64xf32>
    %209 = arith.addf %206, %208 : vector<64x64xf32>
    %210 = arith.subf %209, %164 : vector<64x64xf32>
    %211 = math.exp %210 : vector<64x64xf32>
    %212 = arith.addf %200, %211 : vector<64x64xf32>
    %213 = arith.mulf %211, %0 : vector<64x64xf32>
    %214 = tpu.reciprocal %212 {approx = true} : vector<64x64xf32> -> vector<64x64xf32>
    %215 = arith.mulf %177, %214 : vector<64x64xf32>
    %216 = arith.mulf %189, %214 : vector<64x64xf32>
    %217 = arith.mulf %201, %214 : vector<64x64xf32>
    %218 = arith.mulf %213, %214 : vector<64x64xf32>
    %219 = tpu.concatenate %215, %216, %217, %218 in 1 : vector<64x64xf32>, vector<64x64xf32>, vector<64x64xf32>, vector<64x64xf32> -> vector<64x256xf32>
    %220 = vector.extract_strided_slice %125 {offsets = [0, 0], sizes = [64, 32], strides = [1, 1]} : vector<64x128xf32> to vector<64x32xf32>
    %221 = vector.extract_strided_slice %125 {offsets = [0, 32], sizes = [64, 32], strides = [1, 1]} : vector<64x128xf32> to vector<64x32xf32>
    %222 = vector.extract_strided_slice %125 {offsets = [0, 64], sizes = [64, 32], strides = [1, 1]} : vector<64x128xf32> to vector<64x32xf32>
    %223 = vector.extract_strided_slice %125 {offsets = [0, 96], sizes = [64, 32], strides = [1, 1]} : vector<64x128xf32> to vector<64x32xf32>
    %224 = tpu.concatenate %220, %221, %222, %223 in 0 : vector<64x32xf32>, vector<64x32xf32>, vector<64x32xf32>, vector<64x32xf32> -> vector<256x32xf32>
    %225 = arith.truncf %219 : vector<64x256xf32> to vector<64x256xbf16>
    %226 = arith.truncf %224 : vector<256x32xf32> to vector<256x32xbf16>
    %cst_54 = arith.constant dense<0.000000e+00> : vector<64x32xf32>
    %227 = tpu.matmul %225, %226, %cst_54 {dimension_numbers = #tpu.dot_dimension_numbers<[1], [0], [0], [1], [0, 0, 1, 1], [], []>} : vector<64x256xbf16>, vector<256x32xbf16>, vector<64x32xf32> -> vector<64x32xf32>
    %c0_55 = arith.constant 0 : index
    %c0_56 = arith.constant 0 : index
    %228 = vector.load %arg7[%c0_55, %c0_56] : memref<1x32xf32, #tpu.memory_space<vmem>>, vector<1x32xf32>
    %229 = vector.broadcast %228 : vector<1x32xf32> to vector<64x32xf32>
    %230 = arith.addf %227, %229 : vector<64x32xf32>
    %231 = arith.addf %230, %8 : vector<64x32xf32>
    %cst_57 = arith.constant 0.000000e+00 : f32
    %232 = vector.broadcast %cst_57 : f32 to vector<64x32xf32>
    %233 = arith.maximumf %231, %232 : vector<64x32xf32>
    %c0_58 = arith.constant 0 : index
    %c0_59 = arith.constant 0 : index
    %234 = vector.load %arg11[%c0_58, %c0_59] : memref<32x128xf32, #tpu.memory_space<vmem>>, vector<32x128xf32>
    %c0_60 = arith.constant 0 : index
    %c0_61 = arith.constant 0 : index
    %235 = vector.load %arg13[%c0_60, %c0_61] : memref<32x4xf32, #tpu.memory_space<vmem>>, vector<32x4xf32>
    %236 = arith.truncf %233 : vector<64x32xf32> to vector<64x32xbf16>
    %237 = arith.truncf %234 : vector<32x128xf32> to vector<32x128xbf16>
    %cst_62 = arith.constant dense<0.000000e+00> : vector<64x128xf32>
    %238 = tpu.matmul %236, %237, %cst_62 {dimension_numbers = #tpu.dot_dimension_numbers<[1], [0], [0], [1], [0, 0, 1, 1], [], []>} : vector<64x32xbf16>, vector<32x128xbf16>, vector<64x128xf32> -> vector<64x128xf32>
    %239 = arith.truncf %233 : vector<64x32xf32> to vector<64x32xbf16>
    %240 = arith.truncf %235 : vector<32x4xf32> to vector<32x4xbf16>
    %cst_63 = arith.constant dense<0.000000e+00> : vector<64x4xf32>
    %241 = tpu.matmul %239, %240, %cst_63 {dimension_numbers = #tpu.dot_dimension_numbers<[1], [0], [0], [1], [0, 0, 1, 1], [], []>} : vector<64x32xbf16>, vector<32x4xbf16>, vector<64x4xf32> -> vector<64x4xf32>
    %242 = tpu.transpose %241, [1, 0] : vector<64x4xf32> -> vector<4x64xf32>
    %243 = vector.extract_strided_slice %242 {offsets = [0, 0], sizes = [1, 64], strides = [1, 1]} : vector<4x64xf32> to vector<1x64xf32>
    %244 = vector.extract_strided_slice %241 {offsets = [0, 0], sizes = [64, 1], strides = [1, 1]} : vector<64x4xf32> to vector<64x1xf32>
    %245 = vector.broadcast %243 : vector<1x64xf32> to vector<64x64xf32>
    %246 = vector.broadcast %244 : vector<64x1xf32> to vector<64x64xf32>
    %247 = arith.subf %245, %246 : vector<64x64xf32>
    %c2_64 = arith.constant 2 : index
    %c0_65 = arith.constant 0 : index
    %248 = memref.load %arg2[%c2_64, %c0_65] : memref<4x4xf32, #tpu.memory_space<smem>>
    %249 = vector.broadcast %248 : f32 to vector<64x64xf32>
    %250 = arith.addf %247, %249 : vector<64x64xf32>
    %251 = vector.extract_strided_slice %242 {offsets = [1, 0], sizes = [1, 64], strides = [1, 1]} : vector<4x64xf32> to vector<1x64xf32>
    %252 = vector.extract_strided_slice %241 {offsets = [0, 1], sizes = [64, 1], strides = [1, 1]} : vector<64x4xf32> to vector<64x1xf32>
    %253 = vector.broadcast %251 : vector<1x64xf32> to vector<64x64xf32>
    %254 = vector.broadcast %252 : vector<64x1xf32> to vector<64x64xf32>
    %255 = arith.subf %253, %254 : vector<64x64xf32>
    %c2_66 = arith.constant 2 : index
    %c1_67 = arith.constant 1 : index
    %256 = memref.load %arg2[%c2_66, %c1_67] : memref<4x4xf32, #tpu.memory_space<smem>>
    %257 = vector.broadcast %256 : f32 to vector<64x64xf32>
    %258 = arith.addf %255, %257 : vector<64x64xf32>
    %259 = arith.maximumf %250, %258 : vector<64x64xf32>
    %260 = vector.extract_strided_slice %242 {offsets = [2, 0], sizes = [1, 64], strides = [1, 1]} : vector<4x64xf32> to vector<1x64xf32>
    %261 = vector.extract_strided_slice %241 {offsets = [0, 2], sizes = [64, 1], strides = [1, 1]} : vector<64x4xf32> to vector<64x1xf32>
    %262 = vector.broadcast %260 : vector<1x64xf32> to vector<64x64xf32>
    %263 = vector.broadcast %261 : vector<64x1xf32> to vector<64x64xf32>
    %264 = arith.subf %262, %263 : vector<64x64xf32>
    %c2_68 = arith.constant 2 : index
    %c2_69 = arith.constant 2 : index
    %265 = memref.load %arg2[%c2_68, %c2_69] : memref<4x4xf32, #tpu.memory_space<smem>>
    %266 = vector.broadcast %265 : f32 to vector<64x64xf32>
    %267 = arith.addf %264, %266 : vector<64x64xf32>
    %268 = arith.maximumf %259, %267 : vector<64x64xf32>
    %269 = vector.extract_strided_slice %242 {offsets = [3, 0], sizes = [1, 64], strides = [1, 1]} : vector<4x64xf32> to vector<1x64xf32>
    %270 = vector.extract_strided_slice %241 {offsets = [0, 3], sizes = [64, 1], strides = [1, 1]} : vector<64x4xf32> to vector<64x1xf32>
    %271 = vector.broadcast %269 : vector<1x64xf32> to vector<64x64xf32>
    %272 = vector.broadcast %270 : vector<64x1xf32> to vector<64x64xf32>
    %273 = arith.subf %271, %272 : vector<64x64xf32>
    %c2_70 = arith.constant 2 : index
    %c3_71 = arith.constant 3 : index
    %274 = memref.load %arg2[%c2_70, %c3_71] : memref<4x4xf32, #tpu.memory_space<smem>>
    %275 = vector.broadcast %274 : f32 to vector<64x64xf32>
    %276 = arith.addf %273, %275 : vector<64x64xf32>
    %277 = arith.maximumf %268, %276 : vector<64x64xf32>
    %cst_72 = arith.constant 0.000000e+00 : f32
    %278 = vector.broadcast %cst_72 : f32 to vector<64x64xf32>
    %279 = vector.extract_strided_slice %242 {offsets = [0, 0], sizes = [1, 64], strides = [1, 1]} : vector<4x64xf32> to vector<1x64xf32>
    %280 = vector.extract_strided_slice %241 {offsets = [0, 0], sizes = [64, 1], strides = [1, 1]} : vector<64x4xf32> to vector<64x1xf32>
    %281 = vector.broadcast %279 : vector<1x64xf32> to vector<64x64xf32>
    %282 = vector.broadcast %280 : vector<64x1xf32> to vector<64x64xf32>
    %283 = arith.subf %281, %282 : vector<64x64xf32>
    %c2_73 = arith.constant 2 : index
    %c0_74 = arith.constant 0 : index
    %284 = memref.load %arg2[%c2_73, %c0_74] : memref<4x4xf32, #tpu.memory_space<smem>>
    %285 = vector.broadcast %284 : f32 to vector<64x64xf32>
    %286 = arith.addf %283, %285 : vector<64x64xf32>
    %287 = arith.subf %286, %277 : vector<64x64xf32>
    %288 = math.exp %287 : vector<64x64xf32>
    %289 = arith.addf %278, %288 : vector<64x64xf32>
    %290 = arith.mulf %288, %0 : vector<64x64xf32>
    %291 = vector.extract_strided_slice %242 {offsets = [1, 0], sizes = [1, 64], strides = [1, 1]} : vector<4x64xf32> to vector<1x64xf32>
    %292 = vector.extract_strided_slice %241 {offsets = [0, 1], sizes = [64, 1], strides = [1, 1]} : vector<64x4xf32> to vector<64x1xf32>
    %293 = vector.broadcast %291 : vector<1x64xf32> to vector<64x64xf32>
    %294 = vector.broadcast %292 : vector<64x1xf32> to vector<64x64xf32>
    %295 = arith.subf %293, %294 : vector<64x64xf32>
    %c2_75 = arith.constant 2 : index
    %c1_76 = arith.constant 1 : index
    %296 = memref.load %arg2[%c2_75, %c1_76] : memref<4x4xf32, #tpu.memory_space<smem>>
    %297 = vector.broadcast %296 : f32 to vector<64x64xf32>
    %298 = arith.addf %295, %297 : vector<64x64xf32>
    %299 = arith.subf %298, %277 : vector<64x64xf32>
    %300 = math.exp %299 : vector<64x64xf32>
    %301 = arith.addf %289, %300 : vector<64x64xf32>
    %302 = arith.mulf %300, %0 : vector<64x64xf32>
    %303 = vector.extract_strided_slice %242 {offsets = [2, 0], sizes = [1, 64], strides = [1, 1]} : vector<4x64xf32> to vector<1x64xf32>
    %304 = vector.extract_strided_slice %241 {offsets = [0, 2], sizes = [64, 1], strides = [1, 1]} : vector<64x4xf32> to vector<64x1xf32>
    %305 = vector.broadcast %303 : vector<1x64xf32> to vector<64x64xf32>
    %306 = vector.broadcast %304 : vector<64x1xf32> to vector<64x64xf32>
    %307 = arith.subf %305, %306 : vector<64x64xf32>
    %c2_77 = arith.constant 2 : index
    %c2_78 = arith.constant 2 : index
    %308 = memref.load %arg2[%c2_77, %c2_78] : memref<4x4xf32, #tpu.memory_space<smem>>
    %309 = vector.broadcast %308 : f32 to vector<64x64xf32>
    %310 = arith.addf %307, %309 : vector<64x64xf32>
    %311 = arith.subf %310, %277 : vector<64x64xf32>
    %312 = math.exp %311 : vector<64x64xf32>
    %313 = arith.addf %301, %312 : vector<64x64xf32>
    %314 = arith.mulf %312, %0 : vector<64x64xf32>
    %315 = vector.extract_strided_slice %242 {offsets = [3, 0], sizes = [1, 64], strides = [1, 1]} : vector<4x64xf32> to vector<1x64xf32>
    %316 = vector.extract_strided_slice %241 {offsets = [0, 3], sizes = [64, 1], strides = [1, 1]} : vector<64x4xf32> to vector<64x1xf32>
    %317 = vector.broadcast %315 : vector<1x64xf32> to vector<64x64xf32>
    %318 = vector.broadcast %316 : vector<64x1xf32> to vector<64x64xf32>
    %319 = arith.subf %317, %318 : vector<64x64xf32>
    %c2_79 = arith.constant 2 : index
    %c3_80 = arith.constant 3 : index
    %320 = memref.load %arg2[%c2_79, %c3_80] : memref<4x4xf32, #tpu.memory_space<smem>>
    %321 = vector.broadcast %320 : f32 to vector<64x64xf32>
    %322 = arith.addf %319, %321 : vector<64x64xf32>
    %323 = arith.subf %322, %277 : vector<64x64xf32>
    %324 = math.exp %323 : vector<64x64xf32>
    %325 = arith.addf %313, %324 : vector<64x64xf32>
    %326 = arith.mulf %324, %0 : vector<64x64xf32>
    %327 = tpu.reciprocal %325 {approx = true} : vector<64x64xf32> -> vector<64x64xf32>
    %328 = arith.mulf %290, %327 : vector<64x64xf32>
    %329 = arith.mulf %302, %327 : vector<64x64xf32>
    %330 = arith.mulf %314, %327 : vector<64x64xf32>
    %331 = arith.mulf %326, %327 : vector<64x64xf32>
    %332 = tpu.concatenate %328, %329, %330, %331 in 1 : vector<64x64xf32>, vector<64x64xf32>, vector<64x64xf32>, vector<64x64xf32> -> vector<64x256xf32>
    %333 = vector.extract_strided_slice %238 {offsets = [0, 0], sizes = [64, 32], strides = [1, 1]} : vector<64x128xf32> to vector<64x32xf32>
    %334 = vector.extract_strided_slice %238 {offsets = [0, 32], sizes = [64, 32], strides = [1, 1]} : vector<64x128xf32> to vector<64x32xf32>
    %335 = vector.extract_strided_slice %238 {offsets = [0, 64], sizes = [64, 32], strides = [1, 1]} : vector<64x128xf32> to vector<64x32xf32>
    %336 = vector.extract_strided_slice %238 {offsets = [0, 96], sizes = [64, 32], strides = [1, 1]} : vector<64x128xf32> to vector<64x32xf32>
    %337 = tpu.concatenate %333, %334, %335, %336 in 0 : vector<64x32xf32>, vector<64x32xf32>, vector<64x32xf32>, vector<64x32xf32> -> vector<256x32xf32>
    %338 = arith.truncf %332 : vector<64x256xf32> to vector<64x256xbf16>
    %339 = arith.truncf %337 : vector<256x32xf32> to vector<256x32xbf16>
    %cst_81 = arith.constant dense<0.000000e+00> : vector<64x32xf32>
    %340 = tpu.matmul %338, %339, %cst_81 {dimension_numbers = #tpu.dot_dimension_numbers<[1], [0], [0], [1], [0, 0, 1, 1], [], []>} : vector<64x256xbf16>, vector<256x32xbf16>, vector<64x32xf32> -> vector<64x32xf32>
    %c0_82 = arith.constant 0 : index
    %c0_83 = arith.constant 0 : index
    %341 = vector.load %arg12[%c0_82, %c0_83] : memref<1x32xf32, #tpu.memory_space<vmem>>, vector<1x32xf32>
    %342 = vector.broadcast %341 : vector<1x32xf32> to vector<64x32xf32>
    %343 = arith.addf %340, %342 : vector<64x32xf32>
    %cst_84 = arith.constant 0.000000e+00 : f32
    %344 = vector.broadcast %cst_84 : f32 to vector<64x32xf32>
    %345 = arith.maximumf %343, %344 : vector<64x32xf32>
    %c0_85 = arith.constant 0 : index
    %c0_86 = arith.constant 0 : index
    %346 = vector.load %arg14[%c0_85, %c0_86] : memref<32x128xf32, #tpu.memory_space<vmem>>, vector<32x128xf32>
    %c0_87 = arith.constant 0 : index
    %c0_88 = arith.constant 0 : index
    %347 = vector.load %arg16[%c0_87, %c0_88] : memref<32x4xf32, #tpu.memory_space<vmem>>, vector<32x4xf32>
    %348 = arith.truncf %345 : vector<64x32xf32> to vector<64x32xbf16>
    %349 = arith.truncf %346 : vector<32x128xf32> to vector<32x128xbf16>
    %cst_89 = arith.constant dense<0.000000e+00> : vector<64x128xf32>
    %350 = tpu.matmul %348, %349, %cst_89 {dimension_numbers = #tpu.dot_dimension_numbers<[1], [0], [0], [1], [0, 0, 1, 1], [], []>} : vector<64x32xbf16>, vector<32x128xbf16>, vector<64x128xf32> -> vector<64x128xf32>
    %351 = arith.truncf %345 : vector<64x32xf32> to vector<64x32xbf16>
    %352 = arith.truncf %347 : vector<32x4xf32> to vector<32x4xbf16>
    %cst_90 = arith.constant dense<0.000000e+00> : vector<64x4xf32>
    %353 = tpu.matmul %351, %352, %cst_90 {dimension_numbers = #tpu.dot_dimension_numbers<[1], [0], [0], [1], [0, 0, 1, 1], [], []>} : vector<64x32xbf16>, vector<32x4xbf16>, vector<64x4xf32> -> vector<64x4xf32>
    %354 = tpu.transpose %353, [1, 0] : vector<64x4xf32> -> vector<4x64xf32>
    %355 = vector.extract_strided_slice %354 {offsets = [0, 0], sizes = [1, 64], strides = [1, 1]} : vector<4x64xf32> to vector<1x64xf32>
    %356 = vector.extract_strided_slice %353 {offsets = [0, 0], sizes = [64, 1], strides = [1, 1]} : vector<64x4xf32> to vector<64x1xf32>
    %357 = vector.broadcast %355 : vector<1x64xf32> to vector<64x64xf32>
    %358 = vector.broadcast %356 : vector<64x1xf32> to vector<64x64xf32>
    %359 = arith.subf %357, %358 : vector<64x64xf32>
    %c3_91 = arith.constant 3 : index
    %c0_92 = arith.constant 0 : index
    %360 = memref.load %arg2[%c3_91, %c0_92] : memref<4x4xf32, #tpu.memory_space<smem>>
    %361 = vector.broadcast %360 : f32 to vector<64x64xf32>
    %362 = arith.addf %359, %361 : vector<64x64xf32>
    %363 = vector.extract_strided_slice %354 {offsets = [1, 0], sizes = [1, 64], strides = [1, 1]} : vector<4x64xf32> to vector<1x64xf32>
    %364 = vector.extract_strided_slice %353 {offsets = [0, 1], sizes = [64, 1], strides = [1, 1]} : vector<64x4xf32> to vector<64x1xf32>
    %365 = vector.broadcast %363 : vector<1x64xf32> to vector<64x64xf32>
    %366 = vector.broadcast %364 : vector<64x1xf32> to vector<64x64xf32>
    %367 = arith.subf %365, %366 : vector<64x64xf32>
    %c3_93 = arith.constant 3 : index
    %c1_94 = arith.constant 1 : index
    %368 = memref.load %arg2[%c3_93, %c1_94] : memref<4x4xf32, #tpu.memory_space<smem>>
    %369 = vector.broadcast %368 : f32 to vector<64x64xf32>
    %370 = arith.addf %367, %369 : vector<64x64xf32>
    %371 = arith.maximumf %362, %370 : vector<64x64xf32>
    %372 = vector.extract_strided_slice %354 {offsets = [2, 0], sizes = [1, 64], strides = [1, 1]} : vector<4x64xf32> to vector<1x64xf32>
    %373 = vector.extract_strided_slice %353 {offsets = [0, 2], sizes = [64, 1], strides = [1, 1]} : vector<64x4xf32> to vector<64x1xf32>
    %374 = vector.broadcast %372 : vector<1x64xf32> to vector<64x64xf32>
    %375 = vector.broadcast %373 : vector<64x1xf32> to vector<64x64xf32>
    %376 = arith.subf %374, %375 : vector<64x64xf32>
    %c3_95 = arith.constant 3 : index
    %c2_96 = arith.constant 2 : index
    %377 = memref.load %arg2[%c3_95, %c2_96] : memref<4x4xf32, #tpu.memory_space<smem>>
    %378 = vector.broadcast %377 : f32 to vector<64x64xf32>
    %379 = arith.addf %376, %378 : vector<64x64xf32>
    %380 = arith.maximumf %371, %379 : vector<64x64xf32>
    %381 = vector.extract_strided_slice %354 {offsets = [3, 0], sizes = [1, 64], strides = [1, 1]} : vector<4x64xf32> to vector<1x64xf32>
    %382 = vector.extract_strided_slice %353 {offsets = [0, 3], sizes = [64, 1], strides = [1, 1]} : vector<64x4xf32> to vector<64x1xf32>
    %383 = vector.broadcast %381 : vector<1x64xf32> to vector<64x64xf32>
    %384 = vector.broadcast %382 : vector<64x1xf32> to vector<64x64xf32>
    %385 = arith.subf %383, %384 : vector<64x64xf32>
    %c3_97 = arith.constant 3 : index
    %c3_98 = arith.constant 3 : index
    %386 = memref.load %arg2[%c3_97, %c3_98] : memref<4x4xf32, #tpu.memory_space<smem>>
    %387 = vector.broadcast %386 : f32 to vector<64x64xf32>
    %388 = arith.addf %385, %387 : vector<64x64xf32>
    %389 = arith.maximumf %380, %388 : vector<64x64xf32>
    %cst_99 = arith.constant 0.000000e+00 : f32
    %390 = vector.broadcast %cst_99 : f32 to vector<64x64xf32>
    %391 = vector.extract_strided_slice %354 {offsets = [0, 0], sizes = [1, 64], strides = [1, 1]} : vector<4x64xf32> to vector<1x64xf32>
    %392 = vector.extract_strided_slice %353 {offsets = [0, 0], sizes = [64, 1], strides = [1, 1]} : vector<64x4xf32> to vector<64x1xf32>
    %393 = vector.broadcast %391 : vector<1x64xf32> to vector<64x64xf32>
    %394 = vector.broadcast %392 : vector<64x1xf32> to vector<64x64xf32>
    %395 = arith.subf %393, %394 : vector<64x64xf32>
    %c3_100 = arith.constant 3 : index
    %c0_101 = arith.constant 0 : index
    %396 = memref.load %arg2[%c3_100, %c0_101] : memref<4x4xf32, #tpu.memory_space<smem>>
    %397 = vector.broadcast %396 : f32 to vector<64x64xf32>
    %398 = arith.addf %395, %397 : vector<64x64xf32>
    %399 = arith.subf %398, %389 : vector<64x64xf32>
    %400 = math.exp %399 : vector<64x64xf32>
    %401 = arith.addf %390, %400 : vector<64x64xf32>
    %402 = arith.mulf %400, %0 : vector<64x64xf32>
    %403 = vector.extract_strided_slice %354 {offsets = [1, 0], sizes = [1, 64], strides = [1, 1]} : vector<4x64xf32> to vector<1x64xf32>
    %404 = vector.extract_strided_slice %353 {offsets = [0, 1], sizes = [64, 1], strides = [1, 1]} : vector<64x4xf32> to vector<64x1xf32>
    %405 = vector.broadcast %403 : vector<1x64xf32> to vector<64x64xf32>
    %406 = vector.broadcast %404 : vector<64x1xf32> to vector<64x64xf32>
    %407 = arith.subf %405, %406 : vector<64x64xf32>
    %c3_102 = arith.constant 3 : index
    %c1_103 = arith.constant 1 : index
    %408 = memref.load %arg2[%c3_102, %c1_103] : memref<4x4xf32, #tpu.memory_space<smem>>
    %409 = vector.broadcast %408 : f32 to vector<64x64xf32>
    %410 = arith.addf %407, %409 : vector<64x64xf32>
    %411 = arith.subf %410, %389 : vector<64x64xf32>
    %412 = math.exp %411 : vector<64x64xf32>
    %413 = arith.addf %401, %412 : vector<64x64xf32>
    %414 = arith.mulf %412, %0 : vector<64x64xf32>
    %415 = vector.extract_strided_slice %354 {offsets = [2, 0], sizes = [1, 64], strides = [1, 1]} : vector<4x64xf32> to vector<1x64xf32>
    %416 = vector.extract_strided_slice %353 {offsets = [0, 2], sizes = [64, 1], strides = [1, 1]} : vector<64x4xf32> to vector<64x1xf32>
    %417 = vector.broadcast %415 : vector<1x64xf32> to vector<64x64xf32>
    %418 = vector.broadcast %416 : vector<64x1xf32> to vector<64x64xf32>
    %419 = arith.subf %417, %418 : vector<64x64xf32>
    %c3_104 = arith.constant 3 : index
    %c2_105 = arith.constant 2 : index
    %420 = memref.load %arg2[%c3_104, %c2_105] : memref<4x4xf32, #tpu.memory_space<smem>>
    %421 = vector.broadcast %420 : f32 to vector<64x64xf32>
    %422 = arith.addf %419, %421 : vector<64x64xf32>
    %423 = arith.subf %422, %389 : vector<64x64xf32>
    %424 = math.exp %423 : vector<64x64xf32>
    %425 = arith.addf %413, %424 : vector<64x64xf32>
    %426 = arith.mulf %424, %0 : vector<64x64xf32>
    %427 = vector.extract_strided_slice %354 {offsets = [3, 0], sizes = [1, 64], strides = [1, 1]} : vector<4x64xf32> to vector<1x64xf32>
    %428 = vector.extract_strided_slice %353 {offsets = [0, 3], sizes = [64, 1], strides = [1, 1]} : vector<64x4xf32> to vector<64x1xf32>
    %429 = vector.broadcast %427 : vector<1x64xf32> to vector<64x64xf32>
    %430 = vector.broadcast %428 : vector<64x1xf32> to vector<64x64xf32>
    %431 = arith.subf %429, %430 : vector<64x64xf32>
    %c3_106 = arith.constant 3 : index
    %c3_107 = arith.constant 3 : index
    %432 = memref.load %arg2[%c3_106, %c3_107] : memref<4x4xf32, #tpu.memory_space<smem>>
    %433 = vector.broadcast %432 : f32 to vector<64x64xf32>
    %434 = arith.addf %431, %433 : vector<64x64xf32>
    %435 = arith.subf %434, %389 : vector<64x64xf32>
    %436 = math.exp %435 : vector<64x64xf32>
    %437 = arith.addf %425, %436 : vector<64x64xf32>
    %438 = arith.mulf %436, %0 : vector<64x64xf32>
    %439 = tpu.reciprocal %437 {approx = true} : vector<64x64xf32> -> vector<64x64xf32>
    %440 = arith.mulf %402, %439 : vector<64x64xf32>
    %441 = arith.mulf %414, %439 : vector<64x64xf32>
    %442 = arith.mulf %426, %439 : vector<64x64xf32>
    %443 = arith.mulf %438, %439 : vector<64x64xf32>
    %444 = tpu.concatenate %440, %441, %442, %443 in 1 : vector<64x64xf32>, vector<64x64xf32>, vector<64x64xf32>, vector<64x64xf32> -> vector<64x256xf32>
    %445 = vector.extract_strided_slice %350 {offsets = [0, 0], sizes = [64, 32], strides = [1, 1]} : vector<64x128xf32> to vector<64x32xf32>
    %446 = vector.extract_strided_slice %350 {offsets = [0, 32], sizes = [64, 32], strides = [1, 1]} : vector<64x128xf32> to vector<64x32xf32>
    %447 = vector.extract_strided_slice %350 {offsets = [0, 64], sizes = [64, 32], strides = [1, 1]} : vector<64x128xf32> to vector<64x32xf32>
    %448 = vector.extract_strided_slice %350 {offsets = [0, 96], sizes = [64, 32], strides = [1, 1]} : vector<64x128xf32> to vector<64x32xf32>
    %449 = tpu.concatenate %445, %446, %447, %448 in 0 : vector<64x32xf32>, vector<64x32xf32>, vector<64x32xf32>, vector<64x32xf32> -> vector<256x32xf32>
    %450 = arith.truncf %444 : vector<64x256xf32> to vector<64x256xbf16>
    %451 = arith.truncf %449 : vector<256x32xf32> to vector<256x32xbf16>
    %cst_108 = arith.constant dense<0.000000e+00> : vector<64x32xf32>
    %452 = tpu.matmul %450, %451, %cst_108 {dimension_numbers = #tpu.dot_dimension_numbers<[1], [0], [0], [1], [0, 0, 1, 1], [], []>} : vector<64x256xbf16>, vector<256x32xbf16>, vector<64x32xf32> -> vector<64x32xf32>
    %c0_109 = arith.constant 0 : index
    %c0_110 = arith.constant 0 : index
    %453 = vector.load %arg15[%c0_109, %c0_110] : memref<1x32xf32, #tpu.memory_space<vmem>>, vector<1x32xf32>
    %454 = vector.broadcast %453 : vector<1x32xf32> to vector<64x32xf32>
    %455 = arith.addf %452, %454 : vector<64x32xf32>
    %456 = arith.addf %455, %233 : vector<64x32xf32>
    %cst_111 = arith.constant 0.000000e+00 : f32
    %457 = vector.broadcast %cst_111 : f32 to vector<64x32xf32>
    %458 = arith.maximumf %456, %457 : vector<64x32xf32>
    %c0_112 = arith.constant 0 : index
    %c0_113 = arith.constant 0 : index
    %459 = vector.load %arg17[%c0_112, %c0_113] : memref<64x32xf32, #tpu.memory_space<vmem>>, vector<64x32xf32>
    tpu.vector_store %arg17[%c0_112, %c0_113], %458 {strides = array<i32>} : memref<64x32xf32, #tpu.memory_space<vmem>>, vector<64x32xf32>,
    return
  }
}

</mosaic_0001>

<bundles_post_ra>
// kernel: feast_encoder_forward.1
= control target key start
LH: loop header
LB: loop body
LE: loop exit
PB: predicated region body
PF: predicated region fallthrough
CT: control target
= control target key end

     0   :  { %s7617_s0 = inlined_call_operand.vmem [shape: f32[64,16], index: 0, kind: input, shape index: {}]   ;;  %s7618_s1 = inlined_call_operand.vmem [shape: f32[64,64], index: 1, kind: input, shape index: {}]   ;;  %s7619_s2 = inlined_call_operand.vmem [shape: f32[4,4], index: 2, kind: input, shape index: {}]   ;;  %s7620_s3 = inlined_call_operand.vmem [shape: f32[16,128], index: 3, kind: input, shape index: {}]   ;;  %s7621_s4 = inlined_call_operand.vmem [shape: f32[1,32], index: 4, kind: input, shape index: {}]   ;;  %s7622_s5 = inlined_call_operand.vmem [shape: f32[16,4], index: 5, kind: input, shape index: {}]   ;;  %s7623_s6 = inlined_call_operand.vmem [shape: f32[32,128], index: 6, kind: input, shape index: {}]   ;;  %s7624_s7 = inlined_call_operand.vmem [shape: f32[1,32], index: 7, kind: input, shape index: {}]   ;;  %s7625_s8 = inlined_call_operand.vmem [shape: f32[32,4], index: 8, kind: input, shape index: {}]   ;;  %s7626_s9 = inlined_call_operand.vmem [shape: f32[16,32], index: 9, kind: input, shape index: {}]   ;;  %s7627_s10 = inlined_call_operand.vmem [shape: f32[1,32], index: 10, kind: input, shape index: {}]   ;;  %s7628_s11 = inlined_call_operand.vmem [shape: f32[32,128], index: 11, kind: input, shape index: {}]   ;;  %s7629_s12 = inlined_call_operand.vmem [shape: f32[1,32], index: 12, kind: input, shape index: {}]   ;;  %s7630_s13 = inlined_call_operand.vmem [shape: f32[32,4], index: 13, kind: input, shape index: {}]   ;;  %s7631_s14 = inlined_call_operand.vmem [shape: f32[32,128], index: 14, kind: input, shape index: {}]   ;;  %s7632_s15 = inlined_call_operand.vmem [shape: f32[1,32], index: 15, kind: input, shape index: {}]   ;;  %s7633_s16 = inlined_call_operand.vmem [shape: f32[32,4], index: 16, kind: input, shape index: {}]   ;;  %s7634_s17 = inlined_call_operand.vmem [shape: f32[64,32], index: 17, kind: output, shape index: {}]  }
   0x1   :  { %7675 = sst [smem:[#allocation17_spill]] %s7617_s0 }
   0x2   :  { %7676 = sst [smem:[#allocation18_spill]] %s7618_s1 }
   0x3   :  { %22 = vsyncpa [#allocation3], 0  ;;  %s33_s26 = sshll.u32 %s7619_s2, 4  ;;  %s34_s26 = int_to_ptr.vmem [resolvable:$true] %s33_s26 }
   0x4   :  { %s5041_s27 = scalar_lea.vmem %s34_s26, 64  ;;  %p5046_p1 = scmp.lt.s32.totalorder %s34_s26, %s34_s26 }
   0x5   :  { %p5042_p0 = scmp.ne.s32.totalorder %s34_s26, %s5041_s27  ;;  %p5047_p2 = scmp.lt.s32.totalorder %s5041_s27, %s5041_s27 }
   0x7   :  { %p5048_p3 = por %p5047_p2, %p5046_p1 }
   0x9   :  { %p5049_p4 = pnand %p5048_p3, %p5042_p0 }
   0xb   :  { %5052 = shalt.err (!%p5049_p4)
}
   0xc   :  { %s5055_s28 = smov [#allocation2]  }
   0xd   :  { %36 = dma.vmem_to_smem %s34_s26, 64, %s5055_s28, [#allocation3]  }
   0xe   :  { %5053 = dma.done.wait [#allocation3], 64  }
   0xf   :  { %5054 = vsyncadd [#allocation3], 4294967232 }
  0x10   :  { %68 = sfence }
  0x11   :  { %v86_v0 = vld [vmem:[%s7626_s9] sm:$0xff]  ;;  %v87_v1 = vld [vmem:[%s7626_s9 + $0x8] sm:$0xff]  ;;  %s7677_s1 = sld [smem:[#allocation17_spill]]  ;;  %vm100_vm0 = vcmask 130048   ;;  %v7637_v21 = vmov 1   ;;  %v7639_v22 = vmov 0  }
  0x12   :  { %v92_v3 = vpack.c.bf16 %v87_v1, %v86_v0  ;;  %v180_v8 = vld [vmem:[%s7622_s5] sm:$0xff]  ;;  %v181_v9 = vld [vmem:[%s7622_s5 + $0x8] sm:$0xff]  ;;  %4190 = vset.pattern.permute.xlu0 %v7637_v21  ;;  %4189 = vset.pattern.permute.xlu1 %v7639_v22  ;;  %v7643_v42 = vmov 2   ;;  %v7641_v49 = vmov 3   ;;  %s5062_s25 = smov 96   ;;  %s398_s9 = sld [smem:[#allocation2]] }
  0x13   :  { %v248_v12 = vpack.c.bf16 %v181_v9, %v180_v8  ;;  %v178_v15 = vld [vmem:[%s7620_s3] sm:$0xff]  ;;  %v179_v16 = vld [vmem:[%s7620_s3 + $0x8] sm:$0xff]  ;;  %s5060_s3 = smov 64   ;;  %s3808_s26 = sld [smem:[#allocation2 + $0x1]]  ;;  %vm858_vm1 = vcmask 523264   ;;  %vm1073_vm2 = vcmask 261120  }
  0x14   :  { %4062 = vmatprep.subr.bf16.mxu0 %v92_v3  ;;  %v182_v17 = vpack.c.bf16 %v179_v16, %v178_v15  ;;  %s3809_s27 = sld [smem:[#allocation2 + $0x2]]  ;;  %s3810_s28 = sld [smem:[#allocation2 + $0x3]] }
  0x15   :  { %4063 = vmatpush3.bf16.msra.mxu0 %v92_v3  ;;  %s7690_s30 = sld [smem:[#allocation18_spill]]  ;;  %s3821_s18 = sld [smem:[#allocation2 + $0x81]] }
  0x16   :  { %4082 = vmatprep.subr.bf16.mxu0 %v248_v12  ;;  %4072 = vmatprep.subr.bf16.mxu1 %v182_v17  ;;  %s3822_s2 = sld [smem:[#allocation2 + $0x82]]  ;;  %s3823_s19 = sld [smem:[#allocation2 + $0x83]] }
  0x17   :  { %v78_v2 = vld [vmem:[%s7677_s1] sm:$0xff]  ;;  %v79_v4 = vld [vmem:[%s7677_s1 + $0x8] sm:$0xff]  ;;  %v80_v5 = vld [vmem:[%s7677_s1 + $0x10] sm:$0xff]  ;;  %4073 = vmatpush3.bf16.msra.mxu1 %v182_v17 }
  0x18   :  { %v81_v6 = vld [vmem:[%s7677_s1 + $0x18] sm:$0xff]  ;;  %v88_v7 = vpack.c.bf16 %v79_v4, %v78_v2  ;;  %v82_v10 = vld [vmem:[%s7677_s1 + $0x20] sm:$0xff]  ;;  %v83_v13 = vld [vmem:[%s7677_s1 + $0x28] sm:$0xff] }
  0x19   :  { %v89_v11 = vpack.c.bf16 %v81_v6, %v80_v5  ;;  %v90_v14 = vpack.c.bf16 %v83_v13, %v82_v10  ;;  %v84_v18 = vld [vmem:[%s7677_s1 + $0x30] sm:$0xff]  ;;  %v85_v19 = vld [vmem:[%s7677_s1 + $0x38] sm:$0xff]  ;;  %s5061_s1 = smov 32  }
  0x1a   :  { %4064 = vmatprep.mubr.msk.bf16.mxu0 %vm100_vm0, %v88_v7  ;;  %4074 = vmatprep.mubr.msk.bf16.mxu1 %vm100_vm0, %v88_v7  ;;  %v91_v20 = vpack.c.bf16 %v85_v19, %v84_v18 }
  0x1b   :  { %4065 = vmatmul.mubr.msk.bf16.vlgmr.msra.gmra.mrb[0].mxu0 %vm100_vm0, %v89_v11  ;;  %4075 = vmatmul.mubr.msk.bf16.vlgmr.msra.gmra.mrb[0].mxu1 %vm100_vm0, %v89_v11 }
  0x1c   :  { %4083 = vmatpush3.bf16.msra.mxu0 %v248_v12  ;;  %4068 = vmatprep.mubr.msk.bf16.mxu0 %vm100_vm0, %v90_v14 }
  0x1d   :  { %4078 = vmatprep.mubr.msk.bf16.mxu1 %vm100_vm0, %v90_v14 }
  0x23   :  { %4069 = vmatmul.mubr.msk.bf16.gmra.mrb[4].mxu0 %vm100_vm0, %v91_v20  ;;  %4079 = vmatmul.mubr.msk.bf16.gmra.mrb[4].mxu1 %vm100_vm0, %v91_v20 }
  0x24   :  { %4084 = vmatprep.mubr.msk.bf16.mxu0 %vm100_vm0, %v88_v7 }
  0x2b   :  { %4085 = vmatmul.mubr.msk.bf16.vlgmr.msra.gmra.mrb[8].mxu0 %vm100_vm0, %v89_v11 }
  0x2c   :  { %4088 = vmatprep.mubr.msk.bf16.mxu0 %vm100_vm0, %v90_v14 }
  0x33   :  { %4089 = vmatmul.mubr.msk.bf16.gmra.mrb[12].mxu0 %vm100_vm0, %v91_v20 }
  0xee   :  { %v5212_v23 = vpop.f32.mrb[0].mxu0  ;;  %v5220_v27 = vpop.f32.mrb[0].mxu1 }
  0xef   :  { %7678 = vst [vmem:[#allocation5_spill] sm:$0xff] %v5212_v23  ;;  %v5214_v24 = vpop.f32.mrb[1].mxu0  ;;  %v5222_v28 = vpop.f32.mrb[1].mxu1 }
  0xf0   :  { %7679 = vst [vmem:[#allocation6_spill] sm:$0xff] %v5214_v24  ;;  %v5216_v25 = vpop.f32.mrb[2].mxu0  ;;  %v5234_v34 = vpop.f32.mrb[2].mxu1 }
  0xf1   :  { %7680 = vst [vmem:[#allocation7_spill] sm:$0xff] %v5216_v25  ;;  %v5218_v26 = vpop.f32.mrb[3].mxu0  ;;  %v964_v36 = vpack.c.bf16 %v5234_v34, %v5220_v27  ;;  %v5242_v37 = vpop.f32.mrb[3].mxu1  ;;  %v5262_v44 = vpack.i.bf16 %v5234_v34, %v5220_v27 }
  0xf2   :  { %7681 = vst [vmem:[#allocation8_spill] sm:$0xff] %v5218_v26  ;;  %v963_v39 = vpack.c.bf16 %v5242_v37, %v5222_v28  ;;  %v5252_v41 = vpack.i.bf16 %v5242_v37, %v5222_v28 }
  0xf6   :  { %v5224_v29 = vpop.f32.mrb[4].mxu0  ;;  %v5258_v43 = vpop.f32.mrb[4].mxu1 }
  0xf7   :  { %7682 = vst [vmem:[#allocation9_spill] sm:$0xff] %v5224_v29  ;;  %v5226_v30 = vpop.f32.mrb[5].mxu0  ;;  %v5266_v46 = vpop.f32.mrb[5].mxu1 }
  0xf8   :  { %7683 = vst [vmem:[#allocation10_spill] sm:$0xff] %v5226_v30  ;;  %v5228_v31 = vpop.f32.mrb[6].mxu0  ;;  %v5270_v48 = vpop.f32.mrb[6].mxu1 }
  0xf9   :  { %7684 = vst [vmem:[#allocation11_spill] sm:$0xff] %v5228_v31  ;;  %v5230_v32 = vpop.f32.mrb[7].mxu0  ;;  %v966_v51 = vpack.c.bf16 %v5270_v48, %v5258_v43  ;;  %v5278_v52 = vpop.f32.mrb[7].mxu1  ;;  %v5294_v56 = vpack.i.bf16 %v5270_v48, %v5258_v43 }
  0xfa   :  { %7685 = vst [vmem:[#allocation12_spill] sm:$0xff] %v5230_v32  ;;  %v965_v54 = vpack.c.bf16 %v5278_v52, %v5266_v46  ;;  %v5288_v55 = vpack.i.bf16 %v5278_v52, %v5266_v46 }
  0xfe   :  { %v5232_v33 = vpop.f32.mrb[8].mxu0 }
  0xff   :  { %421 = vperm.xlu0 %4190, %v5232_v33   ;;  %362 = vperm.xlu1 %4189, %v5232_v33   ;;  %v5238_v35 = vpop.f32.mrb[9].mxu0 }
 0x100   :  { %v5244_v38 = vpop.f32.mrb[10].mxu0 }
 0x101   :  { %v5248_v40 = vpop.f32.mrb[11].mxu0 }
 0x103   :  { %4193 = vset.pattern.permute.xlu0 %v7639_v22  ;;  %4191 = vset.pattern.permute.xlu1 %v7643_v42 }
 0x104   :  { %483 = vperm.xlu1 %4191, %v5232_v33   ;;  %352 = vperm.xlu0 %4193, %v5238_v35  }
 0x106   :  { %v5264_v45 = vpop.f32.mrb[12].mxu0 }
 0x107   :  { %v5268_v47 = vpop.f32.mrb[13].mxu0 }
 0x108   :  { %4192 = vset.pattern.permute.xlu1 %v7641_v49  ;;  %4195 = vset.pattern.permute.xlu0 %v7643_v42  ;;  %v5274_v50 = vpop.f32.mrb[14].mxu0 }
 0x109   :  { %545 = vperm.xlu1 %4192, %v5232_v33   ;;  %475 = vperm.xlu0 %4195, %v5238_v35   ;;  %v5282_v53 = vpop.f32.mrb[15].mxu0 }
 0x10d   :  { %4194 = vset.pattern.permute.xlu1 %v7637_v21  ;;  %487 = vperm.xlu0 %4195, %v5244_v38  }
 0x10e   :  { %413 = vperm.xlu1 %4194, %v5238_v35  }
 0x111   :  { %4200 = vset.pattern.permute.xlu0 %v7639_v22 }
 0x112   :  { %4196 = vset.pattern.permute.xlu1 %v7641_v49  ;;  %357 = vperm.xlu0 %4200, %v5248_v40  }
 0x113   :  { %537 = vperm.xlu1 %4196, %v5238_v35  }
 0x116   :  { %4203 = vset.pattern.permute.xlu0 %v7641_v49 }
 0x117   :  { %4197 = vset.pattern.permute.xlu1 %v7639_v22  ;;  %541 = vperm.xlu0 %4203, %v5248_v40  }
 0x118   :  { %367 = vperm.xlu1 %4197, %v5244_v38  }
 0x11b   :  { %4206 = vset.pattern.permute.xlu0 %v7643_v42 }
 0x11c   :  { %4198 = vset.pattern.permute.xlu1 %v7637_v21  ;;  %499 = vperm.xlu0 %4206, %v5264_v45  }
 0x11d   :  { %425 = vperm.xlu1 %4198, %v5244_v38  }
 0x120   :  { %4207 = vset.pattern.permute.xlu0 %v7639_v22 }
 0x121   :  { %4199 = vset.pattern.permute.xlu1 %v7641_v49  ;;  %372 = vperm.xlu0 %4207, %v5268_v47  }
 0x122   :  { %549 = vperm.xlu1 %4199, %v5244_v38  }
 0x125   :  { %4209 = vset.pattern.permute.xlu0 %v7641_v49 }
 0x126   :  { %4201 = vset.pattern.permute.xlu1 %v7637_v21  ;;  %553 = vperm.xlu0 %4209, %v5268_v47  }
 0x127   :  { %417 = vperm.xlu1 %4201, %v5248_v40  }
 0x12a   :  { %4210 = vset.pattern.permute.xlu0 %v7639_v22 }
 0x12b   :  { %4202 = vset.pattern.permute.xlu1 %v7643_v42  ;;  %387 = vperm.xlu0 %4210, %v5274_v50  }
 0x12c   :  { %479 = vperm.xlu1 %4202, %v5248_v40  }
 0x12f   :  { %4214 = vset.pattern.permute.xlu0 %v7637_v21 }
 0x130   :  { %4204 = vset.pattern.permute.xlu1 %v7639_v22  ;;  %433 = vperm.xlu0 %4214, %v5282_v53  }
 0x131   :  { %382 = vperm.xlu1 %4204, %v5264_v45  }
 0x134   :  { %4217 = vset.pattern.permute.xlu0 %v7641_v49 }
 0x135   :  { %4205 = vset.pattern.permute.xlu1 %v7637_v21  ;;  %561 = vperm.xlu0 %4217, %v5264_v45  }
 0x136   :  { %437 = vperm.xlu1 %4205, %v5264_v45  }
 0x139   :  { %565 = vperm.xlu0 %4217, %v5274_v50  }
 0x13a   :  { %429 = vperm.xlu1 %4205, %v5268_v47  }
 0x13d   :  { %4219 = vrot.lane.b32.xlu0 %v5252_v41, %s5060_s3 }
 0x13e   :  { %4208 = vset.pattern.permute.xlu1 %v7643_v42  ;;  %4318 = vset.pattern.permute.xlu0 %v7639_v22 }
 0x13f   :  { %491 = vperm.xlu1 %4208, %v5268_v47  }
 0x141   :  { %4224 = vrot.lane.b32.xlu0 %v5262_v44, %s5060_s3 }
 0x143   :  { %4211 = vset.pattern.permute.xlu1 %v7637_v21 }
 0x144   :  { %441 = vperm.xlu1 %4211, %v5274_v50  }
 0x145   :  { %4229 = vrot.lane.b32.xlu0 %v5288_v55, %s5060_s3 }
 0x148   :  { %4212 = vset.pattern.permute.xlu1 %v7643_v42 }
 0x149   :  { %503 = vperm.xlu1 %4212, %v5274_v50   ;;  %4234 = vrot.lane.b32.xlu0 %v5294_v56, %s5060_s3 }
 0x14d   :  { %4213 = vset.pattern.permute.xlu1 %v7639_v22  ;;  %4239 = vrot.lane.b32.xlu0 %v5252_v41, %s5061_s1 }
 0x14e   :  { %377 = vperm.xlu1 %4213, %v5282_v53  }
 0x151   :  { %4244 = vrot.lane.b32.xlu0 %v5252_v41, %s5062_s25 }
 0x152   :  { %4215 = vset.pattern.permute.xlu1 %v7643_v42 }
 0x153   :  { %495 = vperm.xlu1 %4215, %v5282_v53  }
 0x155   :  { %4249 = vrot.lane.b32.xlu0 %v5262_v44, %s5061_s1 }
 0x157   :  { %4216 = vset.pattern.permute.xlu1 %v7641_v49 }
 0x158   :  { %557 = vperm.xlu1 %4216, %v5282_v53  }
 0x159   :  { %4254 = vrot.lane.b32.xlu0 %v5262_v44, %s5062_s25 }
 0x15d   :  { %4259 = vrot.lane.b32.xlu0 %v5288_v55, %s5061_s1 }
 0x161   :  { %4264 = vrot.lane.b32.xlu0 %v5288_v55, %s5062_s25 }
 0x165   :  { %4269 = vrot.lane.b32.xlu0 %v5294_v56, %s5061_s1 }
 0x169   :  { %4274 = vrot.lane.b32.xlu0 %v5294_v56, %s5062_s25 }
 0x17e   :  { %v5364_v57 = vpop.permute.xlu0 %421  ;;  %v5380_v61 = vpop.permute.xlu1 %362 }
 0x181   :  { %314 = vxpose.xlu1.b32.start [1/8] (short) (narrow) %v5238_v35, 8 }
 0x183   :  { %v5367_v58 = vpop.permute.xlu0 %352  ;;  %v5386_v63 = vpop.permute.xlu1 %483 }
 0x185   :  { %315 = vxpose.xlu1.b32.cont [2/8] (short) (narrow) %v5248_v40, 8 }
 0x188   :  { %v5374_v59 = vpop.permute.xlu0 %475  ;;  %v5393_v2 = vpop.permute.xlu1 %545 }
 0x189   :  { %316 = vxpose.xlu1.b32.cont [3/8] (short) (narrow) %v5232_v33, 8 }
 0x18c   :  { %v5377_v60 = vpop.permute.xlu0 %487 }
 0x18d   :  { %317 = vxpose.xlu1.b32.cont [4/8] (short) (narrow) %v5244_v38, 8  ;;  %v5398_v4 = vpop.permute.xlu1 %413 }
 0x191   :  { %v5382_v62 = vpop.permute.xlu0 %357  ;;  %318 = vxpose.xlu1.b32.cont [5/8] (short) (narrow) %v5268_v47, 8 }
 0x192   :  { %v5402_v6 = vpop.permute.xlu1 %537 }
 0x195   :  { %319 = vxpose.xlu1.b32.cont [6/8] (short) (narrow) %v5282_v53, 8 }
 0x196   :  { %v5388_v0 = vpop.permute.xlu0 %541 }
 0x197   :  { %v5406_v8 = vpop.permute.xlu1 %367 }
 0x199   :  { %320 = vxpose.xlu1.b32.cont [7/8] (short) (narrow) %v5264_v45, 8 }
 0x19b   :  { %v5391_v1 = vpop.permute.xlu0 %499 }
 0x19c   :  { %v5412_v11 = vpop.permute.xlu1 %425 }
 0x19d   :  { %321 = vxpose.xlu1.b32.end [8/8] (short) (narrow) %v5274_v50, 8 }
 0x1a0   :  { %v5396_v3 = vpop.permute.xlu0 %372 }
 0x1a1   :  { %v5416_v13 = vpop.permute.xlu1 %549 }
 0x1a5   :  { %v5400_v5 = vpop.permute.xlu0 %553 }
 0x1a6   :  { %v5419_v19 = vpop.permute.xlu1 %417 }
 0x1aa   :  { %v5404_v7 = vpop.permute.xlu0 %387 }
 0x1ab   :  { %v5427_v44 = vpop.permute.xlu1 %479 }
 0x1af   :  { %v5408_v9 = vpop.permute.xlu0 %433 }
 0x1b0   :  { %v5432_v37 = vpop.permute.xlu1 %382 }
 0x1b4   :  { %v5410_v10 = vpop.permute.xlu0 %561 }
 0x1b5   :  { %v5437_v27 = vpop.permute.xlu1 %437 }
 0x1b8   :  { %v5414_v12 = vpop.permute.xlu0 %565 }
 0x1b9   :  { %v5439_v34 = vpop.permute.xlu1 %429 }
 0x1bb   :  { %4319 = vset.pattern.permute.xlu1 %v7637_v21 }
 0x1bc   :  { %v4220_v14 = vpop.permute.xlu0 %4219 }
 0x1bd   :  { %v4222_v15 = vunpack.i.h.bf16 %v4220_v14  ;;  %v4221_v16 = vunpack.i.l.bf16 %v4220_v14 }
 0x1bf   :  { %v971_v17 = vpack.c.bf16 %v4222_v15, %v4221_v16 }
 0x1c0   :  { %v4225_v18 = vpop.permute.xlu0 %4224 }
 0x1c1   :  { %v4227_v20 = vunpack.i.h.bf16 %v4225_v18  ;;  %v4226_v33 = vunpack.i.l.bf16 %v4225_v18  ;;  %3866 = vmatprep.subr.bf16.mxu1 %v971_v17 }
 0x1c2   :  { %3867 = vmatpush3.bf16.msra.mxu1 %v963_v39 }
 0x1c3   :  { %v972_v35 = vpack.c.bf16 %v4227_v20, %v4226_v33 }
 0x1c4   :  { %v4230_v38 = vpop.permute.xlu0 %4229 }
 0x1c5   :  { %v4232_v40 = vunpack.i.h.bf16 %v4230_v38  ;;  %v4231_v41 = vunpack.i.l.bf16 %v4230_v38  ;;  %3868 = vmatprep.subr.bf16.mxu1 %v972_v35 }
 0x1c6   :  { %3869 = vmatpush3.bf16.msra.mxu1 %v964_v36  ;;  %v5441_v36 = vpop.permute.xlu1 %491 }
 0x1c7   :  { %v973_v45 = vpack.c.bf16 %v4232_v40, %v4231_v41 }
 0x1c8   :  { %v4235_v47 = vpop.permute.xlu0 %4234 }
 0x1c9   :  { %v4237_v50 = vunpack.i.h.bf16 %v4235_v47  ;;  %v4236_v53 = vunpack.i.l.bf16 %v4235_v47  ;;  %3870 = vmatprep.subr.bf16.mxu1 %v973_v45 }
 0x1ca   :  { %3871 = vmatpush3.bf16.msra.mxu1 %v965_v54  ;;  %v5443_v55 = vpop.permute.xlu1 %441 }
 0x1cb   :  { %v974_v28 = vpack.c.bf16 %v4237_v50, %v4236_v53  ;;  %v346_v50 = vlaneseq }
 0x1cc   :  { %v4240_v39 = vpop.permute.xlu0 %4239 }
 0x1cd   :  { %3872 = vmatprep.subr.bf16.mxu1 %v974_v28  ;;  %v4242_v56 = vunpack.i.h.bf16 %v4240_v39  ;;  %v4241_v46 = vunpack.i.l.bf16 %v4240_v39 }
 0x1ce   :  { %3873 = vmatpush3.bf16.msra.mxu1 %v966_v51  ;;  %v5445_v16 = vpop.permute.xlu1 %503 }
 0x1cf   :  { %v975_v52 = vpack.c.bf16 %v4242_v56, %v4241_v46 }
 0x1d0   :  { %v4245_v54 = vpop.permute.xlu0 %4244 }
 0x1d1   :  { %v4247_v14 = vunpack.i.h.bf16 %v4245_v54  ;;  %v4246_v15 = vunpack.i.l.bf16 %v4245_v54  ;;  %3874 = vmatprep.subr.bf16.mxu1 %v975_v52  ;;  %v347_v52 = vshrl.u32 %v346_v50, 7 }
 0x1d2   :  { %v5447_v33 = vpop.permute.xlu1 %377 }
 0x1d3   :  { %v967_v43 = vpack.c.bf16 %v4247_v14, %v4246_v15 }
 0x1d4   :  { %v4250_v48 = vpop.permute.xlu0 %4249 }
 0x1d5   :  { %v4252_v51 = vunpack.i.h.bf16 %v4250_v48  ;;  %v4251_v17 = vunpack.i.l.bf16 %v4250_v48  ;;  %3875 = vmatpush3.bf16.msra.mxu1 %v967_v43 }
 0x1d6   :  { %v5449_v53 = vpop.permute.xlu1 %495 }
 0x1d7   :  { %v976_v18 = vpack.c.bf16 %v4252_v51, %v4251_v17  ;;  %v5453_v51 = vsub.s32 0, %v347_v52  ;;  %v5455_v17 = vsub.s32 1, %v347_v52 }
 0x1d8   :  { %v4255_v20 = vpop.permute.xlu0 %4254 }
 0x1d9   :  { %v4257_v35 = vunpack.i.h.bf16 %v4255_v20  ;;  %v4256_v38 = vunpack.i.l.bf16 %v4255_v20  ;;  %3876 = vmatprep.subr.bf16.mxu1 %v976_v18  ;;  %7686 = vst [vmem:[#allocation13_spill] sm:$0xff] %v5453_v51  ;;  %7687 = vst [vmem:[#allocation14_spill] sm:$0xff] %v5455_v17  ;;  %v5457_v18 = vsub.s32 2, %v347_v52  ;;  %v5459_v20 = vsub.s32 3, %v347_v52 }
 0x1da   :  { %v5451_v15 = vpop.permute.xlu1 %557  ;;  %v5477_v52 = vstv %s3809_s27 }
 0x1db   :  { %v968_v40 = vpack.c.bf16 %v4257_v35, %v4256_v38  ;;  %7688 = vst [vmem:[#allocation15_spill] sm:$0xff] %v5457_v18  ;;  %7689 = vst [vmem:[#allocation16_spill] sm:$0xff] %v5459_v20 }
 0x1dc   :  { %v4260_v41 = vpop.permute.xlu0 %4259 }
 0x1dd   :  { %v4262_v45 = vunpack.i.h.bf16 %v4260_v41  ;;  %v4261_v47 = vunpack.i.l.bf16 %v4260_v41  ;;  %3877 = vmatpush3.bf16.msra.mxu1 %v968_v40  ;;  %v5461_v41 = vstv %s398_s9 }
 0x1df   :  { %v977_v28 = vpack.c.bf16 %v4262_v45, %v4261_v47 }
 0x1e0   :  { %v4265_v39 = vpop.permute.xlu0 %4264 }
 0x1e1   :  { %v4267_v56 = vunpack.i.h.bf16 %v4265_v39  ;;  %v4266_v46 = vunpack.i.l.bf16 %v4265_v39  ;;  %3878 = vmatprep.subr.bf16.mxu1 %v977_v28 }
 0x1e3   :  { %v969_v54 = vpack.c.bf16 %v4267_v56, %v4266_v46  ;;  %v5475_v46 = vstv %s3808_s26 }
 0x1e4   :  { %v4270_v14 = vpop.permute.xlu0 %4269 }
 0x1e5   :  { %v4272_v43 = vunpack.i.h.bf16 %v4270_v14  ;;  %v4271_v48 = vunpack.i.l.bf16 %v4270_v14  ;;  %3879 = vmatpush3.bf16.msra.mxu1 %v969_v54  ;;  %v5479_v54 = vstv %s3810_s28 }
 0x1e7   :  { %v978_v35 = vpack.c.bf16 %v4272_v43, %v4271_v48 }
 0x1e8   :  { %v4275_v38 = vpop.permute.xlu0 %4274 }
 0x1e9   :  { %v4277_v45 = vunpack.i.h.bf16 %v4275_v38  ;;  %v4276_v47 = vunpack.i.l.bf16 %v4275_v38  ;;  %3880 = vmatprep.subr.bf16.mxu1 %v978_v35 }
 0x1eb   :  { %v970_v14 = vpack.c.bf16 %v4277_v45, %v4276_v47 }
 0x1ed   :  { %3881 = vmatpush3.bf16.msra.mxu1 %v970_v14 }
 0x201   :  { %v330_v40 = vpop.trf.xlu1 }
 0x202   :  { %v5464_v50 = vrot.slane %v330_v40, %v5453_v51  ;;  %v5467_v28 = vrot.slane %v330_v40, %v5455_v17  ;;  %v5470_v39 = vrot.slane %v330_v40, %v5457_v18  ;;  %v5473_v56 = vrot.slane %v330_v40, %v5459_v20 }
 0x204   :  { %v392_v43 = vsub.f32 %v5464_v50, %v5380_v61  ;;  %v393_v48 = vsub.f32 %v5464_v50, %v5406_v8  ;;  %v446_v35 = vsub.f32 %v5467_v28, %v5364_v57  ;;  %v447_v38 = vsub.f32 %v5467_v28, %v5412_v11 }
 0x205   :  { %v508_v40 = vsub.f32 %v5470_v39, %v5386_v63  ;;  %v509_v21 = vsub.f32 %v5470_v39, %v5377_v60  ;;  %v570_v45 = vsub.f32 %v5473_v56, %v5393_v2  ;;  %v571_v61 = vsub.f32 %v5473_v56, %v5416_v13 }
 0x206   :  { %v402_v8 = vadd.f32 %v5461_v41, %v392_v43  ;;  %v403_v57 = vadd.f32 %v5461_v41, %v393_v48  ;;  %v456_v47 = vadd.f32 %v5475_v46, %v446_v35  ;;  %v457_v11 = vadd.f32 %v5475_v46, %v447_v38 }
 0x207   :  { %v518_v63 = vadd.f32 %v5477_v52, %v508_v40  ;;  %v519_v22 = vadd.f32 %v5477_v52, %v509_v21  ;;  %v580_v60 = vadd.f32 %v5479_v54, %v570_v45  ;;  %v581_v2 = vadd.f32 %v5479_v54, %v571_v61 }
 0x208   :  { %v464_v49 = vmax.f32 %v402_v8, %v456_v47  ;;  %v465_v42 = vmax.f32 %v403_v57, %v457_v11  ;;  %v390_v13 = vsub.f32 %v5464_v50, %v5367_v58  ;;  %v391_v14 = vsub.f32 %v5464_v50, %v5382_v62 }
 0x209   :  { %v444_v43 = vsub.f32 %v5467_v28, %v5398_v4  ;;  %v445_v48 = vsub.f32 %v5467_v28, %v5419_v19  ;;  %v506_v21 = vsub.f32 %v5470_v39, %v5374_v59  ;;  %v507_v35 = vsub.f32 %v5470_v39, %v5427_v44 }
 0x20a   :  { %v526_v38 = vmax.f32 %v464_v49, %v518_v63  ;;  %v527_v40 = vmax.f32 %v465_v42, %v519_v22  ;;  %v400_v45 = vadd.f32 %v5461_v41, %v390_v13  ;;  %v401_v58 = vadd.f32 %v5461_v41, %v391_v14 }
 0x20b   :  { %v454_v62 = vadd.f32 %v5475_v46, %v444_v43  ;;  %v455_v61 = vadd.f32 %v5475_v46, %v445_v48  ;;  %v516_v4 = vadd.f32 %v5477_v52, %v506_v21  ;;  %v517_v19 = vadd.f32 %v5477_v52, %v507_v35 }
 0x20c   :  { %v588_v31 = vmax.f32 %v526_v38, %v580_v60  ;;  %v589_v29 = vmax.f32 %v527_v40, %v581_v2  ;;  %v568_v59 = vsub.f32 %v5473_v56, %v5402_v6  ;;  %v569_v42 = vsub.f32 %v5473_v56, %v5388_v0 }
 0x20d   :  { %v462_v49 = vmax.f32 %v400_v45, %v454_v62  ;;  %v463_v44 = vmax.f32 %v401_v58, %v455_v61  ;;  %v394_v13 = vsub.f32 %v5464_v50, %v5396_v3  ;;  %v395_v14 = vsub.f32 %v5464_v50, %v5447_v33 }
 0x20e   :  { %v596_v43 = vsub.f32 %v402_v8, %v588_v31  ;;  %v597_v48 = vsub.f32 %v403_v57, %v589_v29  ;;  %v636_v21 = vsub.f32 %v456_v47, %v588_v31  ;;  %v637_v35 = vsub.f32 %v457_v11, %v589_v29 }
 0x20f   :  { %v676_v38 = vsub.f32 %v518_v63, %v588_v31  ;;  %v677_v40 = vsub.f32 %v519_v22, %v589_v29  ;;  %v716_v32 = vsub.f32 %v580_v60, %v588_v31  ;;  %v717_v30 = vsub.f32 %v581_v2, %v589_v29 }
 0x210   :  { %v606_v6 = vmul.f32 1.442695, %v596_v43  ;;  %v608_v25 = vmul.f32 1.442695, %v597_v48  ;;  %v646_v23 = vmul.f32 1.442695, %v636_v21  ;;  %v524_v0 = vmax.f32 %v462_v49, %v516_v4 }
 0x211   :  { %v648_v26 = vmul.f32 1.442695, %v637_v35  ;;  %v686_v24 = vmul.f32 1.442695, %v676_v38  ;;  %v688_v20 = vmul.f32 1.442695, %v677_v40  ;;  %v525_v18 = vmax.f32 %v463_v44, %v517_v19 }
 0x212   :  { %4697 = vpow2.f32 %v606_v6  ;;  %v726_v3 = vmul.f32 1.442695, %v716_v32  ;;  %v728_v17 = vmul.f32 1.442695, %v717_v30  ;;  %v578_v33 = vadd.f32 %v5479_v54, %v568_v59  ;;  %v5572_v6 = vld [vmem:[%s7690_s30 + $0x10] sm:$0xff] }
 0x213   :  { %4699 = vpow2.f32 %v608_v25  ;;  %v579_v8 = vadd.f32 %v5479_v54, %v569_v42  ;;  %v5534_v22 = vadd.f32 %v5461_v41, %v394_v13  ;;  %v5537_v29 = vadd.f32 %v5461_v41, %v395_v14 }
 0x214   :  { %4701 = vpow2.f32 %v646_v23  ;;  %v586_v31 = vmax.f32 %v524_v0, %v578_v33  ;;  %v448_v57 = vsub.f32 %v5467_v28, %v5439_v34  ;;  %v449_v32 = vsub.f32 %v5467_v28, %v5408_v9 }
 0x215   :  { %4703 = vpow2.f32 %v648_v26  ;;  %v587_v30 = vmax.f32 %v525_v18, %v579_v8  ;;  %v510_v25 = vsub.f32 %v5470_v39, %v5441_v36  ;;  %v511_v47 = vsub.f32 %v5470_v39, %v5449_v53 }
 0x216   :  { %4705 = vpow2.f32 %v686_v24  ;;  %v594_v11 = vsub.f32 %v400_v45, %v586_v31  ;;  %v634_v63 = vsub.f32 %v454_v62, %v586_v31  ;;  %v674_v60 = vsub.f32 %v516_v4, %v586_v31 }
 0x217   :  { %4707 = vpow2.f32 %v688_v20  ;;  %v595_v23 = vsub.f32 %v401_v58, %v587_v30  ;;  %v635_v2 = vsub.f32 %v455_v61, %v587_v30  ;;  %v675_v59 = vsub.f32 %v517_v19, %v587_v30 }
 0x218   :  { %4709 = vpow2.f32 %v726_v3  ;;  %v602_v34 = vmul.f32 1.442695, %v594_v11  ;;  %v642_v42 = vmul.f32 1.442695, %v634_v63  ;;  %v682_v9 = vmul.f32 1.442695, %v674_v60 }
 0x219   :  { %4711 = vpow2.f32 %v728_v17  ;;  %v604_v26 = vmul.f32 1.442695, %v595_v23  ;;  %v644_v18 = vmul.f32 1.442695, %v635_v2  ;;  %v684_v49 = vmul.f32 1.442695, %v675_v59 }
 0x21a   :  { %4713 = vpow2.f32 %v602_v34  ;;  %v714_v36 = vsub.f32 %v578_v33, %v586_v31  ;;  %v715_v44 = vsub.f32 %v579_v8, %v587_v30  ;;  %v458_v24 = vadd.f32 %v5475_v46, %v448_v57 }
 0x21b   :  { %4715 = vpow2.f32 %v604_v26  ;;  %v459_v53 = vadd.f32 %v5475_v46, %v449_v32  ;;  %v520_v20 = vadd.f32 %v5477_v52, %v510_v25  ;;  %v5551_v45 = vadd.f32 %v5477_v52, %v511_v47 }
 0x21c   :  { %v5553_v58 = vpop.eup %4697  ;;  %4717 = vpow2.f32 %v642_v42  ;;  %v722_v17 = vmul.f32 1.442695, %v714_v36  ;;  %v724_v62 = vmul.f32 1.442695, %v715_v44  ;;  %v466_v61 = vmax.f32 %v5534_v22, %v458_v24 }
 0x21d   :  { %v5556_v4 = vpop.eup %4699  ;;  %4719 = vpow2.f32 %v644_v18  ;;  %v467_v19 = vmax.f32 %v5537_v29, %v459_v53  ;;  %v572_v13 = vsub.f32 %v5473_v56, %v5400_v5  ;;  %v573_v14 = vsub.f32 %v5473_v56, %v5451_v15 }
 0x21e   :  { %v4702_v43 = vpop.eup %4701  ;;  %4721 = vpow2.f32 %v682_v9  ;;  %v528_v48 = vmax.f32 %v466_v61, %v520_v20  ;;  %v396_v0 = vsub.f32 %v5464_v50, %v5432_v37  ;;  %v397_v37 = vsub.f32 %v5464_v50, %v5404_v7 }
 0x21f   :  { %v5563_v21 = vpop.eup %4703  ;;  %v660_v35 = vadd.f32 %v4702_v43, %v5553_v58  ;;  %4723 = vpow2.f32 %v684_v49  ;;  %v529_v38 = vmax.f32 %v467_v19, %v5551_v45  ;;  %v582_v15 = vadd.f32 %v5479_v54, %v572_v13 }
 0x220   :  { %v5567_v40 = vpop.eup %4705  ;;  %v661_v5 = vadd.f32 %v5563_v21, %v5556_v4  ;;  %4725 = vpow2.f32 %v722_v17  ;;  %v583_v8 = vadd.f32 %v5479_v54, %v573_v14  ;;  %v5585_v47 = vmul.f32 %v4702_v43, %v5572_v6 }
 0x221   :  { %v5579_v3 = vpop.eup %4707  ;;  %v700_v33 = vadd.f32 %v5567_v40, %v660_v35  ;;  %4727 = vpow2.f32 %v724_v62  ;;  %v590_v32 = vmax.f32 %v528_v48, %v582_v15  ;;  %v5593_v59 = vadd.f32 %v5461_v41, %v396_v0 }
 0x222   :  { %v4710_v31 = vpop.eup %4709  ;;  %v701_v57 = vadd.f32 %v5579_v3, %v661_v5  ;;  %v591_v11 = vmax.f32 %v529_v38, %v583_v8  ;;  %v450_v50 = vsub.f32 %v5467_v28, %v5437_v27  ;;  %v451_v13 = vsub.f32 %v5467_v28, %v5443_v55 }
 0x223   :  { %v4712_v30 = vpop.eup %4711  ;;  %v740_v25 = vadd.f32 %v4710_v31, %v700_v33  ;;  %v598_v23 = vsub.f32 %v5534_v22, %v590_v32  ;;  %v638_v2 = vsub.f32 %v458_v24, %v590_v32  ;;  %v678_v26 = vsub.f32 %v520_v20, %v590_v32 }
 0x224   :  { %v5589_v63 = vpop.eup %4713  ;;  %v741_v60 = vadd.f32 %v4712_v30, %v701_v57  ;;  %v599_v42 = vsub.f32 %v5537_v29, %v591_v11  ;;  %v639_v9 = vsub.f32 %v459_v53, %v591_v11  ;;  %v679_v17 = vsub.f32 %v5551_v45, %v591_v11  ;;  %v70_v57 = vld [vmem:[%s7690_s30] sm:$0xff] }
 0x225   :  { %v5595_v34 = vpop.eup %4715  ;;  %4729 = vrcp.f32 %v740_v25  ;;  %v610_v49 = vmul.f32 1.442695, %v598_v23  ;;  %v650_v7 = vmul.f32 1.442695, %v638_v2  ;;  %v690_v53 = vmul.f32 1.442695, %v678_v26 }
 0x226   :  { %v4718_v18 = vpop.eup %4717  ;;  %4731 = vrcp.f32 %v741_v60  ;;  %v612_v44 = vmul.f32 1.442695, %v599_v42  ;;  %v652_v24 = vmul.f32 1.442695, %v639_v9  ;;  %v5606_v20 = vadd.f32 %v5461_v41, %v397_v37 }
 0x227   :  { %v4720_v36 = vpop.eup %4719  ;;  %v658_v22 = vadd.f32 %v4718_v18, %v5589_v63  ;;  %4733 = vpow2.f32 %v610_v49  ;;  %v718_v19 = vsub.f32 %v582_v15, %v590_v32  ;;  %v719_v43 = vsub.f32 %v583_v8, %v591_v11  ;;  %v5621_v15 = vld [vmem:[%s7690_s30 + $0x18] sm:$0xff] }
 0x228   :  { %v5602_v62 = vpop.eup %4721  ;;  %v659_v29 = vadd.f32 %v4720_v36, %v5595_v34  ;;  %4735 = vpow2.f32 %v612_v44  ;;  %v5615_v48 = vadd.f32 %v5475_v46, %v450_v50  ;;  %v748_v41 = vmul.f32 %v4710_v31, %v5572_v6 }
 0x229   :  { %v5608_v61 = vpop.eup %4723  ;;  %v698_v27 = vadd.f32 %v5602_v62, %v658_v22  ;;  %4737 = vpow2.f32 %v650_v7  ;;  %v692_v5 = vmul.f32 1.442695, %v679_v17  ;;  %v730_v28 = vmul.f32 1.442695, %v718_v19 }
 0x22a   :  { %v4726_v14 = vpop.eup %4725  ;;  %v699_v45 = vadd.f32 %v5608_v61, %v659_v29  ;;  %4739 = vpow2.f32 %v652_v24  ;;  %v732_v0 = vmul.f32 1.442695, %v719_v43  ;;  %v5624_v33 = vadd.f32 %v5475_v46, %v451_v13 }
 0x22b   :  { %v4728_v35 = vpop.eup %4727  ;;  %v738_v38 = vadd.f32 %v4726_v14, %v698_v27  ;;  %4741 = vpow2.f32 %v690_v53  ;;  %v468_v8 = vmax.f32 %v5593_v59, %v5615_v48  ;;  %v512_v31 = vsub.f32 %v5470_v39, %v5391_v1  ;;  %v71_v1 = vld [vmem:[%s7690_s30 + $0x8] sm:$0xff] }
 0x22c   :  { %v739_v55 = vadd.f32 %v4728_v35, %v699_v45  ;;  %v513_v32 = vsub.f32 %v5470_v39, %v5445_v16  ;;  %v574_v25 = vsub.f32 %v5473_v56, %v5410_v10  ;;  %v575_v46 = vsub.f32 %v5473_v56, %v5414_v12 }
 0x22d   :  { %4743 = vrcp.f32 %v738_v38  ;;  %v749_v37 = vmul.f32 %v4712_v30, %v5621_v15  ;;  %v469_v60 = vmax.f32 %v5606_v20, %v5624_v33  ;;  %v522_v16 = vadd.f32 %v5477_v52, %v512_v31 }
 0x22e   :  { %4745 = vrcp.f32 %v739_v55  ;;  %v669_v12 = vmul.f32 %v5563_v21, %v5621_v15  ;;  %v523_v56 = vadd.f32 %v5477_v52, %v513_v32  ;;  %v666_v23 = vmul.f32 %v4718_v18, %v70_v57 }
 0x22f   :  { %v5639_v11 = vpop.eup %4729  ;;  %4747 = vpow2.f32 %v692_v5  ;;  %v530_v2 = vmax.f32 %v468_v8, %v522_v16  ;;  %v667_v9 = vmul.f32 %v4720_v36, %v71_v1  ;;  %v584_v49 = vadd.f32 %v5479_v54, %v574_v25 }
 0x230   :  { %v5648_v39 = vpop.eup %4731  ;;  %v788_v10 = vmul.f32 %v5639_v11, %v748_v41  ;;  %4749 = vpow2.f32 %v730_v28  ;;  %v531_v26 = vmax.f32 %v469_v60, %v523_v56  ;;  %v585_v7 = vadd.f32 %v5479_v54, %v575_v46 }
 0x231   :  { %v789_v30 = vmul.f32 %v5648_v39, %v749_v37  ;;  %4751 = vpow2.f32 %v732_v0  ;;  %v5655_v42 = vpop.eup %4733  ;;  %v746_v21 = vmul.f32 %v4726_v14, %v70_v57  ;;  %v747_v44 = vmul.f32 %v4728_v35, %v71_v1 }
 0x232   :  { %v5659_v50 = vpop.eup %4735  ;;  %v627_v52 = vmul.f32 %v5595_v34, %v71_v1  ;;  %v5666_v18 = vmul.f32 %v5639_v11, %v5585_v47  ;;  %v5669_v36 = vmul.f32 %v5648_v39, %v669_v12  ;;  %v592_v17 = vmax.f32 %v530_v2, %v584_v49 }
 0x233   :  { %v4288_v22 = vpack.i.bf16 %v789_v30, %v788_v10  ;;  %v5662_v24 = vpop.eup %4737  ;;  %v593_v29 = vmax.f32 %v531_v26, %v585_v7  ;;  %v626_v34 = vmul.f32 %v5589_v63, %v70_v57  ;;  %v706_v27 = vmul.f32 %v5602_v62, %v70_v57 }
 0x234   :  { %v5671_v53 = vpop.eup %4739  ;;  %v662_v54 = vadd.f32 %v5662_v24, %v5655_v42  ;;  %v707_v19 = vmul.f32 %v5608_v61, %v71_v1  ;;  %v600_v14 = vsub.f32 %v5593_v59, %v592_v17  ;;  %v708_v43 = vmul.f32 %v5567_v40, %v5572_v6 }
 0x235   :  { %4289 = vrot.lane.b32.xlu1 %v4288_v22, %s5060_s3  ;;  %v5679_v47 = vpop.eup %4741  ;;  %v663_v13 = vadd.f32 %v5671_v53, %v5659_v50  ;;  %v601_v45 = vsub.f32 %v5606_v20, %v593_v29  ;;  %v640_v63 = vsub.f32 %v5615_v48, %v592_v17  ;;  %v641_v62 = vsub.f32 %v5624_v33, %v593_v29 }
 0x236   :  { %v702_v41 = vadd.f32 %v5679_v47, %v662_v54  ;;  %v680_v61 = vsub.f32 %v522_v16, %v592_v17  ;;  %v614_v28 = vmul.f32 1.442695, %v600_v14  ;;  %v709_v20 = vmul.f32 %v5579_v3, %v5621_v15 }
 0x237   :  { %v4744_v35 = vpop.eup %4743  ;;  %v616_v0 = vmul.f32 1.442695, %v601_v45  ;;  %v628_v40 = vmul.f32 %v5553_v58, %v5572_v6  ;;  %v654_v48 = vmul.f32 1.442695, %v640_v63  ;;  %v656_v25 = vmul.f32 1.442695, %v641_v62 }
 0x238   :  { %v4746_v38 = vpop.eup %4745  ;;  %v786_v5 = vmul.f32 %v4744_v35, %v746_v21  ;;  %v770_v55 = vmul.f32 %v4744_v35, %v666_v23  ;;  %v681_v33 = vsub.f32 %v523_v56, %v593_v29  ;;  %4753 = vpow2.f32 %v614_v28 }
 0x239   :  { %v4748_v8 = vpop.eup %4747  ;;  %v787_v59 = vmul.f32 %v4746_v38, %v747_v44  ;;  %v771_v31 = vmul.f32 %v4746_v38, %v667_v9  ;;  %v694_v60 = vmul.f32 1.442695, %v680_v61  ;;  %4755 = vpow2.f32 %v616_v0 }
 0x23a   :  { %v4750_v57 = vpop.eup %4749  ;;  %v703_v32 = vadd.f32 %v4748_v8, %v663_v13  ;;  %v696_v12 = vmul.f32 1.442695, %v681_v33  ;;  %v720_v3 = vsub.f32 %v584_v49, %v592_v17  ;;  %v721_v30 = vsub.f32 %v585_v7, %v593_v29 }
 0x23b   :  { %v4752_v46 = vpop.eup %4751  ;;  %v4278_v37 = vpack.i.bf16 %v787_v59, %v786_v5  ;;  %v742_v1 = vadd.f32 %v4750_v57, %v702_v41  ;;  %v4283_v16 = vpack.i.bf16 %v771_v31, %v770_v55  ;;  %v5695_v58 = vmul.f32 %v4746_v38, %v627_v52  ;;  %v74_v52 = vld [vmem:[%s7690_s30 + $0x20] sm:$0xff] }
 0x23c   :  { %v743_v10 = vadd.f32 %v4752_v46, %v703_v32  ;;  %v5697_v6 = vmul.f32 %v4744_v35, %v626_v34  ;;  %v5699_v56 = vmul.f32 %v4744_v35, %v706_v27  ;;  %v5701_v23 = vmul.f32 %v4746_v38, %v707_v19 }
 0x23d   :  { %4279 = vrot.lane.b32.xlu0 %v4278_v37, %s5060_s3  ;;  %4757 = vrcp.f32 %v742_v1  ;;  %v734_v2 = vmul.f32 1.442695, %v720_v3  ;;  %v736_v9 = vmul.f32 1.442695, %v721_v30  ;;  %v5704_v26 = vmul.f32 %v5639_v11, %v708_v43 }
 0x23e   :  { %4759 = vrcp.f32 %v743_v10  ;;  %v5707_v22 = vmul.f32 %v5648_v39, %v709_v20  ;;  %v629_v49 = vmul.f32 %v5556_v4, %v5621_v15  ;;  %v5712_v7 = vmul.f32 %v5639_v11, %v628_v40  ;;  %v75_v4 = vld [vmem:[%s7690_s30 + $0x28] sm:$0xff]  ;;  %v76_v40 = vld [vmem:[%s7690_s30 + $0x30] sm:$0xff] }
 0x23f   :  { %4761 = vpow2.f32 %v654_v48  ;;  %v4293_v44 = vpack.i.bf16 %v5669_v36, %v5666_v18  ;;  %v750_v17 = vmul.f32 %v4750_v57, %v74_v52  ;;  %v630_v29 = vmul.f32 %v5655_v42, %v74_v52  ;;  %v77_v57 = vld [vmem:[%s7690_s30 + $0x38] sm:$0xff] }
 0x240   :  { %4763 = vpow2.f32 %v656_v25  ;;  %v5716_v21 = vmul.f32 %v5648_v39, %v629_v49  ;;  %v710_v39 = vmul.f32 %v5679_v47, %v74_v52  ;;  %v751_v36 = vmul.f32 %v4752_v46, %v75_v4 }
 0x241   :  { %4284 = vrot.lane.b32.xlu0 %v4283_v16, %s5060_s3  ;;  %4765 = vpow2.f32 %v694_v60  ;;  %v711_v54 = vmul.f32 %v4748_v8, %v75_v4  ;;  %v631_v34 = vmul.f32 %v5659_v50, %v75_v4  ;;  %v670_v13 = vmul.f32 %v5662_v24, %v74_v52 }
 0x242   :  { %4767 = vpow2.f32 %v696_v12  ;;  %v4754_v15 = vpop.eup %4753  ;;  %v671_v41 = vmul.f32 %v5671_v53, %v75_v4 }
 0x243   :  { %4769 = vpow2.f32 %v734_v2  ;;  %v4756_v11 = vpop.eup %4755  ;;  %v632_v25 = vmul.f32 %v4754_v15, %v76_v40 }
 0x244   :  { %4771 = vpow2.f32 %v736_v9  ;;  %v633_v1 = vmul.f32 %v4756_v11, %v77_v57 }
 0x245   :  { %4294 = vrot.lane.b32.xlu0 %v4293_v44, %s5060_s3 }
 0x247   :  { %v4758_v18 = vpop.eup %4757 }
 0x248   :  { %v4760_v27 = vpop.eup %4759  ;;  %v790_v19 = vmul.f32 %v4758_v18, %v750_v17  ;;  %v5731_v14 = vmul.f32 %v4758_v18, %v710_v39  ;;  %v5733_v45 = vmul.f32 %v4758_v18, %v630_v29  ;;  %v774_v38 = vmul.f32 %v4758_v18, %v670_v13 }
 0x249   :  { %v4762_v43 = vpop.eup %4761  ;;  %v791_v35 = vmul.f32 %v4760_v27, %v751_v36  ;;  %v5736_v47 = vmul.f32 %v4760_v27, %v711_v54  ;;  %v5738_v42 = vmul.f32 %v4760_v27, %v631_v34  ;;  %v775_v5 = vmul.f32 %v4760_v27, %v671_v41 }
 0x24a   :  { %v4764_v63 = vpop.eup %4763  ;;  %v664_v62 = vadd.f32 %v4762_v43, %v4754_v15  ;;  %v672_v10 = vmul.f32 %v4762_v43, %v76_v40 }
 0x24b   :  { %v4766_v61 = vpop.eup %4765  ;;  %v4298_v50 = vpack.i.bf16 %v791_v35, %v790_v19  ;;  %v665_v55 = vadd.f32 %v4764_v63, %v4756_v11  ;;  %v4303_v53 = vpack.i.bf16 %v775_v5, %v774_v38  ;;  %v673_v2 = vmul.f32 %v4764_v63, %v77_v57 }
 0x24c   :  { %v4768_v24 = vpop.eup %4767  ;;  %v704_v28 = vadd.f32 %v4766_v61, %v664_v62  ;;  %v712_v48 = vmul.f32 %v4766_v61, %v76_v40 }
 0x24d   :  { %v4770_v0 = vpop.eup %4769  ;;  %4299 = vrot.lane.b32.xlu0 %v4298_v50, %s5060_s3  ;;  %v705_v8 = vadd.f32 %v4768_v24, %v665_v55  ;;  %v713_v37 = vmul.f32 %v4768_v24, %v77_v57 }
 0x24e   :  { %v4772_v59 = vpop.eup %4771  ;;  %v744_v31 = vadd.f32 %v4770_v0, %v704_v28  ;;  %v752_v32 = vmul.f32 %v4770_v0, %v76_v40 }
 0x24f   :  { %v745_v20 = vadd.f32 %v4772_v59, %v705_v8  ;;  %v753_v46 = vmul.f32 %v4772_v59, %v77_v57 }
 0x250   :  { %4773 = vrcp.f32 %v744_v31 }
 0x251   :  { %4304 = vrot.lane.b32.xlu0 %v4303_v53, %s5060_s3  ;;  %4775 = vrcp.f32 %v745_v20 }
 0x25a   :  { %v4774_v33 = vpop.eup %4773 }
 0x25b   :  { %v4776_v60 = vpop.eup %4775  ;;  %v792_v16 = vmul.f32 %v4774_v33, %v752_v32  ;;  %v784_v12 = vmul.f32 %v4774_v33, %v712_v48  ;;  %v5748_v3 = vmul.f32 %v4774_v33, %v632_v25  ;;  %v776_v52 = vmul.f32 %v4774_v33, %v672_v10  ;;  %v1062_v10 = vld [vmem:[%s7623_s6 + $0x18] sm:$0xff] }
 0x25c   :  { %v793_v30 = vmul.f32 %v4776_v60, %v753_v46  ;;  %v785_v9 = vmul.f32 %v4776_v60, %v713_v37  ;;  %v769_v49 = vmul.f32 %v4776_v60, %v633_v1  ;;  %v777_v4 = vmul.f32 %v4776_v60, %v673_v2  ;;  %v1059_v37 = vld [vmem:[%s7623_s6] sm:$0xff]  ;;  %v1060_v1 = vld [vmem:[%s7623_s6 + $0x8] sm:$0xff]  ;;  %v1061_v60 = vld [vmem:[%s7623_s6 + $0x10] sm:$0xff] }
 0x25e   :  { %v4308_v44 = vpack.i.bf16 %v793_v30, %v792_v16  ;;  %v4313_v15 = vpack.i.bf16 %v777_v4, %v776_v52  ;;  %v1071_v16 = vpack.c.bf16 %v1060_v1, %v1059_v37  ;;  %v1064_v30 = vld [vmem:[%s7625_s8 + $0x8] sm:$0xff] }
 0x260   :  { %4309 = vrot.lane.b32.xlu0 %v4308_v44, %s5060_s3  ;;  %4092 = vmatprep.subr.bf16.mxu0 %v1071_v16 }
 0x261   :  { %4093 = vmatpush3.bf16.msra.mxu0 %v1071_v16 }
 0x264   :  { %4314 = vrot.lane.b32.xlu0 %v4313_v15, %s5060_s3 }
 0x2a7   :  { %v4290_v17 = vpop.permute.xlu1 %4289 }
 0x2a8   :  { %v4292_v11 = vunpack.i.h.bf16 %v4290_v17  ;;  %v4291_v39 = vunpack.i.l.bf16 %v4290_v17 }
 0x2aa   :  { %v869_v29 = vsel %vm858_vm1, %v5704_v26, %v4291_v39  ;;  %v870_v18 = vsel %vm858_vm1, %v5707_v22, %v4292_v11 }
 0x2ab   :  { %v958_v36 = vpack.c.bf16 %v870_v18, %v869_v29 }
 0x2af   :  { %v4280_v54 = vpop.permute.xlu0 %4279 }
 0x2b0   :  { %v4282_v34 = vunpack.i.h.bf16 %v4280_v54  ;;  %v4281_v27 = vunpack.i.l.bf16 %v4280_v54 }
 0x2b2   :  { %v867_v19 = vsel %vm858_vm1, %v5699_v56, %v4281_v27  ;;  %v868_v13 = vsel %vm858_vm1, %v5701_v23, %v4282_v34 }
 0x2b3   :  { %v4285_v43 = vpop.permute.xlu0 %4284  ;;  %v956_v35 = vpack.c.bf16 %v868_v13, %v867_v19 }
 0x2b4   :  { %v4287_v41 = vunpack.i.h.bf16 %v4285_v43  ;;  %v4286_v63 = vunpack.i.l.bf16 %v4285_v43 }
 0x2b5   :  { %1018 = vmatprep.mubr.bf16.mxu1 %v956_v35 }
 0x2b6   :  { %v860_v26 = vsel %vm858_vm1, %v5695_v58, %v4287_v41  ;;  %v859_v22 = vsel %vm858_vm1, %v5697_v6, %v4286_v63  ;;  %v1065_v63 = vld [vmem:[%s7625_s8 + $0x10] sm:$0xff] }
 0x2b7   :  { %v955_v62 = vpack.c.bf16 %v860_v26, %v859_v22  ;;  %v4295_v61 = vpop.permute.xlu0 %4294  ;;  %v1066_v26 = vld [vmem:[%s7625_s8 + $0x18] sm:$0xff] }
 0x2b8   :  { %v4297_v50 = vunpack.i.h.bf16 %v4295_v61  ;;  %v4296_v38 = vunpack.i.l.bf16 %v4295_v61 }
 0x2b9   :  { %1019 = vmatmul.mubr.bf16.vlgmr.msra.gmra.mrb[8].mxu1 %v955_v62 }
 0x2ba   :  { %1026 = vmatprep.mubr.bf16.mxu1 %v958_v36  ;;  %v861_v56 = vsel %vm858_vm1, %v5712_v7, %v4296_v38  ;;  %v862_v23 = vsel %vm858_vm1, %v5716_v21, %v4297_v50 }
 0x2bb   :  { %v957_v5 = vpack.c.bf16 %v862_v23, %v861_v56 }
 0x2bf   :  { %v4300_v55 = vpop.permute.xlu0 %4299 }
 0x2c0   :  { %v4302_v24 = vunpack.i.h.bf16 %v4300_v55  ;;  %v4301_v28 = vunpack.i.l.bf16 %v4300_v55 }
 0x2c1   :  { %1027 = vmatmul.mubr.bf16.gmra.mrb[12].mxu1 %v957_v5  ;;  %v1152_v5 = vpack.c.bf16 %v1066_v26, %v1065_v63 }
 0x2c2   :  { %v871_v58 = vsel %vm858_vm1, %v5731_v14, %v4301_v28  ;;  %v872_v6 = vsel %vm858_vm1, %v5736_v47, %v4302_v24 }
 0x2c3   :  { %v4305_v0 = vpop.permute.xlu0 %4304  ;;  %v960_v8 = vpack.c.bf16 %v872_v6, %v871_v58 }
 0x2c4   :  { %v4307_v59 = vunpack.i.h.bf16 %v4305_v0  ;;  %v4306_v31 = vunpack.i.l.bf16 %v4305_v0 }
 0x2c5   :  { %1034 = vmatprep.mubr.bf16.mxu1 %v960_v8 }
 0x2c6   :  { %v863_v7 = vsel %vm858_vm1, %v5733_v45, %v4306_v31  ;;  %v864_v21 = vsel %vm858_vm1, %v5738_v42, %v4307_v59 }
 0x2c7   :  { %v959_v53 = vpack.c.bf16 %v864_v21, %v863_v7 }
 0x2c9   :  { %1035 = vmatmul.mubr.bf16.gmra.mrb[16].mxu1 %v959_v53 }
 0x2d2   :  { %v4310_v20 = vpop.permute.xlu0 %4309 }
 0x2d3   :  { %v4312_v40 = vunpack.i.h.bf16 %v4310_v20  ;;  %v4311_v57 = vunpack.i.l.bf16 %v4310_v20 }
 0x2d5   :  { %v873_v14 = vsel %vm858_vm1, %v784_v12, %v4311_v57  ;;  %v874_v47 = vsel %vm858_vm1, %v785_v9, %v4312_v40  ;;  %v1072_v12 = vpack.c.bf16 %v1062_v10, %v1061_v60 }
 0x2d6   :  { %v4315_v32 = vpop.permute.xlu0 %4314  ;;  %v962_v48 = vpack.c.bf16 %v874_v47, %v873_v14 }
 0x2d7   :  { %v4317_v25 = vunpack.i.h.bf16 %v4315_v32  ;;  %v4316_v33 = vunpack.i.l.bf16 %v4315_v32  ;;  %4094 = vmatprep.subr.bf16.mxu0 %v1072_v12 }
 0x2d8   :  { %1042 = vmatprep.mubr.bf16.mxu1 %v962_v48  ;;  %4095 = vmatpush3.bf16.msra.mxu0 %v1072_v12 }
 0x2d9   :  { %v865_v45 = vsel %vm858_vm1, %v5748_v3, %v4316_v33  ;;  %v866_v46 = vsel %vm858_vm1, %v769_v49, %v4317_v25  ;;  %v1063_v3 = vld [vmem:[%s7625_s8] sm:$0xff]  ;;  %s3820_s8 = sld [smem:[#allocation2 + $0x80]] }
 0x2da   :  { %v961_v42 = vpack.c.bf16 %v866_v46, %v865_v45  ;;  %v1151_v2 = vpack.c.bf16 %v1064_v30, %v1063_v3  ;;  %v3811_v49 = vld [vmem:[%s7621_s4] ss:$0 sm:$0xff]  ;;  %s3849_s4 = sld [smem:[#allocation2 + $0x183]] }
 0x2dc   :  { %1043 = vmatmul.mubr.bf16.gmra.mrb[20].mxu1 %v961_v42  ;;  %4104 = vmatprep.subr.bf16.mxu0 %v1151_v2 }
 0x38c   :  { %v3882_v9 = vpop.f32.mrb[8].mxu1 }
 0x38d   :  { %v3883_v44 = vpop.f32.mrb[9].mxu1 }
 0x38e   :  { %v3884_v52 = vadd.f32 %v3883_v44, %v3882_v9  ;;  %v3885_v4 = vpop.f32.mrb[10].mxu1 }
 0x38f   :  { %v3886_v15 = vpop.f32.mrb[11].mxu1 }
 0x390   :  { %v1021_v17 = vadd.f32 %v3884_v52, %v3811_v49  ;;  %v3887_v11 = vadd.f32 %v3886_v15, %v3885_v4  ;;  %v7691_v15 = vmov 2  }
 0x392   :  { %v1024_v39 = vadd.f32 %v3887_v11, %v3811_v49  ;;  %v1051_v29 = vmax.f32 %v1021_v17, 0.0  ;;  %v7692_v17 = vmov 3  }
 0x394   :  { %v1052_v18 = vmax.f32 %v1024_v39, 0.0  ;;  %v3888_v36 = vpop.f32.mrb[12].mxu1 }
 0x395   :  { %v3889_v54 = vpop.f32.mrb[13].mxu1 }
 0x396   :  { %v1067_v34 = vpack.c.bf16 %v1052_v18, %v1051_v29  ;;  %v3890_v27 = vadd.f32 %v3889_v54, %v3888_v36  ;;  %v3891_v19 = vpop.f32.mrb[14].mxu1  ;;  %v7693_v29 = vmov 0   ;;  %v7694_v54 = vmov 1  }
 0x397   :  { %v3892_v13 = vpop.f32.mrb[15].mxu1 }
 0x398   :  { %v1029_v43 = vadd.f32 %v3890_v27, %v3811_v49  ;;  %v3893_v35 = vadd.f32 %v3892_v13, %v3891_v19  ;;  %4096 = vmatprep.mubr.msk.bf16.mxu0 %vm1073_vm2, %v1067_v34 }
 0x39a   :  { %v1032_v41 = vadd.f32 %v3893_v35, %v3811_v49  ;;  %v1053_v22 = vmax.f32 %v1029_v43, 0.0 }
 0x39c   :  { %v1054_v62 = vmax.f32 %v1032_v41, 0.0  ;;  %v3894_v61 = vpop.f32.mrb[16].mxu1 }
 0x39d   :  { %v3895_v50 = vpop.f32.mrb[17].mxu1 }
 0x39e   :  { %v1068_v38 = vpack.c.bf16 %v1054_v62, %v1053_v22  ;;  %v3896_v56 = vadd.f32 %v3895_v50, %v3894_v61  ;;  %v3897_v23 = vpop.f32.mrb[18].mxu1 }
 0x39f   :  { %v3898_v55 = vpop.f32.mrb[19].mxu1 }
 0x3a0   :  { %v1037_v24 = vadd.f32 %v3896_v56, %v3811_v49  ;;  %v3899_v28 = vadd.f32 %v3898_v55, %v3897_v23  ;;  %4097 = vmatmul.mubr.msk.bf16.vlgmr.msra.gmra.mrb[16].mxu0 %vm1073_vm2, %v1068_v38 }
 0x3a1   :  { %4105 = vmatpush3.bf16.msra.mxu0 %v1151_v2 }
 0x3a2   :  { %v1040_v58 = vadd.f32 %v3899_v28, %v3811_v49  ;;  %4106 = vmatprep.subr.bf16.mxu0 %v1152_v5  ;;  %v1055_v6 = vmax.f32 %v1037_v24, 0.0 }
 0x3a4   :  { %v1056_v0 = vmax.f32 %v1040_v58, 0.0 }
 0x3a5   :  { %4107 = vmatpush3.bf16.msra.mxu0 %v1152_v5 }
 0x3a6   :  { %v1069_v8 = vpack.c.bf16 %v1056_v0, %v1055_v6 }
 0x3a8   :  { %4100 = vmatprep.mubr.msk.bf16.mxu0 %vm1073_vm2, %v1069_v8 }
 0x3af   :  { %v3900_v59 = vpop.f32.mrb[20].mxu1 }
 0x3b0   :  { %v3901_v31 = vpop.f32.mrb[21].mxu1 }
 0x3b1   :  { %v3902_v7 = vadd.f32 %v3901_v31, %v3900_v59  ;;  %v3903_v21 = vpop.f32.mrb[22].mxu1 }
 0x3b2   :  { %v3904_v53 = vpop.f32.mrb[23].mxu1 }
 0x3b3   :  { %v1045_v20 = vadd.f32 %v3902_v7, %v3811_v49  ;;  %v3905_v40 = vadd.f32 %v3904_v53, %v3903_v21 }
 0x3b5   :  { %v1048_v57 = vadd.f32 %v3905_v40, %v3811_v49  ;;  %v1057_v14 = vmax.f32 %v1045_v20, 0.0 }
 0x3b7   :  { %v1058_v47 = vmax.f32 %v1048_v57, 0.0 }
 0x3b9   :  { %v1070_v32 = vpack.c.bf16 %v1058_v47, %v1057_v14 }
 0x3bb   :  { %4101 = vmatmul.mubr.msk.bf16.gmra.mrb[20].mxu0 %vm1073_vm2, %v1070_v32 }
 0x3bc   :  { %4108 = vmatprep.mubr.msk.bf16.mxu0 %vm1073_vm2, %v1067_v34 }
 0x3c3   :  { %4109 = vmatmul.mubr.msk.bf16.vlgmr.msra.gmra.mrb[24].mxu0 %vm1073_vm2, %v1068_v38 }
 0x3c4   :  { %4112 = vmatprep.mubr.msk.bf16.mxu0 %vm1073_vm2, %v1069_v8 }
 0x3cb   :  { %4113 = vmatmul.mubr.msk.bf16.gmra.mrb[28].mxu0 %vm1073_vm2, %v1070_v32 }
 0x473   :  { %v5816_v48 = vpop.f32.mrb[16].mxu0 }
 0x474   :  { %v5818_v25 = vpop.f32.mrb[17].mxu0 }
 0x475   :  { %v5820_v33 = vpop.f32.mrb[18].mxu0 }
 0x476   :  { %v5824_v45 = vpack.i.bf16 %v5820_v33, %v5816_v48  ;;  %v1867_v46 = vpack.c.bf16 %v5820_v33, %v5816_v48  ;;  %v5828_v42 = vpop.f32.mrb[19].mxu0 }
 0x477   :  { %v5832_v37 = vpack.i.bf16 %v5828_v42, %v5818_v25  ;;  %v1866_v1 = vpack.c.bf16 %v5828_v42, %v5818_v25 }
 0x48e   :  { %v5836_v60 = vpop.f32.mrb[20].mxu0 }
 0x48f   :  { %v5838_v16 = vpop.f32.mrb[21].mxu0 }
 0x490   :  { %v5840_v10 = vpop.f32.mrb[22].mxu0 }
 0x491   :  { %v5844_v12 = vpack.i.bf16 %v5840_v10, %v5836_v60  ;;  %v1869_v3 = vpack.c.bf16 %v5840_v10, %v5836_v60  ;;  %v5848_v30 = vpop.f32.mrb[23].mxu0 }
 0x492   :  { %v5852_v2 = vpack.i.bf16 %v5848_v30, %v5838_v16  ;;  %v1868_v9 = vpack.c.bf16 %v5848_v30, %v5838_v16 }
 0x496   :  { %v5856_v49 = vpop.f32.mrb[24].mxu0 }
 0x497   :  { %1325 = vperm.xlu1 %4319, %v5856_v49   ;;  %1266 = vperm.xlu0 %4318, %v5856_v49   ;;  %v5860_v44 = vpop.f32.mrb[25].mxu0 }
 0x498   :  { %v5862_v52 = vpop.f32.mrb[26].mxu0 }
 0x499   :  { %v5864_v4 = vpop.f32.mrb[27].mxu0 }
 0x49b   :  { %4320 = vset.pattern.permute.xlu1 %v7691_v15  ;;  %4321 = vset.pattern.permute.xlu0 %v7692_v17 }
 0x49c   :  { %1387 = vperm.xlu1 %4320, %v5856_v49   ;;  %1449 = vperm.xlu0 %4321, %v5856_v49  }
 0x49e   :  { %v5870_v11 = vpop.f32.mrb[28].mxu0 }
 0x49f   :  { %v5872_v39 = vpop.f32.mrb[29].mxu0 }
 0x4a0   :  { %4322 = vset.pattern.permute.xlu0 %v7693_v29  ;;  %1379 = vperm.xlu1 %4320, %v5860_v44   ;;  %v5876_v18 = vpop.f32.mrb[30].mxu0 }
 0x4a1   :  { %1256 = vperm.xlu0 %4322, %v5860_v44   ;;  %v5879_v36 = vpop.f32.mrb[31].mxu0 }
 0x4a4   :  { %4324 = vset.pattern.permute.xlu1 %v7692_v17 }
 0x4a5   :  { %1441 = vperm.xlu1 %4324, %v5860_v44   ;;  %4323 = vset.pattern.permute.xlu0 %v7694_v54 }
 0x4a6   :  { %1317 = vperm.xlu0 %4323, %v5860_v44  }
 0x4a9   :  { %4325 = vset.pattern.permute.xlu1 %v7693_v29 }
 0x4aa   :  { %1329 = vperm.xlu0 %4323, %v5862_v52   ;;  %1271 = vperm.xlu1 %4325, %v5862_v52  }
 0x4ae   :  { %4330 = vset.pattern.permute.xlu0 %v7691_v15  ;;  %4326 = vset.pattern.permute.xlu1 %v7691_v15 }
 0x4af   :  { %1391 = vperm.xlu1 %4326, %v5862_v52   ;;  %1383 = vperm.xlu0 %4330, %v5864_v4  }
 0x4b3   :  { %4327 = vset.pattern.permute.xlu1 %v7692_v17  ;;  %4333 = vset.pattern.permute.xlu0 %v7694_v54 }
 0x4b4   :  { %1453 = vperm.xlu1 %4327, %v5862_v52   ;;  %1341 = vperm.xlu0 %4333, %v5870_v11  }
 0x4b8   :  { %4328 = vset.pattern.permute.xlu1 %v7693_v29  ;;  %4337 = vset.pattern.permute.xlu0 %v7691_v15 }
 0x4b9   :  { %1261 = vperm.xlu1 %4328, %v5864_v4   ;;  %1395 = vperm.xlu0 %4337, %v5872_v39  }
 0x4bd   :  { %4329 = vset.pattern.permute.xlu1 %v7694_v54  ;;  %1407 = vperm.xlu0 %4337, %v5876_v18  }
 0x4be   :  { %1321 = vperm.xlu1 %4329, %v5864_v4  }
 0x4c1   :  { %4341 = vset.pattern.permute.xlu0 %v7693_v29 }
 0x4c2   :  { %4331 = vset.pattern.permute.xlu1 %v7692_v17  ;;  %1281 = vperm.xlu0 %4341, %v5879_v36  }
 0x4c3   :  { %1445 = vperm.xlu1 %4331, %v5864_v4  }
 0x4c6   :  { %4343 = vset.pattern.permute.xlu0 %v7692_v17 }
 0x4c7   :  { %4332 = vset.pattern.permute.xlu1 %v7693_v29  ;;  %1461 = vperm.xlu0 %4343, %v5879_v36  }
 0x4c8   :  { %1286 = vperm.xlu1 %4332, %v5870_v11  }
 0x4cb   :  { %1465 = vperm.xlu0 %4343, %v5870_v11  }
 0x4cc   :  { %4334 = vset.pattern.permute.xlu1 %v7691_v15 }
 0x4cd   :  { %1403 = vperm.xlu1 %4334, %v5870_v11  }
 0x4cf   :  { %1469 = vperm.xlu0 %4343, %v5876_v18  }
 0x4d1   :  { %4335 = vset.pattern.permute.xlu1 %v7693_v29 }
 0x4d2   :  { %1276 = vperm.xlu1 %4335, %v5872_v39  }
 0x4d3   :  { %4345 = vrot.lane.b32.xlu0 %v5832_v37, %s5060_s3 }
 0x4d4   :  { %4444 = vset.pattern.permute.xlu0 %v7693_v29 }
 0x4d6   :  { %4336 = vset.pattern.permute.xlu1 %v7694_v54 }
 0x4d7   :  { %1333 = vperm.xlu1 %4336, %v5872_v39   ;;  %4350 = vrot.lane.b32.xlu0 %v5824_v45, %s5060_s3 }
 0x4db   :  { %4338 = vset.pattern.permute.xlu1 %v7692_v17  ;;  %4355 = vrot.lane.b32.xlu0 %v5852_v2, %s5060_s3 }
 0x4dc   :  { %1457 = vperm.xlu1 %4338, %v5872_v39  }
 0x4df   :  { %4360 = vrot.lane.b32.xlu0 %v5844_v12, %s5060_s3 }
 0x4e0   :  { %4339 = vset.pattern.permute.xlu1 %v7693_v29 }
 0x4e1   :  { %1291 = vperm.xlu1 %4339, %v5876_v18  }
 0x4e3   :  { %4365 = vrot.lane.b32.xlu0 %v5832_v37, %s5061_s1 }
 0x4e5   :  { %4340 = vset.pattern.permute.xlu1 %v7694_v54 }
 0x4e6   :  { %1345 = vperm.xlu1 %4340, %v5876_v18  }
 0x4e7   :  { %4370 = vrot.lane.b32.xlu0 %v5832_v37, %s5062_s25 }
 0x4ea   :  { %1337 = vperm.xlu1 %4340, %v5879_v36  }
 0x4eb   :  { %4375 = vrot.lane.b32.xlu0 %v5824_v45, %s5061_s1 }
 0x4ee   :  { %4342 = vset.pattern.permute.xlu1 %v7691_v15 }
 0x4ef   :  { %1399 = vperm.xlu1 %4342, %v5879_v36   ;;  %4380 = vrot.lane.b32.xlu0 %v5824_v45, %s5062_s25 }
 0x4f3   :  { %4385 = vrot.lane.b32.xlu0 %v5852_v2, %s5061_s1 }
 0x4f7   :  { %4390 = vrot.lane.b32.xlu0 %v5852_v2, %s5062_s25 }
 0x4fb   :  { %4395 = vrot.lane.b32.xlu0 %v5844_v12, %s5061_s1 }
 0x4ff   :  { %4400 = vrot.lane.b32.xlu0 %v5844_v12, %s5062_s25 }
 0x516   :  { %v5953_v34 = vpop.permute.xlu0 %1266  ;;  %v5965_v43 = vpop.permute.xlu1 %1325 }
 0x518   :  { %1218 = vxpose.xlu1.b32.start [1/8] (short) (narrow) %v5860_v44, 8 }
 0x51b   :  { %v5956_v27 = vpop.permute.xlu0 %1449  ;;  %v5971_v41 = vpop.permute.xlu1 %1387 }
 0x51c   :  { %1219 = vxpose.xlu1.b32.cont [2/8] (short) (narrow) %v5864_v4, 8 }
 0x51f   :  { %v5978_v22 = vpop.permute.xlu1 %1379 }
 0x520   :  { %v5959_v19 = vpop.permute.xlu0 %1256  ;;  %1220 = vxpose.xlu1.b32.cont [3/8] (short) (narrow) %v5856_v49, 8 }
 0x524   :  { %1221 = vxpose.xlu1.b32.cont [4/8] (short) (narrow) %v5862_v52, 8  ;;  %v5983_v61 = vpop.permute.xlu1 %1441 }
 0x525   :  { %v5963_v13 = vpop.permute.xlu0 %1317 }
 0x528   :  { %1222 = vxpose.xlu1.b32.cont [5/8] (short) (narrow) %v5872_v39, 8 }
 0x529   :  { %v5968_v35 = vpop.permute.xlu0 %1329  ;;  %v5987_v38 = vpop.permute.xlu1 %1271 }
 0x52c   :  { %1223 = vxpose.xlu1.b32.cont [6/8] (short) (narrow) %v5879_v36, 8 }
 0x52e   :  { %v5973_v63 = vpop.permute.xlu0 %1383  ;;  %v5991_v23 = vpop.permute.xlu1 %1391 }
 0x530   :  { %1224 = vxpose.xlu1.b32.cont [7/8] (short) (narrow) %v5870_v11, 8 }
 0x533   :  { %v5976_v26 = vpop.permute.xlu0 %1341  ;;  %v5997_v24 = vpop.permute.xlu1 %1453 }
 0x534   :  { %1225 = vxpose.xlu1.b32.end [8/8] (short) (narrow) %v5876_v18, 8 }
 0x538   :  { %v5981_v62 = vpop.permute.xlu0 %1395  ;;  %v6001_v58 = vpop.permute.xlu1 %1261 }
 0x53c   :  { %v5985_v50 = vpop.permute.xlu0 %1407 }
 0x53d   :  { %v6004_v53 = vpop.permute.xlu1 %1321 }
 0x541   :  { %v5989_v56 = vpop.permute.xlu0 %1281 }
 0x542   :  { %v6012_v32 = vpop.permute.xlu1 %1445 }
 0x546   :  { %v5993_v5 = vpop.permute.xlu0 %1461 }
 0x547   :  { %v6017_v49 = vpop.permute.xlu1 %1286 }
 0x54a   :  { %v5995_v55 = vpop.permute.xlu0 %1465 }
 0x54c   :  { %v6022_v4 = vpop.permute.xlu1 %1403 }
 0x54e   :  { %v5999_v28 = vpop.permute.xlu0 %1469 }
 0x552   :  { %v4346_v6 = vpop.permute.xlu0 %4345  ;;  %4445 = vset.pattern.permute.xlu1 %v7694_v54 }
 0x553   :  { %v4348_v0 = vunpack.i.h.bf16 %v4346_v6  ;;  %v4347_v8 = vunpack.i.l.bf16 %v4346_v6  ;;  %v6024_v6 = vpop.permute.xlu1 %1276 }
 0x555   :  { %v1874_v59 = vpack.c.bf16 %v4348_v0, %v4347_v8 }
 0x556   :  { %v4351_v31 = vpop.permute.xlu0 %4350 }
 0x557   :  { %v4353_v7 = vunpack.i.h.bf16 %v4351_v31  ;;  %v4352_v21 = vunpack.i.l.bf16 %v4351_v31  ;;  %3918 = vmatprep.subr.bf16.mxu1 %v1874_v59  ;;  %v6026_v59 = vpop.permute.xlu1 %1333 }
 0x558   :  { %3919 = vmatpush3.bf16.msra.mxu1 %v1866_v1 }
 0x559   :  { %v1875_v20 = vpack.c.bf16 %v4353_v7, %v4352_v21 }
 0x55a   :  { %v4356_v40 = vpop.permute.xlu0 %4355 }
 0x55b   :  { %v4358_v57 = vunpack.i.h.bf16 %v4356_v40  ;;  %v4357_v14 = vunpack.i.l.bf16 %v4356_v40  ;;  %3920 = vmatprep.subr.bf16.mxu1 %v1875_v20 }
 0x55c   :  { %3921 = vmatpush3.bf16.msra.mxu1 %v1867_v46 }
 0x55d   :  { %v1876_v47 = vpack.c.bf16 %v4358_v57, %v4357_v14 }
 0x55e   :  { %v4361_v45 = vpop.permute.xlu0 %4360 }
 0x55f   :  { %v4363_v37 = vunpack.i.h.bf16 %v4361_v45  ;;  %v4362_v12 = vunpack.i.l.bf16 %v4361_v45  ;;  %3922 = vmatprep.subr.bf16.mxu1 %v1876_v47  ;;  %v6028_v47 = vpop.permute.xlu1 %1457 }
 0x560   :  { %3923 = vmatpush3.bf16.msra.mxu1 %v1868_v9 }
 0x561   :  { %v1877_v25 = vpack.c.bf16 %v4363_v37, %v4362_v12 }
 0x562   :  { %v4366_v42 = vpop.permute.xlu0 %4365 }
 0x563   :  { %v4368_v1 = vunpack.i.h.bf16 %v4366_v42  ;;  %v4367_v2 = vunpack.i.l.bf16 %v4366_v42  ;;  %3924 = vmatprep.subr.bf16.mxu1 %v1877_v25 }
 0x564   :  { %3925 = vmatpush3.bf16.msra.mxu1 %v1869_v3 }
 0x565   :  { %v1878_v48 = vpack.c.bf16 %v4368_v1, %v4367_v2  ;;  %v6030_v1 = vpop.permute.xlu1 %1291 }
 0x566   :  { %v4371_v33 = vpop.permute.xlu0 %4370 }
 0x567   :  { %v4373_v46 = vunpack.i.h.bf16 %v4371_v33  ;;  %v4372_v44 = vunpack.i.l.bf16 %v4371_v33  ;;  %3926 = vmatprep.subr.bf16.mxu1 %v1878_v48 }
 0x569   :  { %v1870_v52 = vpack.c.bf16 %v4373_v46, %v4372_v44  ;;  %v6032_v2 = vpop.permute.xlu1 %1345 }
 0x56a   :  { %v4376_v16 = vpop.permute.xlu0 %4375 }
 0x56b   :  { %v4378_v30 = vunpack.i.h.bf16 %v4376_v16  ;;  %v4377_v9 = vunpack.i.l.bf16 %v4376_v16  ;;  %3927 = vmatpush3.bf16.msra.mxu1 %v1870_v52  ;;  %v7695_v52 = vld [vmem:[#allocation14_spill] sm:$0xff] }
 0x56d   :  { %v1879_v11 = vpack.c.bf16 %v4378_v30, %v4377_v9  ;;  %v6034_v48 = vpop.permute.xlu1 %1337  ;;  %v7696_v30 = vld [vmem:[#allocation15_spill] sm:$0xff] }
 0x56e   :  { %v4381_v39 = vpop.permute.xlu0 %4380 }
 0x56f   :  { %v4383_v18 = vunpack.i.h.bf16 %v4381_v39  ;;  %v4382_v36 = vunpack.i.l.bf16 %v4381_v39  ;;  %3928 = vmatprep.subr.bf16.mxu1 %v1879_v11  ;;  %v7697_v11 = vld [vmem:[#allocation16_spill] sm:$0xff] }
 0x571   :  { %v1871_v60 = vpack.c.bf16 %v4383_v18, %v4382_v36  ;;  %v6036_v33 = vpop.permute.xlu1 %1399  ;;  %v6050_v18 = vstv %s3820_s8  ;;  %v6052_v36 = vstv %s3821_s18  ;;  %s3834_s18 = sld [smem:[#allocation2 + $0x101]] }
 0x572   :  { %v4386_v10 = vpop.permute.xlu0 %4385 }
 0x573   :  { %v4388_v3 = vunpack.i.h.bf16 %v4386_v10  ;;  %v4387_v0 = vunpack.i.l.bf16 %v4386_v10  ;;  %3929 = vmatpush3.bf16.msra.mxu1 %v1871_v60  ;;  %v6054_v60 = vstv %s3822_s2  ;;  %v6056_v10 = vstv %s3823_s19  ;;  %s3835_s2 = sld [smem:[#allocation2 + $0x102]]  ;;  %s3836_s19 = sld [smem:[#allocation2 + $0x103]] }
 0x575   :  { %v1880_v8 = vpack.c.bf16 %v4388_v3, %v4387_v0 }
 0x576   :  { %v4391_v31 = vpop.permute.xlu0 %4390 }
 0x577   :  { %v4393_v7 = vunpack.i.h.bf16 %v4391_v31  ;;  %v4392_v21 = vunpack.i.l.bf16 %v4391_v31  ;;  %3930 = vmatprep.subr.bf16.mxu1 %v1880_v8 }
 0x579   :  { %v1872_v20 = vpack.c.bf16 %v4393_v7, %v4392_v21 }
 0x57a   :  { %v4396_v40 = vpop.permute.xlu0 %4395 }
 0x57b   :  { %v4398_v57 = vunpack.i.h.bf16 %v4396_v40  ;;  %v4397_v14 = vunpack.i.l.bf16 %v4396_v40  ;;  %3931 = vmatpush3.bf16.msra.mxu1 %v1872_v20 }
 0x57d   :  { %v1881_v45 = vpack.c.bf16 %v4398_v57, %v4397_v14 }
 0x57e   :  { %v4401_v37 = vpop.permute.xlu0 %4400 }
 0x57f   :  { %v4403_v12 = vunpack.i.h.bf16 %v4401_v37  ;;  %v4402_v25 = vunpack.i.l.bf16 %v4401_v37  ;;  %3932 = vmatprep.subr.bf16.mxu1 %v1881_v45 }
 0x581   :  { %v1873_v42 = vpack.c.bf16 %v4403_v12, %v4402_v25 }
 0x583   :  { %3933 = vmatpush3.bf16.msra.mxu1 %v1873_v42 }
 0x598   :  { %v1234_v46 = vpop.trf.xlu1 }
 0x599   :  { %v6039_v44 = vrot.slane %v1234_v46, %v5453_v51  ;;  %v6042_v16 = vrot.slane %v1234_v46, %v7695_v52  ;;  %v6045_v9 = vrot.slane %v1234_v46, %v7696_v30  ;;  %v6048_v39 = vrot.slane %v1234_v46, %v7697_v11 }
 0x59b   :  { %v1296_v3 = vsub.f32 %v6039_v44, %v5953_v34  ;;  %v1297_v0 = vsub.f32 %v6039_v44, %v5987_v38  ;;  %v1350_v8 = vsub.f32 %v6042_v16, %v5965_v43  ;;  %v1351_v31 = vsub.f32 %v6042_v16, %v5968_v35 }
 0x59c   :  { %v1412_v7 = vsub.f32 %v6045_v9, %v5971_v41  ;;  %v1413_v21 = vsub.f32 %v6045_v9, %v5991_v23  ;;  %v1474_v20 = vsub.f32 %v6048_v39, %v5956_v27  ;;  %v1475_v34 = vsub.f32 %v6048_v39, %v5997_v24 }
 0x59d   :  { %v1306_v38 = vadd.f32 %v6050_v18, %v1296_v3  ;;  %v1307_v40 = vadd.f32 %v6050_v18, %v1297_v0  ;;  %v1360_v43 = vadd.f32 %v6052_v36, %v1350_v8  ;;  %v1361_v35 = vadd.f32 %v6052_v36, %v1351_v31 }
 0x59e   :  { %v1422_v57 = vadd.f32 %v6054_v60, %v1412_v7  ;;  %v1423_v41 = vadd.f32 %v6054_v60, %v1413_v21  ;;  %v1484_v23 = vadd.f32 %v6056_v10, %v1474_v20  ;;  %v1485_v14 = vadd.f32 %v6056_v10, %v1475_v34 }
 0x59f   :  { %v1368_v27 = vmax.f32 %v1306_v38, %v1360_v43  ;;  %v1369_v45 = vmax.f32 %v1307_v40, %v1361_v35  ;;  %v1294_v24 = vsub.f32 %v6039_v44, %v5959_v19  ;;  %v1295_v37 = vsub.f32 %v6039_v44, %v6001_v58 }
 0x5a0   :  { %v1348_v12 = vsub.f32 %v6042_v16, %v5963_v13  ;;  %v1349_v25 = vsub.f32 %v6042_v16, %v6004_v53  ;;  %v1410_v42 = vsub.f32 %v6045_v9, %v5978_v22  ;;  %v1411_v46 = vsub.f32 %v6045_v9, %v5973_v63 }
 0x5a1   :  { %v1430_v3 = vmax.f32 %v1368_v27, %v1422_v57  ;;  %v1431_v0 = vmax.f32 %v1369_v45, %v1423_v41  ;;  %v1304_v8 = vadd.f32 %v6050_v18, %v1294_v24  ;;  %v1305_v19 = vadd.f32 %v6050_v18, %v1295_v37 }
 0x5a2   :  { %v1358_v58 = vadd.f32 %v6052_v36, %v1348_v12  ;;  %v1359_v31 = vadd.f32 %v6052_v36, %v1349_v25  ;;  %v1420_v13 = vadd.f32 %v6054_v60, %v1410_v42  ;;  %v1421_v53 = vadd.f32 %v6054_v60, %v1411_v46 }
 0x5a3   :  { %v1492_v7 = vmax.f32 %v1430_v3, %v1484_v23  ;;  %v1493_v21 = vmax.f32 %v1431_v0, %v1485_v14  ;;  %v1472_v22 = vsub.f32 %v6048_v39, %v5983_v61  ;;  %v1473_v63 = vsub.f32 %v6048_v39, %v6012_v32 }
 0x5a4   :  { %v1366_v20 = vmax.f32 %v1304_v8, %v1358_v58  ;;  %v1367_v34 = vmax.f32 %v1305_v19, %v1359_v31  ;;  %v1298_v27 = vsub.f32 %v6039_v44, %v6024_v6  ;;  %v1299_v45 = vsub.f32 %v6039_v44, %v5989_v56 }
 0x5a5   :  { %v1500_v24 = vsub.f32 %v1306_v38, %v1492_v7  ;;  %v1501_v37 = vsub.f32 %v1307_v40, %v1493_v21  ;;  %v1540_v12 = vsub.f32 %v1360_v43, %v1492_v7  ;;  %v1541_v25 = vsub.f32 %v1361_v35, %v1493_v21 }
 0x5a6   :  { %v1580_v42 = vsub.f32 %v1422_v57, %v1492_v7  ;;  %v1581_v46 = vsub.f32 %v1423_v41, %v1493_v21  ;;  %v1620_v3 = vsub.f32 %v1484_v23, %v1492_v7  ;;  %v1621_v0 = vsub.f32 %v1485_v14, %v1493_v21 }
 0x5a7   :  { %v1510_v61 = vmul.f32 1.442695, %v1500_v24  ;;  %v1512_v11 = vmul.f32 1.442695, %v1501_v37  ;;  %v1550_v30 = vmul.f32 1.442695, %v1540_v12  ;;  %v1428_v32 = vmax.f32 %v1366_v20, %v1420_v13 }
 0x5a8   :  { %v1552_v52 = vmul.f32 1.442695, %v1541_v25  ;;  %v1590_v51 = vmul.f32 1.442695, %v1580_v42  ;;  %v1592_v54 = vmul.f32 1.442695, %v1581_v46  ;;  %v1429_v29 = vmax.f32 %v1367_v34, %v1421_v53 }
 0x5a9   :  { %4777 = vpow2.f32 %v1510_v61  ;;  %v1630_v6 = vmul.f32 1.442695, %v1620_v3  ;;  %v1632_v17 = vmul.f32 1.442695, %v1621_v0  ;;  %v1482_v56 = vadd.f32 %v6056_v10, %v1472_v22 }
 0x5aa   :  { %4779 = vpow2.f32 %v1512_v11  ;;  %v1483_v38 = vadd.f32 %v6056_v10, %v1473_v63  ;;  %v6111_v40 = vadd.f32 %v6050_v18, %v1298_v27  ;;  %v6114_v43 = vadd.f32 %v6050_v18, %v1299_v45 }
 0x5ab   :  { %4781 = vpow2.f32 %v1550_v30  ;;  %v1490_v35 = vmax.f32 %v1428_v32, %v1482_v56  ;;  %v1352_v57 = vsub.f32 %v6042_v16, %v6026_v59  ;;  %v1353_v41 = vsub.f32 %v6042_v16, %v6034_v48 }
 0x5ac   :  { %4783 = vpow2.f32 %v1552_v52  ;;  %v1491_v23 = vmax.f32 %v1429_v29, %v1483_v38  ;;  %v1414_v11 = vsub.f32 %v6045_v9, %v5981_v62  ;;  %v1415_v14 = vsub.f32 %v6045_v9, %v6036_v33 }
 0x5ad   :  { %4785 = vpow2.f32 %v1590_v51  ;;  %v1498_v7 = vsub.f32 %v1304_v8, %v1490_v35  ;;  %v1538_v21 = vsub.f32 %v1358_v58, %v1490_v35  ;;  %v1578_v22 = vsub.f32 %v1420_v13, %v1490_v35 }
 0x5ae   :  { %4787 = vpow2.f32 %v1592_v54  ;;  %v1499_v30 = vsub.f32 %v1305_v19, %v1491_v23  ;;  %v1539_v63 = vsub.f32 %v1359_v31, %v1491_v23  ;;  %v1579_v20 = vsub.f32 %v1421_v53, %v1491_v23 }
 0x5af   :  { %4789 = vpow2.f32 %v1630_v6  ;;  %v1506_v59 = vmul.f32 1.442695, %v1498_v7  ;;  %v1546_v34 = vmul.f32 1.442695, %v1538_v21  ;;  %v1586_v48 = vmul.f32 1.442695, %v1578_v22 }
 0x5b0   :  { %4791 = vpow2.f32 %v1632_v17  ;;  %v1508_v29 = vmul.f32 1.442695, %v1499_v30  ;;  %v1548_v52 = vmul.f32 1.442695, %v1539_v63  ;;  %v1588_v27 = vmul.f32 1.442695, %v1579_v20 }
 0x5b1   :  { %4793 = vpow2.f32 %v1506_v59  ;;  %v1618_v62 = vsub.f32 %v1482_v56, %v1490_v35  ;;  %v1619_v45 = vsub.f32 %v1483_v38, %v1491_v23  ;;  %v1362_v51 = vadd.f32 %v6052_v36, %v1352_v57  ;;  %v6166_v7 = vld [vmem:[%s7690_s30 + $0x18] sm:$0xff] }
 0x5b2   :  { %4795 = vpow2.f32 %v1508_v29  ;;  %v1363_v33 = vadd.f32 %v6052_v36, %v1353_v41  ;;  %v1424_v54 = vadd.f32 %v6054_v60, %v1414_v11  ;;  %v6128_v8 = vadd.f32 %v6054_v60, %v1415_v14 }
 0x5b3   :  { %v6130_v19 = vpop.eup %4777  ;;  %4797 = vpow2.f32 %v1546_v34  ;;  %v1626_v17 = vmul.f32 1.442695, %v1618_v62  ;;  %v1628_v58 = vmul.f32 1.442695, %v1619_v45  ;;  %v1370_v31 = vmax.f32 %v6111_v40, %v1362_v51 }
 0x5b4   :  { %v6133_v13 = vpop.eup %4779  ;;  %4799 = vpow2.f32 %v1548_v52  ;;  %v1371_v53 = vmax.f32 %v6114_v43, %v1363_v33  ;;  %v1476_v24 = vsub.f32 %v6048_v39, %v6028_v47  ;;  %v1477_v37 = vsub.f32 %v6048_v39, %v5993_v5 }
 0x5b5   :  { %v4782_v12 = vpop.eup %4781  ;;  %4801 = vpow2.f32 %v1586_v48  ;;  %v1432_v25 = vmax.f32 %v1370_v31, %v1424_v54  ;;  %v1300_v47 = vsub.f32 %v6039_v44, %v6017_v49  ;;  %v1301_v41 = vsub.f32 %v6039_v44, %v6030_v1  ;;  %v6158_v49 = vld [vmem:[%s7690_s30 + $0x10] sm:$0xff] }
 0x5b6   :  { %v4784_v42 = vpop.eup %4783  ;;  %v1564_v46 = vadd.f32 %v4782_v12, %v6130_v19  ;;  %4803 = vpow2.f32 %v1588_v27  ;;  %v1433_v3 = vmax.f32 %v1371_v53, %v6128_v8  ;;  %v1486_v32 = vadd.f32 %v6056_v10, %v1476_v24 }
 0x5b7   :  { %v6142_v0 = vpop.eup %4785  ;;  %v1565_v61 = vadd.f32 %v4784_v42, %v6133_v13  ;;  %4805 = vpow2.f32 %v1626_v17  ;;  %v1487_v56 = vadd.f32 %v6056_v10, %v1477_v37  ;;  %v6161_v14 = vmul.f32 %v6158_v49, %v4782_v12 }
 0x5b8   :  { %v6148_v5 = vpop.eup %4787  ;;  %v1604_v6 = vadd.f32 %v6142_v0, %v1564_v46  ;;  %4807 = vpow2.f32 %v1628_v58  ;;  %v1494_v57 = vmax.f32 %v1432_v25, %v1486_v32  ;;  %v6169_v21 = vmul.f32 %v6166_v7, %v4784_v42 }
 0x5b9   :  { %v4790_v38 = vpop.eup %4789  ;;  %v1605_v35 = vadd.f32 %v6148_v5, %v1565_v61  ;;  %v1495_v22 = vmax.f32 %v1433_v3, %v1487_v56  ;;  %v6175_v20 = vadd.f32 %v6050_v18, %v1300_v47  ;;  %v1354_v45 = vsub.f32 %v6042_v16, %v5976_v26 }
 0x5ba   :  { %v4792_v23 = vpop.eup %4791  ;;  %v1644_v11 = vadd.f32 %v4790_v38, %v1604_v6  ;;  %v1502_v30 = vsub.f32 %v6111_v40, %v1494_v57  ;;  %v1542_v63 = vsub.f32 %v1362_v51, %v1494_v57  ;;  %v1582_v29 = vsub.f32 %v1424_v54, %v1494_v57 }
 0x5bb   :  { %v6171_v1 = vpop.eup %4793  ;;  %v1645_v44 = vadd.f32 %v4792_v23, %v1605_v35  ;;  %v1503_v34 = vsub.f32 %v6114_v43, %v1495_v22  ;;  %v1543_v48 = vsub.f32 %v1363_v33, %v1495_v22  ;;  %v1583_v31 = vsub.f32 %v6128_v8, %v1495_v22 }
 0x5bc   :  { %v6177_v59 = vpop.eup %4795  ;;  %4809 = vrcp.f32 %v1644_v11  ;;  %v1514_v27 = vmul.f32 1.442695, %v1502_v30  ;;  %v1554_v62 = vmul.f32 1.442695, %v1542_v63  ;;  %v1594_v33 = vmul.f32 1.442695, %v1582_v29 }
 0x5bd   :  { %v4798_v52 = vpop.eup %4797  ;;  %4811 = vrcp.f32 %v1645_v44  ;;  %v1516_v51 = vmul.f32 1.442695, %v1503_v34  ;;  %v1556_v58 = vmul.f32 1.442695, %v1543_v48  ;;  %v6188_v54 = vadd.f32 %v6050_v18, %v1301_v41 }
 0x5be   :  { %v4800_v17 = vpop.eup %4799  ;;  %v1562_v40 = vadd.f32 %v4798_v52, %v6171_v1  ;;  %4813 = vpow2.f32 %v1514_v27  ;;  %v1622_v26 = vsub.f32 %v1486_v32, %v1494_v57  ;;  %v1355_v12 = vsub.f32 %v6042_v16, %v6032_v2 }
 0x5bf   :  { %v6184_v53 = vpop.eup %4801  ;;  %v1563_v43 = vadd.f32 %v4800_v17, %v6177_v59  ;;  %4815 = vpow2.f32 %v1516_v51  ;;  %v1623_v8 = vsub.f32 %v1487_v56, %v1495_v22  ;;  %v6194_v46 = vadd.f32 %v6052_v36, %v1354_v45 }
 0x5c0   :  { %v4804_v24 = vpop.eup %4803  ;;  %v1602_v37 = vadd.f32 %v6184_v53, %v1562_v40  ;;  %4817 = vpow2.f32 %v1554_v62  ;;  %v1652_v61 = vmul.f32 %v6158_v49, %v4790_v38  ;;  %v1596_v47 = vmul.f32 1.442695, %v1583_v31 }
 0x5c1   :  { %v4806_v25 = vpop.eup %4805  ;;  %v1603_v42 = vadd.f32 %v4804_v24, %v1563_v43  ;;  %4819 = vpow2.f32 %v1556_v58  ;;  %v1634_v35 = vmul.f32 1.442695, %v1622_v26  ;;  %v1636_v32 = vmul.f32 1.442695, %v1623_v8 }
 0x5c2   :  { %v4808_v3 = vpop.eup %4807  ;;  %v1642_v18 = vadd.f32 %v4806_v25, %v1602_v37  ;;  %4821 = vpow2.f32 %v1594_v33  ;;  %v6198_v2 = vadd.f32 %v6052_v36, %v1355_v12  ;;  %v1372_v16 = vmax.f32 %v6175_v20, %v6194_v46 }
 0x5c3   :  { %v1643_v6 = vadd.f32 %v4808_v3, %v1603_v42  ;;  %v1416_v56 = vsub.f32 %v6045_v9, %v6022_v4  ;;  %v1417_v38 = vsub.f32 %v6045_v9, %v5985_v50  ;;  %v1478_v57 = vsub.f32 %v6048_v39, %v5995_v55  ;;  %v5019_v55 = vld [vmem:[%s7690_s30] sm:$0xff] }
 0x5c4   :  { %4823 = vrcp.f32 %v1642_v18  ;;  %v1479_v41 = vsub.f32 %v6048_v39, %v5999_v28  ;;  %v1653_v36 = vmul.f32 %v6166_v7, %v4792_v23  ;;  %v1373_v22 = vmax.f32 %v6188_v54, %v6198_v2  ;;  %v5020_v23 = vld [vmem:[%s7690_s30 + $0x8] sm:$0xff] }
 0x5c5   :  { %4825 = vrcp.f32 %v1643_v6  ;;  %v1426_v4 = vadd.f32 %v6054_v60, %v1416_v56  ;;  %v1570_v9 = vmul.f32 %v5019_v55, %v4798_v52  ;;  %v1427_v28 = vadd.f32 %v6054_v60, %v1417_v38 }
 0x5c6   :  { %v6210_v11 = vpop.eup %4809  ;;  %4827 = vpow2.f32 %v1596_v47  ;;  %v1571_v30 = vmul.f32 %v5020_v23, %v4800_v17  ;;  %v1650_v48 = vmul.f32 %v5019_v55, %v4806_v25  ;;  %v1488_v27 = vadd.f32 %v6056_v10, %v1478_v57 }
 0x5c7   :  { %v6216_v44 = vpop.eup %4811  ;;  %v1692_v50 = vmul.f32 %v6210_v11, %v1652_v61  ;;  %4829 = vpow2.f32 %v1634_v35  ;;  %v1434_v63 = vmax.f32 %v1372_v16, %v1426_v4  ;;  %v1435_v29 = vmax.f32 %v1373_v22, %v1427_v28 }
 0x5c8   :  { %v1693_v39 = vmul.f32 %v6216_v44, %v1653_v36  ;;  %4831 = vpow2.f32 %v1636_v32  ;;  %v6227_v34 = vpop.eup %4813  ;;  %v1489_v52 = vadd.f32 %v6056_v10, %v1479_v41  ;;  %v1651_v45 = vmul.f32 %v5020_v23, %v4808_v3 }
 0x5c9   :  { %v6231_v62 = vpop.eup %4815  ;;  %v6235_v40 = vmul.f32 %v6210_v11, %v6161_v14  ;;  %v1530_v17 = vmul.f32 %v5019_v55, %v6171_v1  ;;  %v6242_v58 = vmul.f32 %v6216_v44, %v6169_v21  ;;  %v1496_v31 = vmax.f32 %v1434_v63, %v1488_v27 }
 0x5ca   :  { %v4414_v60 = vpack.i.bf16 %v1693_v39, %v1692_v50  ;;  %v6238_v51 = vpop.eup %4817  ;;  %v1497_v43 = vmax.f32 %v1435_v29, %v1489_v52  ;;  %v1531_v10 = vmul.f32 %v5020_v23, %v6177_v59  ;;  %v1610_v37 = vmul.f32 %v5019_v55, %v6184_v53 }
 0x5cb   :  { %v6245_v33 = vpop.eup %4819  ;;  %v1566_v14 = vadd.f32 %v6238_v51, %v6227_v34  ;;  %v1611_v1 = vmul.f32 %v5020_v23, %v4804_v24  ;;  %v1612_v26 = vmul.f32 %v6158_v49, %v6142_v0  ;;  %v1504_v25 = vsub.f32 %v6175_v20, %v1496_v31 }
 0x5cc   :  { %4415 = vrot.lane.b32.xlu1 %v4414_v60, %s5060_s3  ;;  %v4822_v12 = vpop.eup %4821  ;;  %v1567_v21 = vadd.f32 %v6245_v33, %v6231_v62  ;;  %v1505_v59 = vsub.f32 %v6188_v54, %v1497_v43  ;;  %v1613_v42 = vmul.f32 %v6166_v7, %v6148_v5  ;;  %v1544_v61 = vsub.f32 %v6194_v46, %v1496_v31 }
 0x5cd   :  { %v1606_v3 = vadd.f32 %v4822_v12, %v1566_v14  ;;  %v1545_v53 = vsub.f32 %v6198_v2, %v1497_v43  ;;  %v1584_v24 = vsub.f32 %v1426_v4, %v1496_v31  ;;  %v1518_v6 = vmul.f32 1.442695, %v1504_v25 }
 0x5ce   :  { %v4824_v8 = vpop.eup %4823  ;;  %v1520_v35 = vmul.f32 1.442695, %v1505_v59  ;;  %v1532_v54 = vmul.f32 %v6158_v49, %v6130_v19  ;;  %v1533_v5 = vmul.f32 %v6166_v7, %v6133_v13  ;;  %v1558_v46 = vmul.f32 1.442695, %v1544_v61 }
 0x5cf   :  { %v4826_v18 = vpop.eup %4825  ;;  %v1690_v0 = vmul.f32 %v4824_v8, %v1650_v48  ;;  %v1674_v47 = vmul.f32 %v4824_v8, %v1570_v9  ;;  %v1560_v57 = vmul.f32 1.442695, %v1545_v53  ;;  %v1585_v2 = vsub.f32 %v1427_v28, %v1497_v43 }
 0x5d0   :  { %v4828_v32 = vpop.eup %4827  ;;  %v1691_v16 = vmul.f32 %v4826_v18, %v1651_v45  ;;  %v1675_v20 = vmul.f32 %v4826_v18, %v1571_v30  ;;  %4833 = vpow2.f32 %v1518_v6  ;;  %v1598_v4 = vmul.f32 1.442695, %v1584_v24 }
 0x5d1   :  { %v4830_v56 = vpop.eup %4829  ;;  %v1607_v38 = vadd.f32 %v4828_v32, %v1567_v21  ;;  %4835 = vpow2.f32 %v1520_v35  ;;  %v1600_v9 = vmul.f32 1.442695, %v1585_v2  ;;  %v1624_v19 = vsub.f32 %v1488_v27, %v1496_v31 }
 0x5d2   :  { %v4832_v41 = vpop.eup %4831  ;;  %v4404_v36 = vpack.i.bf16 %v1691_v16, %v1690_v0  ;;  %v1646_v22 = vadd.f32 %v4830_v56, %v1606_v3  ;;  %v4409_v50 = vpack.i.bf16 %v1675_v20, %v1674_v47  ;;  %v1625_v49 = vsub.f32 %v1489_v52, %v1497_v43 }
 0x5d3   :  { %v1647_v55 = vadd.f32 %v4832_v41, %v1607_v38  ;;  %v6266_v13 = vmul.f32 %v4824_v8, %v1530_v17  ;;  %v6268_v7 = vmul.f32 %v4826_v18, %v1531_v10  ;;  %v6270_v28 = vmul.f32 %v4824_v8, %v1610_v37  ;;  %v5022_v10 = vld [vmem:[%s7690_s30 + $0x28] sm:$0xff] }
 0x5d4   :  { %4405 = vrot.lane.b32.xlu0 %v4404_v36, %s5060_s3  ;;  %4837 = vrcp.f32 %v1646_v22  ;;  %v6272_v39 = vmul.f32 %v4826_v18, %v1611_v1  ;;  %v1638_v23 = vmul.f32 1.442695, %v1624_v19  ;;  %v1640_v30 = vmul.f32 1.442695, %v1625_v49 }
 0x5d5   :  { %4839 = vrcp.f32 %v1647_v55  ;;  %v6275_v63 = vmul.f32 %v6210_v11, %v1612_v26  ;;  %v6278_v48 = vmul.f32 %v6216_v44, %v1613_v42  ;;  %v6281_v29 = vmul.f32 %v6210_v11, %v1532_v54  ;;  %v5021_v11 = vld [vmem:[%s7690_s30 + $0x20] sm:$0xff]  ;;  %v5023_v54 = vld [vmem:[%s7690_s30 + $0x30] sm:$0xff] }
 0x5d6   :  { %4841 = vpow2.f32 %v1558_v46  ;;  %v6284_v27 = vmul.f32 %v6216_v44, %v1533_v5  ;;  %v4419_v52 = vpack.i.bf16 %v6242_v58, %v6235_v40  ;;  %v1654_v17 = vmul.f32 %v5021_v11, %v4830_v56 }
 0x5d7   :  { %4843 = vpow2.f32 %v1560_v57  ;;  %v1614_v44 = vmul.f32 %v5021_v11, %v4822_v12  ;;  %v1534_v31 = vmul.f32 %v5021_v11, %v6227_v34  ;;  %v1655_v40 = vmul.f32 %v5022_v10, %v4832_v41  ;;  %v5024_v57 = vld [vmem:[%s7690_s30 + $0x38] sm:$0xff] }
 0x5d8   :  { %4410 = vrot.lane.b32.xlu0 %v4409_v50, %s5060_s3  ;;  %4845 = vpow2.f32 %v1598_v4  ;;  %v1615_v58 = vmul.f32 %v5022_v10, %v4828_v32  ;;  %v1535_v14 = vmul.f32 %v5022_v10, %v6231_v62  ;;  %v1574_v26 = vmul.f32 %v5021_v11, %v6238_v51 }
 0x5d9   :  { %4847 = vpow2.f32 %v1600_v9  ;;  %v1575_v34 = vmul.f32 %v5022_v10, %v6245_v33 }
 0x5da   :  { %4849 = vpow2.f32 %v1638_v23  ;;  %v4834_v60 = vpop.eup %4833 }
 0x5db   :  { %4851 = vpow2.f32 %v1640_v30  ;;  %v4836_v45 = vpop.eup %4835  ;;  %v1536_v38 = vmul.f32 %v5023_v54, %v4834_v60 }
 0x5dc   :  { %4420 = vrot.lane.b32.xlu0 %v4419_v52, %s5060_s3  ;;  %v1537_v36 = vmul.f32 %v5024_v57, %v4836_v45 }
 0x5de   :  { %v4838_v43 = vpop.eup %4837 }
 0x5df   :  { %v4840_v37 = vpop.eup %4839  ;;  %v1694_v1 = vmul.f32 %v4838_v43, %v1654_v17  ;;  %v6299_v21 = vmul.f32 %v4838_v43, %v1614_v44  ;;  %v6301_v25 = vmul.f32 %v4838_v43, %v1534_v31  ;;  %v1678_v24 = vmul.f32 %v4838_v43, %v1574_v26 }
 0x5e0   :  { %v4842_v12 = vpop.eup %4841  ;;  %v1695_v59 = vmul.f32 %v4840_v37, %v1655_v40  ;;  %v6304_v42 = vmul.f32 %v4840_v37, %v1615_v58  ;;  %v6306_v8 = vmul.f32 %v4840_v37, %v1535_v14  ;;  %v1679_v18 = vmul.f32 %v4840_v37, %v1575_v34 }
 0x5e1   :  { %v4844_v3 = vpop.eup %4843  ;;  %v1568_v61 = vadd.f32 %v4842_v12, %v4834_v60  ;;  %v1576_v50 = vmul.f32 %v5023_v54, %v4842_v12 }
 0x5e2   :  { %v4846_v53 = vpop.eup %4845  ;;  %v4424_v62 = vpack.i.bf16 %v1695_v59, %v1694_v1  ;;  %v1569_v0 = vadd.f32 %v4844_v3, %v4836_v45  ;;  %v4429_v33 = vpack.i.bf16 %v1679_v18, %v1678_v24  ;;  %v1577_v49 = vmul.f32 %v5024_v57, %v4844_v3 }
 0x5e3   :  { %v4848_v51 = vpop.eup %4847  ;;  %v1608_v47 = vadd.f32 %v4846_v53, %v1568_v61  ;;  %v1616_v56 = vmul.f32 %v5023_v54, %v4846_v53 }
 0x5e4   :  { %v4850_v6 = vpop.eup %4849  ;;  %4425 = vrot.lane.b32.xlu0 %v4424_v62, %s5060_s3  ;;  %v1609_v35 = vadd.f32 %v4848_v51, %v1569_v0  ;;  %v1617_v41 = vmul.f32 %v5024_v57, %v4848_v51 }
 0x5e5   :  { %v4852_v32 = vpop.eup %4851  ;;  %v1648_v16 = vadd.f32 %v4850_v6, %v1608_v47  ;;  %v1656_v5 = vmul.f32 %v5023_v54, %v4850_v6 }
 0x5e6   :  { %v1649_v20 = vadd.f32 %v4852_v32, %v1609_v35  ;;  %v1657_v2 = vmul.f32 %v5024_v57, %v4852_v32 }
 0x5e7   :  { %4853 = vrcp.f32 %v1648_v16 }
 0x5e8   :  { %4430 = vrot.lane.b32.xlu0 %v4429_v33, %s5060_s3  ;;  %4855 = vrcp.f32 %v1649_v20 }
 0x5f1   :  { %v4854_v46 = vpop.eup %4853 }
 0x5f2   :  { %v4856_v22 = vpop.eup %4855  ;;  %v1696_v4 = vmul.f32 %v4854_v46, %v1656_v5  ;;  %v1688_v55 = vmul.f32 %v4854_v46, %v1616_v56  ;;  %v6316_v9 = vmul.f32 %v4854_v46, %v1536_v38  ;;  %v1680_v60 = vmul.f32 %v4854_v46, %v1576_v50  ;;  %v1973_v50 = vld [vmem:[%s7628_s11 + $0x18] sm:$0xff] }
 0x5f3   :  { %v1697_v19 = vmul.f32 %v4856_v22, %v1657_v2  ;;  %v1689_v23 = vmul.f32 %v4856_v22, %v1617_v41  ;;  %v1673_v30 = vmul.f32 %v4856_v22, %v1537_v36  ;;  %v1681_v11 = vmul.f32 %v4856_v22, %v1577_v49  ;;  %v1970_v41 = vld [vmem:[%s7628_s11] sm:$0xff]  ;;  %v1971_v36 = vld [vmem:[%s7628_s11 + $0x8] sm:$0xff] }
 0x5f4   :  { %v1982_v22 = vpack.c.bf16 %v1971_v36, %v1970_v41 }
 0x5f5   :  { %v4434_v52 = vpack.i.bf16 %v1697_v19, %v1696_v4  ;;  %v4439_v17 = vpack.i.bf16 %v1681_v11, %v1680_v60  ;;  %v1972_v4 = vld [vmem:[%s7628_s11 + $0x10] sm:$0xff]  ;;  %v1975_v19 = vld [vmem:[%s7630_s13 + $0x8] sm:$0xff] }
 0x5f6   :  { %4116 = vmatprep.subr.bf16.mxu0 %v1982_v22 }
 0x5f7   :  { %4435 = vrot.lane.b32.xlu0 %v4434_v52, %s5060_s3  ;;  %4117 = vmatpush3.bf16.msra.mxu0 %v1982_v22  ;;  %v6375_v52 = vld [vmem:[%s7624_s7] ss:$0 sm:$0xff] }
 0x5fb   :  { %4440 = vrot.lane.b32.xlu0 %v4439_v17, %s5060_s3 }
 0x63e   :  { %v4416_v44 = vpop.permute.xlu1 %4415 }
 0x63f   :  { %v4418_v45 = vunpack.i.h.bf16 %v4416_v44  ;;  %v4417_v31 = vunpack.i.l.bf16 %v4416_v44 }
 0x641   :  { %v1772_v43 = vsel %vm858_vm1, %v6275_v63, %v4417_v31  ;;  %v1773_v10 = vsel %vm858_vm1, %v6278_v48, %v4418_v45  ;;  %v7698_v45 = vld [vmem:[#allocation6_spill] sm:$0xff] }
 0x642   :  { %v1861_v40 = vpack.c.bf16 %v1773_v10, %v1772_v43 }
 0x646   :  { %v4406_v58 = vpop.permute.xlu0 %4405 }
 0x647   :  { %v4408_v14 = vunpack.i.h.bf16 %v4406_v58  ;;  %v4407_v37 = vunpack.i.l.bf16 %v4406_v58 }
 0x649   :  { %v1770_v1 = vsel %vm858_vm1, %v6270_v28, %v4407_v37  ;;  %v1771_v26 = vsel %vm858_vm1, %v6272_v39, %v4408_v14 }
 0x64a   :  { %v4411_v12 = vpop.permute.xlu0 %4410  ;;  %v1859_v59 = vpack.c.bf16 %v1771_v26, %v1770_v1 }
 0x64b   :  { %v4413_v34 = vunpack.i.h.bf16 %v4411_v12  ;;  %v4412_v3 = vunpack.i.l.bf16 %v4411_v12 }
 0x64c   :  { %1921 = vmatprep.mubr.bf16.mxu1 %v1859_v59 }
 0x64d   :  { %v1763_v63 = vsel %vm858_vm1, %v6268_v7, %v4413_v34  ;;  %v1762_v48 = vsel %vm858_vm1, %v6266_v13, %v4412_v3 }
 0x64e   :  { %v1858_v61 = vpack.c.bf16 %v1763_v63, %v1762_v48  ;;  %v4421_v53 = vpop.permute.xlu0 %4420 }
 0x64f   :  { %v4423_v62 = vunpack.i.h.bf16 %v4421_v53  ;;  %v4422_v24 = vunpack.i.l.bf16 %v4421_v53 }
 0x650   :  { %1922 = vmatmul.mubr.bf16.vlgmr.msra.gmra.mrb[24].mxu1 %v1858_v61  ;;  %v7702_v61 = vld [vmem:[#allocation5_spill] sm:$0xff] }
 0x651   :  { %1929 = vmatprep.mubr.bf16.mxu1 %v1861_v40  ;;  %v1764_v28 = vsel %vm858_vm1, %v6281_v29, %v4422_v24  ;;  %v1765_v39 = vsel %vm858_vm1, %v6284_v27, %v4423_v62  ;;  %v7699_v40 = vld [vmem:[#allocation8_spill] sm:$0xff] }
 0x652   :  { %v1860_v18 = vpack.c.bf16 %v1765_v39, %v1764_v28  ;;  %v7703_v39 = vld [vmem:[#allocation7_spill] sm:$0xff] }
 0x656   :  { %v4426_v0 = vpop.permute.xlu0 %4425 }
 0x657   :  { %v4428_v51 = vunpack.i.h.bf16 %v4426_v0  ;;  %v4427_v47 = vunpack.i.l.bf16 %v4426_v0 }
 0x658   :  { %1930 = vmatmul.mubr.bf16.gmra.mrb[28].mxu1 %v1860_v18 }
 0x659   :  { %v1774_v13 = vsel %vm858_vm1, %v6299_v21, %v4427_v47  ;;  %v1775_v7 = vsel %vm858_vm1, %v6304_v42, %v4428_v51 }
 0x65a   :  { %v4431_v6 = vpop.permute.xlu0 %4430  ;;  %v1863_v35 = vpack.c.bf16 %v1775_v7, %v1774_v13 }
 0x65b   :  { %v4433_v32 = vunpack.i.h.bf16 %v4431_v6  ;;  %v4432_v16 = vunpack.i.l.bf16 %v4431_v6  ;;  %v1976_v6 = vld [vmem:[%s7630_s13 + $0x10] sm:$0xff] }
 0x65c   :  { %1937 = vmatprep.mubr.bf16.mxu1 %v1863_v35  ;;  %v1977_v35 = vld [vmem:[%s7630_s13 + $0x18] sm:$0xff] }
 0x65d   :  { %v1766_v29 = vsel %vm858_vm1, %v6301_v25, %v4432_v16  ;;  %v1767_v27 = vsel %vm858_vm1, %v6306_v8, %v4433_v32 }
 0x65e   :  { %v1862_v33 = vpack.c.bf16 %v1767_v27, %v1766_v29 }
 0x660   :  { %1938 = vmatmul.mubr.bf16.gmra.mrb[32].mxu1 %v1862_v33  ;;  %v7706_v33 = vld [vmem:[#allocation10_spill] sm:$0xff] }
 0x669   :  { %v4436_v20 = vpop.permute.xlu0 %4435 }
 0x66a   :  { %v4438_v54 = vunpack.i.h.bf16 %v4436_v20  ;;  %v4437_v5 = vunpack.i.l.bf16 %v4436_v20 }
 0x66c   :  { %v1776_v21 = vsel %vm858_vm1, %v1688_v55, %v4437_v5  ;;  %v1777_v42 = vsel %vm858_vm1, %v1689_v23, %v4438_v54  ;;  %v1983_v55 = vpack.c.bf16 %v1973_v50, %v1972_v4 }
 0x66d   :  { %v4441_v56 = vpop.permute.xlu0 %4440  ;;  %v1865_v38 = vpack.c.bf16 %v1777_v42, %v1776_v21 }
 0x66e   :  { %v4443_v46 = vunpack.i.h.bf16 %v4441_v56  ;;  %v4442_v57 = vunpack.i.l.bf16 %v4441_v56  ;;  %4118 = vmatprep.subr.bf16.mxu0 %v1983_v55  ;;  %v2062_v56 = vpack.c.bf16 %v1977_v35, %v1976_v6  ;;  %v7714_v35 = vmov 3  }
 0x66f   :  { %1945 = vmatprep.mubr.bf16.mxu1 %v1865_v38  ;;  %4119 = vmatpush3.bf16.msra.mxu0 %v1983_v55  ;;  %v7707_v38 = vld [vmem:[#allocation12_spill] sm:$0xff] }
 0x670   :  { %v1768_v25 = vsel %vm858_vm1, %v6316_v9, %v4442_v57  ;;  %v1769_v2 = vsel %vm858_vm1, %v1673_v30, %v4443_v46  ;;  %v1974_v9 = vld [vmem:[%s7630_s13] sm:$0xff]  ;;  %s3833_s13 = sld [smem:[#allocation2 + $0x100]] }
 0x671   :  { %v1864_v8 = vpack.c.bf16 %v1769_v2, %v1768_v25  ;;  %v2061_v49 = vpack.c.bf16 %v1975_v19, %v1974_v9  ;;  %v6370_v30 = vld [vmem:[%s7627_s10] ss:$0 sm:$0xff] }
 0x672   :  { %v148_v31 = vadd.f32 %v6370_v30, %v7698_v45  ;;  %v151_v58 = vadd.f32 %v6370_v30, %v7699_v40  ;;  %v156_v53 = vadd.f32 %v7702_v61, %v6370_v30  ;;  %v159_v18 = vadd.f32 %v7703_v39, %v6370_v30  ;;  %v7710_v19 = vld [vmem:[#allocation9_spill] sm:$0xff] }
 0x673   :  { %1946 = vmatmul.mubr.bf16.gmra.mrb[36].mxu1 %v1864_v8  ;;  %4128 = vmatprep.subr.bf16.mxu0 %v2061_v49  ;;  %v164_v20 = vadd.f32 %v6370_v30, %v7706_v33  ;;  %v167_v46 = vadd.f32 %v6370_v30, %v7707_v38  ;;  %v7715_v33 = vmov 0  }
 0x723   :  { %v3934_v23 = vpop.f32.mrb[24].mxu1 }
 0x724   :  { %v3935_v60 = vpop.f32.mrb[25].mxu1 }
 0x725   :  { %v3936_v11 = vadd.f32 %v3935_v60, %v3934_v23  ;;  %v3937_v17 = vpop.f32.mrb[26].mxu1 }
 0x726   :  { %v3938_v44 = vpop.f32.mrb[27].mxu1 }
 0x727   :  { %v1924_v43 = vadd.f32 %v3936_v11, %v6375_v52  ;;  %v3939_v10 = vadd.f32 %v3938_v44, %v3937_v17  ;;  %v7711_v11 = vld [vmem:[#allocation11_spill] sm:$0xff] }
 0x728   :  { %v175_v17 = vadd.f32 %v7711_v11, %v6370_v30 }
 0x729   :  { %v6382_v14 = vadd.f32 %v1924_v43, %v148_v31  ;;  %v1927_v37 = vadd.f32 %v3939_v10, %v6375_v52 }
 0x72b   :  { %7700 = vst [vmem:[#allocation6_spill] sm:$0xff] %v6382_v14  ;;  %v6385_v1 = vadd.f32 %v1927_v37, %v151_v58  ;;  %v3940_v26 = vpop.f32.mrb[28].mxu1  ;;  %v7659_v59 = vmax.f32 %v6382_v14, 0.0 }
 0x72c   :  { %v3941_v12 = vpop.f32.mrb[29].mxu1 }
 0x72d   :  { %7701 = vst [vmem:[#allocation8_spill] sm:$0xff] %v6385_v1  ;;  %v7658_v34 = vmax.f32 %v6385_v1, 0.0  ;;  %v3942_v3 = vadd.f32 %v3941_v12, %v3940_v26  ;;  %v3943_v63 = vpop.f32.mrb[30].mxu1 }
 0x72e   :  { %v3944_v48 = vpop.f32.mrb[31].mxu1 }
 0x72f   :  { %v1978_v62 = vpack.c.bf16 %v7658_v34, %v7659_v59  ;;  %v1932_v24 = vadd.f32 %v3942_v3, %v6375_v52  ;;  %v3945_v28 = vadd.f32 %v3944_v48, %v3943_v63 }
 0x731   :  { %v6398_v0 = vadd.f32 %v1932_v24, %v156_v53  ;;  %v1935_v51 = vadd.f32 %v3945_v28, %v6375_v52  ;;  %4120 = vmatprep.mubr.msk.bf16.mxu0 %vm1073_vm2, %v1978_v62 }
 0x733   :  { %7704 = vst [vmem:[#allocation5_spill] sm:$0xff] %v6398_v0  ;;  %v6402_v47 = vadd.f32 %v1935_v51, %v159_v18  ;;  %v3946_v13 = vpop.f32.mrb[32].mxu1  ;;  %v7663_v32 = vmax.f32 %v6398_v0, 0.0 }
 0x734   :  { %v3947_v7 = vpop.f32.mrb[33].mxu1 }
 0x735   :  { %7705 = vst [vmem:[#allocation7_spill] sm:$0xff] %v6402_v47  ;;  %v7662_v16 = vmax.f32 %v6402_v47, 0.0  ;;  %v3948_v29 = vadd.f32 %v3947_v7, %v3946_v13  ;;  %v3949_v27 = vpop.f32.mrb[34].mxu1 }
 0x736   :  { %v3950_v54 = vpop.f32.mrb[35].mxu1 }
 0x737   :  { %v1979_v5 = vpack.c.bf16 %v7662_v16, %v7663_v32  ;;  %v1940_v21 = vadd.f32 %v3948_v29, %v6375_v52  ;;  %v3951_v42 = vadd.f32 %v3950_v54, %v3949_v27 }
 0x739   :  { %v6421_v57 = vadd.f32 %v1940_v21, %v164_v20  ;;  %v1943_v25 = vadd.f32 %v3951_v42, %v6375_v52  ;;  %4121 = vmatmul.mubr.msk.bf16.vlgmr.msra.gmra.mrb[32].mxu0 %vm1073_vm2, %v1979_v5 }
 0x73a   :  { %4129 = vmatpush3.bf16.msra.mxu0 %v2061_v49  ;;  %v172_v49 = vadd.f32 %v7710_v19, %v6370_v30 }
 0x73b   :  { %7708 = vst [vmem:[#allocation10_spill] sm:$0xff] %v6421_v57  ;;  %v6425_v2 = vadd.f32 %v1943_v25, %v167_v46  ;;  %4130 = vmatprep.subr.bf16.mxu0 %v2062_v56  ;;  %v7661_v8 = vmax.f32 %v6421_v57, 0.0 }
 0x73d   :  { %7709 = vst [vmem:[#allocation12_spill] sm:$0xff] %v6425_v2  ;;  %v7660_v41 = vmax.f32 %v6425_v2, 0.0 }
 0x73e   :  { %4131 = vmatpush3.bf16.msra.mxu0 %v2062_v56 }
 0x73f   :  { %v1980_v36 = vpack.c.bf16 %v7660_v41, %v7661_v8 }
 0x741   :  { %4124 = vmatprep.mubr.msk.bf16.mxu0 %vm1073_vm2, %v1980_v36 }
 0x746   :  { %v3952_v22 = vpop.f32.mrb[36].mxu1 }
 0x747   :  { %v3953_v4 = vpop.f32.mrb[37].mxu1 }
 0x748   :  { %v3954_v50 = vadd.f32 %v3953_v4, %v3952_v22  ;;  %v3955_v55 = vpop.f32.mrb[38].mxu1 }
 0x749   :  { %v3956_v9 = vpop.f32.mrb[39].mxu1 }
 0x74a   :  { %v1948_v23 = vadd.f32 %v3954_v50, %v6375_v52  ;;  %v3957_v60 = vadd.f32 %v3956_v9, %v3955_v55 }
 0x74c   :  { %v6439_v44 = vadd.f32 %v1948_v23, %v172_v49  ;;  %v1951_v45 = vadd.f32 %v3957_v60, %v6375_v52 }
 0x74e   :  { %7712 = vst [vmem:[#allocation9_spill] sm:$0xff] %v6439_v44  ;;  %v6442_v31 = vadd.f32 %v1951_v45, %v175_v17  ;;  %v7657_v43 = vmax.f32 %v6439_v44, 0.0 }
 0x750   :  { %7713 = vst [vmem:[#allocation11_spill] sm:$0xff] %v6442_v31  ;;  %v7656_v10 = vmax.f32 %v6442_v31, 0.0 }
 0x752   :  { %v1981_v40 = vpack.c.bf16 %v7656_v10, %v7657_v43 }
 0x754   :  { %4125 = vmatmul.mubr.msk.bf16.gmra.mrb[36].mxu0 %vm1073_vm2, %v1981_v40 }
 0x755   :  { %4132 = vmatprep.mubr.msk.bf16.mxu0 %vm1073_vm2, %v1978_v62 }
 0x75c   :  { %4133 = vmatmul.mubr.msk.bf16.vlgmr.msra.gmra.mrb[40].mxu0 %vm1073_vm2, %v1979_v5  ;;  %v7716_v5 = vmov 1  }
 0x75d   :  { %4136 = vmatprep.mubr.msk.bf16.mxu0 %vm1073_vm2, %v1980_v36 }
 0x764   :  { %4137 = vmatmul.mubr.msk.bf16.gmra.mrb[44].mxu0 %vm1073_vm2, %v1981_v40 }
 0x80c   :  { %v6455_v30 = vpop.f32.mrb[32].mxu0 }
 0x80d   :  { %v6457_v52 = vpop.f32.mrb[33].mxu0 }
 0x80e   :  { %v6459_v58 = vpop.f32.mrb[34].mxu0 }
 0x80f   :  { %v6463_v37 = vpack.i.bf16 %v6459_v58, %v6455_v30  ;;  %v2777_v26 = vpack.c.bf16 %v6459_v58, %v6455_v30  ;;  %v6467_v12 = vpop.f32.mrb[35].mxu0 }
 0x810   :  { %v6471_v3 = vpack.i.bf16 %v6467_v12, %v6457_v52  ;;  %v2776_v63 = vpack.c.bf16 %v6467_v12, %v6457_v52 }
 0x827   :  { %v6475_v48 = vpop.f32.mrb[36].mxu0 }
 0x828   :  { %v6477_v61 = vpop.f32.mrb[37].mxu0 }
 0x829   :  { %v6479_v53 = vpop.f32.mrb[38].mxu0 }
 0x82a   :  { %v6483_v62 = vpack.i.bf16 %v6479_v53, %v6475_v48  ;;  %v2779_v24 = vpack.c.bf16 %v6479_v53, %v6475_v48  ;;  %v6487_v28 = vpop.f32.mrb[39].mxu0 }
 0x82b   :  { %v6491_v39 = vpack.i.bf16 %v6487_v28, %v6477_v61  ;;  %v2778_v18 = vpack.c.bf16 %v6487_v28, %v6477_v61 }
 0x82f   :  { %v6495_v51 = vpop.f32.mrb[40].mxu0 }
 0x830   :  { %2235 = vperm.xlu1 %4445, %v6495_v51   ;;  %2176 = vperm.xlu0 %4444, %v6495_v51   ;;  %v6499_v13 = vpop.f32.mrb[41].mxu0 }
 0x831   :  { %v6501_v7 = vpop.f32.mrb[42].mxu0 }
 0x832   :  { %v6503_v6 = vpop.f32.mrb[43].mxu0 }
 0x834   :  { %4446 = vset.pattern.permute.xlu1 %v7691_v15  ;;  %4447 = vset.pattern.permute.xlu0 %v7714_v35 }
 0x835   :  { %2297 = vperm.xlu1 %4446, %v6495_v51   ;;  %2359 = vperm.xlu0 %4447, %v6495_v51  }
 0x837   :  { %v6509_v29 = vpop.f32.mrb[44].mxu0 }
 0x838   :  { %v6511_v27 = vpop.f32.mrb[45].mxu0 }
 0x839   :  { %4448 = vset.pattern.permute.xlu0 %v7715_v33  ;;  %2289 = vperm.xlu1 %4446, %v6499_v13   ;;  %v6515_v20 = vpop.f32.mrb[46].mxu0 }
 0x83a   :  { %2166 = vperm.xlu0 %4448, %v6499_v13   ;;  %v6518_v54 = vpop.f32.mrb[47].mxu0 }
 0x83d   :  { %4450 = vset.pattern.permute.xlu1 %v7714_v35 }
 0x83e   :  { %2351 = vperm.xlu1 %4450, %v6499_v13   ;;  %4449 = vset.pattern.permute.xlu0 %v7716_v5 }
 0x83f   :  { %2227 = vperm.xlu0 %4449, %v6499_v13  }
 0x842   :  { %4451 = vset.pattern.permute.xlu1 %v7715_v33 }
 0x843   :  { %2239 = vperm.xlu0 %4449, %v6501_v7   ;;  %2181 = vperm.xlu1 %4451, %v6501_v7  }
 0x847   :  { %4456 = vset.pattern.permute.xlu0 %v7691_v15  ;;  %4452 = vset.pattern.permute.xlu1 %v7691_v15 }
 0x848   :  { %2301 = vperm.xlu1 %4452, %v6501_v7   ;;  %2293 = vperm.xlu0 %4456, %v6503_v6  }
 0x84c   :  { %4453 = vset.pattern.permute.xlu1 %v7714_v35  ;;  %4459 = vset.pattern.permute.xlu0 %v7716_v5 }
 0x84d   :  { %2363 = vperm.xlu1 %4453, %v6501_v7   ;;  %2251 = vperm.xlu0 %4459, %v6509_v29  }
 0x851   :  { %4454 = vset.pattern.permute.xlu1 %v7715_v33  ;;  %4463 = vset.pattern.permute.xlu0 %v7691_v15 }
 0x852   :  { %2171 = vperm.xlu1 %4454, %v6503_v6   ;;  %2305 = vperm.xlu0 %4463, %v6511_v27  }
 0x856   :  { %4455 = vset.pattern.permute.xlu1 %v7716_v5  ;;  %2317 = vperm.xlu0 %4463, %v6515_v20  }
 0x857   :  { %2231 = vperm.xlu1 %4455, %v6503_v6  }
 0x85a   :  { %4467 = vset.pattern.permute.xlu0 %v7715_v33 }
 0x85b   :  { %4457 = vset.pattern.permute.xlu1 %v7714_v35  ;;  %2191 = vperm.xlu0 %4467, %v6518_v54  }
 0x85c   :  { %2355 = vperm.xlu1 %4457, %v6503_v6  }
 0x85f   :  { %4469 = vset.pattern.permute.xlu0 %v7714_v35 }
 0x860   :  { %4458 = vset.pattern.permute.xlu1 %v7715_v33  ;;  %2371 = vperm.xlu0 %4469, %v6518_v54  }
 0x861   :  { %2196 = vperm.xlu1 %4458, %v6509_v29  }
 0x864   :  { %2375 = vperm.xlu0 %4469, %v6509_v29  }
 0x865   :  { %4460 = vset.pattern.permute.xlu1 %v7691_v15 }
 0x866   :  { %2313 = vperm.xlu1 %4460, %v6509_v29  }
 0x868   :  { %2379 = vperm.xlu0 %4469, %v6515_v20  }
 0x86a   :  { %4461 = vset.pattern.permute.xlu1 %v7715_v33 }
 0x86b   :  { %2186 = vperm.xlu1 %4461, %v6511_v27  }
 0x86c   :  { %4471 = vrot.lane.b32.xlu0 %v6471_v3, %s5060_s3 }
 0x86d   :  { %4570 = vset.pattern.permute.xlu0 %v7715_v33 }
 0x86f   :  { %4462 = vset.pattern.permute.xlu1 %v7716_v5 }
 0x870   :  { %2243 = vperm.xlu1 %4462, %v6511_v27   ;;  %4476 = vrot.lane.b32.xlu0 %v6463_v37, %s5060_s3 }
 0x874   :  { %4464 = vset.pattern.permute.xlu1 %v7714_v35  ;;  %4481 = vrot.lane.b32.xlu0 %v6491_v39, %s5060_s3 }
 0x875   :  { %2367 = vperm.xlu1 %4464, %v6511_v27  }
 0x878   :  { %4486 = vrot.lane.b32.xlu0 %v6483_v62, %s5060_s3 }
 0x879   :  { %4465 = vset.pattern.permute.xlu1 %v7715_v33 }
 0x87a   :  { %2201 = vperm.xlu1 %4465, %v6515_v20  }
 0x87c   :  { %4491 = vrot.lane.b32.xlu0 %v6471_v3, %s5061_s1 }
 0x87e   :  { %4466 = vset.pattern.permute.xlu1 %v7716_v5 }
 0x87f   :  { %2255 = vperm.xlu1 %4466, %v6515_v20  }
 0x880   :  { %4496 = vrot.lane.b32.xlu0 %v6471_v3, %s5062_s25 }
 0x883   :  { %2247 = vperm.xlu1 %4466, %v6518_v54  }
 0x884   :  { %4501 = vrot.lane.b32.xlu0 %v6463_v37, %s5061_s1 }
 0x887   :  { %4468 = vset.pattern.permute.xlu1 %v7691_v15 }
 0x888   :  { %2309 = vperm.xlu1 %4468, %v6518_v54   ;;  %4506 = vrot.lane.b32.xlu0 %v6463_v37, %s5062_s25 }
 0x88c   :  { %4511 = vrot.lane.b32.xlu0 %v6491_v39, %s5061_s1 }
 0x890   :  { %4516 = vrot.lane.b32.xlu0 %v6491_v39, %s5062_s25 }
 0x894   :  { %4521 = vrot.lane.b32.xlu0 %v6483_v62, %s5061_s1 }
 0x898   :  { %4526 = vrot.lane.b32.xlu0 %v6483_v62, %s5062_s25 }
 0x8af   :  { %v6592_v21 = vpop.permute.xlu0 %2176  ;;  %v6604_v46 = vpop.permute.xlu1 %2235 }
 0x8b1   :  { %2128 = vxpose.xlu1.b32.start [1/8] (short) (narrow) %v6499_v13, 8 }
 0x8b4   :  { %v6595_v42 = vpop.permute.xlu0 %2359  ;;  %v6610_v36 = vpop.permute.xlu1 %2297 }
 0x8b5   :  { %2129 = vxpose.xlu1.b32.cont [2/8] (short) (narrow) %v6503_v6, 8 }
 0x8b8   :  { %v6617_v50 = vpop.permute.xlu1 %2289 }
 0x8b9   :  { %v6598_v56 = vpop.permute.xlu0 %2166  ;;  %2130 = vxpose.xlu1.b32.cont [3/8] (short) (narrow) %v6495_v51, 8 }
 0x8bd   :  { %2131 = vxpose.xlu1.b32.cont [4/8] (short) (narrow) %v6501_v7, 8  ;;  %v6622_v9 = vpop.permute.xlu1 %2351 }
 0x8be   :  { %v6602_v38 = vpop.permute.xlu0 %2227 }
 0x8c1   :  { %2132 = vxpose.xlu1.b32.cont [5/8] (short) (narrow) %v6511_v27, 8 }
 0x8c2   :  { %v6607_v25 = vpop.permute.xlu0 %2239  ;;  %v6626_v49 = vpop.permute.xlu1 %2181 }
 0x8c5   :  { %2133 = vxpose.xlu1.b32.cont [6/8] (short) (narrow) %v6518_v54, 8 }
 0x8c7   :  { %v6612_v22 = vpop.permute.xlu0 %2293  ;;  %v6630_v60 = vpop.permute.xlu1 %2301 }
 0x8c9   :  { %2134 = vxpose.xlu1.b32.cont [7/8] (short) (narrow) %v6509_v29, 8 }
 0x8cc   :  { %v6615_v4 = vpop.permute.xlu0 %2251  ;;  %v6636_v45 = vpop.permute.xlu1 %2363 }
 0x8cd   :  { %2135 = vxpose.xlu1.b32.end [8/8] (short) (narrow) %v6515_v20, 8 }
 0x8d1   :  { %v6620_v55 = vpop.permute.xlu0 %2305  ;;  %v6640_v37 = vpop.permute.xlu1 %2171 }
 0x8d5   :  { %v6624_v19 = vpop.permute.xlu0 %2317 }
 0x8d6   :  { %v6642_v29 = vpop.permute.xlu1 %2231 }
 0x8da   :  { %v6628_v23 = vpop.permute.xlu0 %2191 }
 0x8df   :  { %v6632_v11 = vpop.permute.xlu0 %2371 }
 0x8e3   :  { %v6634_v17 = vpop.permute.xlu0 %2375 }
 0x8e7   :  { %v6638_v40 = vpop.permute.xlu0 %2379 }
 0x8eb   :  { %v4472_v3 = vpop.permute.xlu0 %4471 }
 0x8ec   :  { %v4474_v62 = vunpack.i.h.bf16 %v4472_v3  ;;  %v4473_v39 = vunpack.i.l.bf16 %v4472_v3 }
 0x8ee   :  { %v2784_v51 = vpack.c.bf16 %v4474_v62, %v4473_v39  ;;  %v6650_v62 = vpop.permute.xlu1 %2355 }
 0x8ef   :  { %v4477_v13 = vpop.permute.xlu0 %4476 }
 0x8f0   :  { %v4479_v7 = vunpack.i.h.bf16 %v4477_v13  ;;  %v4478_v6 = vunpack.i.l.bf16 %v4477_v13  ;;  %3970 = vmatprep.subr.bf16.mxu1 %v2784_v51 }
 0x8f1   :  { %3971 = vmatpush3.bf16.msra.mxu1 %v2776_v63 }
 0x8f2   :  { %v2785_v27 = vpack.c.bf16 %v4479_v7, %v4478_v6  ;;  %v6655_v6 = vpop.permute.xlu1 %2196 }
 0x8f3   :  { %v4482_v20 = vpop.permute.xlu0 %4481 }
 0x8f4   :  { %v4484_v54 = vunpack.i.h.bf16 %v4482_v20  ;;  %v4483_v10 = vunpack.i.l.bf16 %v4482_v20  ;;  %3972 = vmatprep.subr.bf16.mxu1 %v2785_v27 }
 0x8f5   :  { %3973 = vmatpush3.bf16.msra.mxu1 %v2777_v26 }
 0x8f6   :  { %v2786_v3 = vpack.c.bf16 %v4484_v54, %v4483_v10  ;;  %v6660_v20 = vpop.permute.xlu1 %2313 }
 0x8f7   :  { %v4487_v39 = vpop.permute.xlu0 %4486 }
 0x8f8   :  { %v4489_v51 = vunpack.i.h.bf16 %v4487_v39  ;;  %v4488_v13 = vunpack.i.l.bf16 %v4487_v39  ;;  %3974 = vmatprep.subr.bf16.mxu1 %v2786_v3 }
 0x8f9   :  { %3975 = vmatpush3.bf16.msra.mxu1 %v2778_v18 }
 0x8fa   :  { %v2787_v52 = vpack.c.bf16 %v4489_v51, %v4488_v13  ;;  %v6662_v13 = vpop.permute.xlu1 %2186 }
 0x8fb   :  { %v4492_v12 = vpop.permute.xlu0 %4491 }
 0x8fc   :  { %v4494_v63 = vunpack.i.h.bf16 %v4492_v12  ;;  %v4493_v7 = vunpack.i.l.bf16 %v4492_v12  ;;  %3976 = vmatprep.subr.bf16.mxu1 %v2787_v52 }
 0x8fd   :  { %3977 = vmatpush3.bf16.msra.mxu1 %v2779_v24 }
 0x8fe   :  { %v2788_v10 = vpack.c.bf16 %v4494_v63, %v4493_v7  ;;  %v6664_v63 = vpop.permute.xlu1 %2243 }
 0x8ff   :  { %v4497_v30 = vpop.permute.xlu0 %4496 }
 0x900   :  { %v4499_v58 = vunpack.i.h.bf16 %v4497_v30  ;;  %v4498_v26 = vunpack.i.l.bf16 %v4497_v30  ;;  %3978 = vmatprep.subr.bf16.mxu1 %v2788_v10 }
 0x902   :  { %v2780_v27 = vpack.c.bf16 %v4499_v58, %v4498_v26 }
 0x903   :  { %v4502_v61 = vpop.permute.xlu0 %4501 }
 0x904   :  { %v4504_v28 = vunpack.i.h.bf16 %v4502_v61  ;;  %v4503_v18 = vunpack.i.l.bf16 %v4502_v61  ;;  %3979 = vmatpush3.bf16.msra.mxu1 %v2780_v27 }
 0x906   :  { %v2789_v54 = vpack.c.bf16 %v4504_v28, %v4503_v18  ;;  %v6666_v28 = vpop.permute.xlu1 %2367 }
 0x907   :  { %v4507_v3 = vpop.permute.xlu0 %4506 }
 0x908   :  { %v4509_v39 = vunpack.i.h.bf16 %v4507_v3  ;;  %v4508_v51 = vunpack.i.l.bf16 %v4507_v3  ;;  %3980 = vmatprep.subr.bf16.mxu1 %v2789_v54 }
 0x90a   :  { %v2781_v48 = vpack.c.bf16 %v4509_v39, %v4508_v51 }
 0x90b   :  { %v4512_v53 = vpop.permute.xlu0 %4511 }
 0x90c   :  { %v4514_v24 = vunpack.i.h.bf16 %v4512_v53  ;;  %v4513_v52 = vunpack.i.l.bf16 %v4512_v53  ;;  %3981 = vmatpush3.bf16.msra.mxu1 %v2781_v48  ;;  %v6668_v48 = vpop.permute.xlu1 %2201 }
 0x90e   :  { %v2790_v12 = vpack.c.bf16 %v4514_v24, %v4513_v52 }
 0x90f   :  { %v4517_v7 = vpop.permute.xlu0 %4516 }
 0x910   :  { %v4519_v10 = vunpack.i.h.bf16 %v4517_v7  ;;  %v4518_v30 = vunpack.i.l.bf16 %v4517_v7  ;;  %3982 = vmatprep.subr.bf16.mxu1 %v2790_v12  ;;  %v6670_v53 = vpop.permute.xlu1 %2255  ;;  %v7717_v7 = vld [vmem:[#allocation13_spill] sm:$0xff] }
 0x912   :  { %v2782_v58 = vpack.c.bf16 %v4519_v10, %v4518_v30  ;;  %v7718_v30 = vld [vmem:[#allocation14_spill] sm:$0xff] }
 0x913   :  { %v4522_v26 = vpop.permute.xlu0 %4521 }
 0x914   :  { %v4524_v27 = vunpack.i.h.bf16 %v4522_v26  ;;  %v4523_v61 = vunpack.i.l.bf16 %v4522_v26  ;;  %3983 = vmatpush3.bf16.msra.mxu1 %v2782_v58  ;;  %v6672_v24 = vpop.permute.xlu1 %2247  ;;  %v7719_v26 = vld [vmem:[#allocation15_spill] sm:$0xff] }
 0x916   :  { %v2791_v18 = vpack.c.bf16 %v4524_v27, %v4523_v61  ;;  %v7720_v61 = vld [vmem:[#allocation16_spill] sm:$0xff] }
 0x917   :  { %v4527_v54 = vpop.permute.xlu0 %4526 }
 0x918   :  { %v4529_v3 = vunpack.i.h.bf16 %v4527_v54  ;;  %v4528_v39 = vunpack.i.l.bf16 %v4527_v54  ;;  %3984 = vmatprep.subr.bf16.mxu1 %v2791_v18  ;;  %v6674_v52 = vpop.permute.xlu1 %2309  ;;  %v6688_v54 = vstv %s3833_s13 }
 0x91a   :  { %v2783_v51 = vpack.c.bf16 %v4529_v3, %v4528_v39  ;;  %v6690_v3 = vstv %s3834_s18  ;;  %v6692_v39 = vstv %s3835_s2 }
 0x91c   :  { %3985 = vmatpush3.bf16.msra.mxu1 %v2783_v51  ;;  %v6694_v51 = vstv %s3836_s19 }
 0x931   :  { %v2144_v12 = vpop.trf.xlu1 }
 0x932   :  { %v6677_v10 = vrot.slane %v2144_v12, %v7717_v7  ;;  %v6680_v58 = vrot.slane %v2144_v12, %v7718_v30  ;;  %v6683_v27 = vrot.slane %v2144_v12, %v7719_v26  ;;  %v6686_v18 = vrot.slane %v2144_v12, %v7720_v61 }
 0x934   :  { %v2204_v43 = vsub.f32 %v6677_v10, %v6598_v56  ;;  %v2205_v34 = vsub.f32 %v6677_v10, %v6640_v37  ;;  %v2258_v59 = vsub.f32 %v6680_v58, %v6602_v38  ;;  %v2259_v12 = vsub.f32 %v6680_v58, %v6642_v29 }
 0x935   :  { %v2320_v41 = vsub.f32 %v6683_v27, %v6617_v50  ;;  %v2321_v8 = vsub.f32 %v6683_v27, %v6612_v22  ;;  %v2382_v16 = vsub.f32 %v6686_v18, %v6622_v9  ;;  %v2383_v56 = vsub.f32 %v6686_v18, %v6650_v62 }
 0x936   :  { %v2214_v37 = vadd.f32 %v6688_v54, %v2204_v43  ;;  %v2215_v32 = vadd.f32 %v6688_v54, %v2205_v34  ;;  %v2268_v38 = vadd.f32 %v6690_v3, %v2258_v59  ;;  %v2269_v29 = vadd.f32 %v6690_v3, %v2259_v12 }
 0x937   :  { %v2330_v31 = vadd.f32 %v6692_v39, %v2320_v41  ;;  %v2331_v50 = vadd.f32 %v6692_v39, %v2321_v8  ;;  %v2392_v22 = vadd.f32 %v6694_v51, %v2382_v16  ;;  %v2393_v44 = vadd.f32 %v6694_v51, %v2383_v56 }
 0x938   :  { %v2276_v9 = vmax.f32 %v2214_v37, %v2268_v38  ;;  %v2277_v1 = vmax.f32 %v2215_v32, %v2269_v29  ;;  %v2206_v62 = vsub.f32 %v6677_v10, %v6592_v21  ;;  %v2207_v34 = vsub.f32 %v6677_v10, %v6626_v49 }
 0x939   :  { %v2260_v59 = vsub.f32 %v6680_v58, %v6604_v46  ;;  %v2261_v41 = vsub.f32 %v6680_v58, %v6607_v25  ;;  %v2322_v8 = vsub.f32 %v6683_v27, %v6610_v36  ;;  %v2323_v16 = vsub.f32 %v6683_v27, %v6630_v60 }
 0x93a   :  { %v2338_v43 = vmax.f32 %v2276_v9, %v2330_v31  ;;  %v2339_v12 = vmax.f32 %v2277_v1, %v2331_v50  ;;  %v2216_v56 = vadd.f32 %v6688_v54, %v2206_v62  ;;  %v2217_v21 = vadd.f32 %v6688_v54, %v2207_v34 }
 0x93b   :  { %v2270_v49 = vadd.f32 %v6690_v3, %v2260_v59  ;;  %v2271_v14 = vadd.f32 %v6690_v3, %v2261_v41  ;;  %v2332_v46 = vadd.f32 %v6692_v39, %v2322_v8  ;;  %v2333_v25 = vadd.f32 %v6692_v39, %v2323_v16 }
 0x93c   :  { %v2400_v2 = vmax.f32 %v2338_v43, %v2392_v22  ;;  %v2401_v57 = vmax.f32 %v2339_v12, %v2393_v44  ;;  %v2384_v36 = vsub.f32 %v6686_v18, %v6595_v42  ;;  %v2385_v1 = vsub.f32 %v6686_v18, %v6636_v45 }
 0x93d   :  { %v2278_v60 = vmax.f32 %v2216_v56, %v2270_v49  ;;  %v2279_v9 = vmax.f32 %v2217_v21, %v2271_v14  ;;  %v2208_v62 = vsub.f32 %v6677_v10, %v6662_v13  ;;  %v2209_v34 = vsub.f32 %v6677_v10, %v6628_v23 }
 0x93e   :  { %v2408_v59 = vsub.f32 %v2214_v37, %v2400_v2  ;;  %v2409_v41 = vsub.f32 %v2215_v32, %v2401_v57  ;;  %v2448_v8 = vsub.f32 %v2268_v38, %v2400_v2  ;;  %v2449_v16 = vsub.f32 %v2269_v29, %v2401_v57 }
 0x93f   :  { %v2488_v43 = vsub.f32 %v2330_v31, %v2400_v2  ;;  %v2489_v12 = vsub.f32 %v2331_v50, %v2401_v57  ;;  %v2528_v47 = vsub.f32 %v2392_v22, %v2400_v2  ;;  %v2529_v0 = vsub.f32 %v2393_v44, %v2401_v57 }
 0x940   :  { %v2416_v42 = vmul.f32 1.442695, %v2408_v59  ;;  %v2418_v61 = vmul.f32 1.442695, %v2409_v41  ;;  %v2456_v26 = vmul.f32 1.442695, %v2448_v8  ;;  %v2340_v45 = vmax.f32 %v2278_v60, %v2332_v46 }
 0x941   :  { %v2458_v30 = vmul.f32 1.442695, %v2449_v16  ;;  %v2496_v7 = vmul.f32 1.442695, %v2488_v43  ;;  %v2498_v15 = vmul.f32 1.442695, %v2489_v12  ;;  %v2341_v33 = vmax.f32 %v2279_v9, %v2333_v25 }
 0x942   :  { %4857 = vpow2.f32 %v2416_v42  ;;  %v2536_v13 = vmul.f32 1.442695, %v2528_v47  ;;  %v2538_v5 = vmul.f32 1.442695, %v2529_v0  ;;  %v2394_v23 = vadd.f32 %v6694_v51, %v2384_v36 }
 0x943   :  { %4859 = vpow2.f32 %v2418_v61  ;;  %v2395_v32 = vadd.f32 %v6694_v51, %v2385_v1  ;;  %v6749_v31 = vadd.f32 %v6688_v54, %v2208_v62  ;;  %v6752_v57 = vadd.f32 %v6688_v54, %v2209_v34 }
 0x944   :  { %4861 = vpow2.f32 %v2456_v26  ;;  %v2402_v2 = vmax.f32 %v2340_v45, %v2394_v23  ;;  %v2262_v44 = vsub.f32 %v6680_v58, %v6664_v63  ;;  %v2263_v47 = vsub.f32 %v6680_v58, %v6672_v24 }
 0x945   :  { %4863 = vpow2.f32 %v2458_v30  ;;  %v2403_v0 = vmax.f32 %v2341_v33, %v2395_v32  ;;  %v2324_v61 = vsub.f32 %v6683_v27, %v6620_v55  ;;  %v2325_v37 = vsub.f32 %v6683_v27, %v6674_v52 }
 0x946   :  { %4865 = vpow2.f32 %v2496_v7  ;;  %v2410_v38 = vsub.f32 %v2216_v56, %v2402_v2  ;;  %v2450_v29 = vsub.f32 %v2270_v49, %v2402_v2  ;;  %v2490_v50 = vsub.f32 %v2332_v46, %v2402_v2 }
 0x947   :  { %4867 = vpow2.f32 %v2498_v15  ;;  %v2411_v26 = vsub.f32 %v2217_v21, %v2403_v0  ;;  %v2451_v22 = vsub.f32 %v2271_v14, %v2403_v0  ;;  %v2491_v36 = vsub.f32 %v2333_v25, %v2403_v0 }
 0x948   :  { %4869 = vpow2.f32 %v2536_v13  ;;  %v2420_v63 = vmul.f32 1.442695, %v2410_v38  ;;  %v2460_v1 = vmul.f32 1.442695, %v2450_v29  ;;  %v2500_v24 = vmul.f32 1.442695, %v2490_v50 }
 0x949   :  { %4871 = vpow2.f32 %v2538_v5  ;;  %v2422_v33 = vmul.f32 1.442695, %v2411_v26  ;;  %v2462_v30 = vmul.f32 1.442695, %v2451_v22  ;;  %v2502_v60 = vmul.f32 1.442695, %v2491_v36 }
 0x94a   :  { %4873 = vpow2.f32 %v2420_v63  ;;  %v2530_v55 = vsub.f32 %v2394_v23, %v2402_v2  ;;  %v2531_v9 = vsub.f32 %v2395_v32, %v2403_v0  ;;  %v2272_v52 = vadd.f32 %v6690_v3, %v2262_v44 }
 0x94b   :  { %4875 = vpow2.f32 %v2422_v33  ;;  %v2273_v7 = vadd.f32 %v6690_v3, %v2263_v47  ;;  %v6765_v15 = vadd.f32 %v6692_v39, %v2324_v61  ;;  %v6768_v14 = vadd.f32 %v6692_v39, %v2325_v37 }
 0x94c   :  { %v6770_v56 = vpop.eup %4857  ;;  %4877 = vpow2.f32 %v2460_v1  ;;  %v2540_v5 = vmul.f32 1.442695, %v2530_v55  ;;  %v2542_v21 = vmul.f32 1.442695, %v2531_v9  ;;  %v2280_v49 = vmax.f32 %v6749_v31, %v2272_v52 }
 0x94d   :  { %v6773_v46 = vpop.eup %4859  ;;  %4879 = vpow2.f32 %v2462_v30  ;;  %v2281_v25 = vmax.f32 %v6752_v57, %v2273_v7  ;;  %v2386_v62 = vsub.f32 %v6686_v18, %v6666_v28  ;;  %v2387_v34 = vsub.f32 %v6686_v18, %v6632_v11 }
 0x94e   :  { %v4862_v59 = vpop.eup %4861  ;;  %4881 = vpow2.f32 %v2500_v24  ;;  %v2342_v41 = vmax.f32 %v2280_v49, %v6765_v15  ;;  %v2210_v12 = vsub.f32 %v6677_v10, %v6655_v6  ;;  %v2211_v45 = vsub.f32 %v6677_v10, %v6668_v48  ;;  %v6798_v6 = vld [vmem:[%s7690_s30] sm:$0xff]  ;;  %v6807_v10 = vld [vmem:[%s7690_s30 + $0x8] sm:$0xff] }
 0x94f   :  { %v4864_v8 = vpop.eup %4863  ;;  %v2472_v16 = vadd.f32 %v4862_v59, %v6770_v56  ;;  %4883 = vpow2.f32 %v2502_v60  ;;  %v2343_v43 = vmax.f32 %v2281_v25, %v6768_v14  ;;  %v2396_v11 = vadd.f32 %v6694_v51, %v2386_v62 }
 0x950   :  { %v6785_v42 = vpop.eup %4865  ;;  %v2473_v28 = vadd.f32 %v4864_v8, %v6773_v46  ;;  %4885 = vpow2.f32 %v2540_v5  ;;  %v2397_v32 = vadd.f32 %v6694_v51, %v2387_v34  ;;  %v6801_v44 = vmul.f32 %v6798_v6, %v4862_v59 }
 0x951   :  { %v6791_v13 = vpop.eup %4867  ;;  %v2512_v23 = vadd.f32 %v6785_v42, %v2472_v16  ;;  %4887 = vpow2.f32 %v2542_v21  ;;  %v2404_v0 = vmax.f32 %v2342_v41, %v2396_v11  ;;  %v6810_v61 = vmul.f32 %v6807_v10, %v4864_v8 }
 0x952   :  { %v4870_v2 = vpop.eup %4869  ;;  %v2513_v47 = vadd.f32 %v6791_v13, %v2473_v28  ;;  %v2405_v38 = vmax.f32 %v2343_v43, %v2397_v32  ;;  %v6813_v29 = vadd.f32 %v6688_v54, %v2210_v12  ;;  %v6819_v63 = vadd.f32 %v6688_v54, %v2211_v45 }
 0x953   :  { %v4872_v48 = vpop.eup %4871  ;;  %v2552_v37 = vadd.f32 %v4870_v2, %v2512_v23  ;;  %v2412_v22 = vsub.f32 %v6749_v31, %v2404_v0  ;;  %v2452_v36 = vsub.f32 %v2272_v52, %v2404_v0  ;;  %v2492_v30 = vsub.f32 %v6765_v15, %v2404_v0 }
 0x954   :  { %v6815_v50 = vpop.eup %4873  ;;  %v2553_v26 = vadd.f32 %v4872_v48, %v2513_v47  ;;  %v2413_v24 = vsub.f32 %v6752_v57, %v2405_v38  ;;  %v2453_v33 = vsub.f32 %v2273_v7, %v2405_v38  ;;  %v2264_v31 = vsub.f32 %v6680_v58, %v6615_v4 }
 0x955   :  { %v6821_v1 = vpop.eup %4875  ;;  %4889 = vrcp.f32 %v2552_v37  ;;  %v2424_v55 = vmul.f32 1.442695, %v2412_v22  ;;  %v2464_v9 = vmul.f32 1.442695, %v2452_v36  ;;  %v2493_v57 = vsub.f32 %v6768_v14, %v2405_v38 }
 0x956   :  { %v6825_v60 = vpop.eup %4877  ;;  %4891 = vrcp.f32 %v2553_v26  ;;  %v2426_v5 = vmul.f32 1.442695, %v2413_v24  ;;  %v2466_v21 = vmul.f32 1.442695, %v2453_v33  ;;  %v2560_v15 = vmul.f32 %v6798_v6, %v4870_v2 }
 0x957   :  { %v6829_v52 = vpop.eup %4879  ;;  %v2474_v54 = vadd.f32 %v6825_v60, %v6815_v50  ;;  %4893 = vpow2.f32 %v2424_v55  ;;  %v2504_v25 = vmul.f32 1.442695, %v2492_v30  ;;  %v2532_v34 = vsub.f32 %v2396_v11, %v2404_v0 }
 0x958   :  { %v6834_v7 = vpop.eup %4881  ;;  %v2475_v49 = vadd.f32 %v6829_v52, %v6821_v1  ;;  %4895 = vpow2.f32 %v2426_v5  ;;  %v2265_v59 = vsub.f32 %v6680_v58, %v6670_v53  ;;  %v2533_v8 = vsub.f32 %v2397_v32, %v2405_v38 }
 0x959   :  { %v6839_v62 = vpop.eup %4883  ;;  %v2514_v4 = vadd.f32 %v6834_v7, %v2474_v54  ;;  %4897 = vpow2.f32 %v2464_v9  ;;  %v6846_v16 = vadd.f32 %v6690_v3, %v2264_v31  ;;  %v2561_v12 = vmul.f32 %v6807_v10, %v4872_v48  ;;  %v5027_v31 = vld [vmem:[%s7690_s30 + $0x10] sm:$0xff] }
 0x95a   :  { %v4886_v41 = vpop.eup %4885  ;;  %v2515_v14 = vadd.f32 %v6839_v62, %v2475_v49  ;;  %4899 = vpow2.f32 %v2466_v21  ;;  %v2506_v45 = vmul.f32 1.442695, %v2493_v57  ;;  %v2544_v11 = vmul.f32 1.442695, %v2532_v34 }
 0x95b   :  { %v4888_v43 = vpop.eup %4887  ;;  %v2554_v28 = vadd.f32 %v4886_v41, %v2514_v4  ;;  %4901 = vpow2.f32 %v2504_v25  ;;  %v2546_v2 = vmul.f32 1.442695, %v2533_v8  ;;  %v6850_v53 = vadd.f32 %v6690_v3, %v2265_v59 }
 0x95c   :  { %v2555_v23 = vadd.f32 %v4888_v43, %v2515_v14  ;;  %v2282_v58 = vmax.f32 %v6813_v29, %v6846_v16  ;;  %v2326_v32 = vsub.f32 %v6683_v27, %v6660_v20  ;;  %v2327_v47 = vsub.f32 %v6683_v27, %v6624_v19 }
 0x95d   :  { %4903 = vrcp.f32 %v2554_v28  ;;  %v2388_v0 = vsub.f32 %v6686_v18, %v6634_v17  ;;  %v2389_v48 = vsub.f32 %v6686_v18, %v6638_v40  ;;  %v2283_v3 = vmax.f32 %v6819_v63, %v6850_v53 }
 0x95e   :  { %4905 = vrcp.f32 %v2555_v23  ;;  %v6867_v38 = vadd.f32 %v6692_v39, %v2326_v32  ;;  %v2441_v20 = vmul.f32 %v6807_v10, %v6773_v46  ;;  %v2337_v40 = vadd.f32 %v6692_v39, %v2327_v47 }
 0x95f   :  { %v6862_v37 = vpop.eup %4889  ;;  %4907 = vpow2.f32 %v2506_v45  ;;  %v6884_v24 = vadd.f32 %v6694_v51, %v2388_v0  ;;  %v2440_v55 = vmul.f32 %v6798_v6, %v6770_v56  ;;  %v2482_v54 = vmul.f32 %v5027_v31, %v6825_v60 }
 0x960   :  { %v6871_v26 = vpop.eup %4891  ;;  %v2584_v19 = vmul.f32 %v6862_v37, %v6801_v44  ;;  %v2600_v17 = vmul.f32 %v6862_v37, %v2560_v15  ;;  %4909 = vpow2.f32 %v2544_v11  ;;  %v2344_v22 = vmax.f32 %v2282_v58, %v6867_v38 }
 0x961   :  { %v2585_v27 = vmul.f32 %v6871_v26, %v6810_v61  ;;  %v2601_v18 = vmul.f32 %v6871_v26, %v2561_v12  ;;  %4911 = vpow2.f32 %v2546_v2  ;;  %v6881_v36 = vpop.eup %4893  ;;  %v2345_v46 = vmax.f32 %v2283_v3, %v2337_v40 }
 0x962   :  { %v6887_v44 = vadd.f32 %v6694_v51, %v2389_v48  ;;  %v6890_v33 = vmul.f32 %v6871_v26, %v2441_v20  ;;  %v6892_v39 = vpop.eup %4895  ;;  %v5028_v51 = vld [vmem:[%s7690_s30 + $0x18] sm:$0xff]  ;;  %v2406_v21 = vmax.f32 %v2344_v22, %v6884_v24  ;;  %v2562_v56 = vmul.f32 %v5027_v31, %v4886_v41 }
 0x963   :  { %v4535_v61 = vpack.i.bf16 %v2585_v27, %v2584_v19  ;;  %v4530_v30 = vpack.i.bf16 %v2601_v18, %v2600_v17  ;;  %v6896_v9 = vpop.eup %4897  ;;  %v2483_v5 = vmul.f32 %v5028_v51, %v6829_v52  ;;  %v6915_v49 = vmul.f32 %v6862_v37, %v2440_v55 }
 0x964   :  { %v2407_v57 = vmax.f32 %v2345_v46, %v6887_v44  ;;  %v6908_v15 = vpop.eup %4899  ;;  %v2476_v60 = vadd.f32 %v6896_v9, %v6881_v36  ;;  %v2563_v4 = vmul.f32 %v5028_v51, %v4888_v43  ;;  %v2414_v34 = vsub.f32 %v6813_v29, %v2406_v21 }
 0x965   :  { %4536 = vrot.lane.b32.xlu1 %v4535_v61, %s5060_s3  ;;  %4531 = vrot.lane.b32.xlu0 %v4530_v30, %s5060_s3  ;;  %v4902_v25 = vpop.eup %4901  ;;  %v2477_v52 = vadd.f32 %v6908_v15, %v6892_v39  ;;  %v2454_v12 = vsub.f32 %v6846_v16, %v2406_v21  ;;  %v2520_v28 = vmul.f32 %v6798_v6, %v6785_v42 }
 0x966   :  { %v2415_v59 = vsub.f32 %v6819_v63, %v2407_v57  ;;  %v2516_v8 = vadd.f32 %v4902_v25, %v2476_v60  ;;  %v2455_v41 = vsub.f32 %v6850_v53, %v2407_v57  ;;  %v2428_v11 = vmul.f32 1.442695, %v2414_v34 }
 0x967   :  { %v4904_v14 = vpop.eup %4903  ;;  %v2494_v2 = vsub.f32 %v6867_v38, %v2406_v21  ;;  %v2521_v63 = vmul.f32 %v6807_v10, %v6791_v13  ;;  %v2522_v47 = vmul.f32 %v5027_v31, %v6834_v7  ;;  %v2468_v48 = vmul.f32 1.442695, %v2454_v12 }
 0x968   :  { %v4906_v45 = vpop.eup %4905  ;;  %v2602_v23 = vmul.f32 %v4904_v14, %v2562_v56  ;;  %v2430_v43 = vmul.f32 1.442695, %v2415_v59  ;;  %v2586_v29 = vmul.f32 %v4904_v14, %v2482_v54  ;;  %v2495_v3 = vsub.f32 %v2337_v40, %v2407_v57 }
 0x969   :  { %v4908_v58 = vpop.eup %4907  ;;  %v2603_v32 = vmul.f32 %v4906_v45, %v2563_v4  ;;  %v2587_v0 = vmul.f32 %v4906_v45, %v2483_v5  ;;  %4913 = vpow2.f32 %v2428_v11  ;;  %v2470_v19 = vmul.f32 1.442695, %v2455_v41 }
 0x96a   :  { %v4910_v16 = vpop.eup %4909  ;;  %v2517_v53 = vadd.f32 %v4908_v58, %v2477_v52  ;;  %4915 = vpow2.f32 %v2430_v43  ;;  %v2508_v38 = vmul.f32 1.442695, %v2494_v2  ;;  %v2510_v27 = vmul.f32 1.442695, %v2495_v3 }
 0x96b   :  { %v4912_v42 = vpop.eup %4911  ;;  %v4540_v6 = vpack.i.bf16 %v2603_v32, %v2602_v23  ;;  %v2556_v20 = vadd.f32 %v4910_v16, %v2516_v8  ;;  %v2534_v13 = vsub.f32 %v6884_v24, %v2406_v21  ;;  %v2535_v10 = vsub.f32 %v6887_v44, %v2407_v57  ;;  %v5030_v21 = vld [vmem:[%s7690_s30 + $0x28] sm:$0xff] }
 0x96c   :  { %v2557_v17 = vadd.f32 %v4912_v42, %v2517_v53  ;;  %v6933_v7 = vmul.f32 %v6862_v37, %v2520_v28  ;;  %v6936_v40 = vmul.f32 %v6871_v26, %v2521_v63  ;;  %v2523_v18 = vmul.f32 %v5028_v51, %v6839_v62 }
 0x96d   :  { %4541 = vrot.lane.b32.xlu0 %v4540_v6, %s5060_s3  ;;  %4917 = vrcp.f32 %v2556_v20  ;;  %v6939_v22 = vmul.f32 %v4904_v14, %v2522_v47  ;;  %v4545_v46 = vpack.i.bf16 %v2587_v0, %v2586_v29  ;;  %v2548_v61 = vmul.f32 1.442695, %v2534_v13  ;;  %v5031_v0 = vld [vmem:[%s7690_s30 + $0x30] sm:$0xff]  ;;  %v5032_v6 = vld [vmem:[%s7690_s30 + $0x38] sm:$0xff] }
 0x96e   :  { %4919 = vrcp.f32 %v2557_v17  ;;  %v2442_v30 = vmul.f32 %v5027_v31, %v6815_v50  ;;  %v2550_v24 = vmul.f32 1.442695, %v2535_v10  ;;  %v6942_v55 = vmul.f32 %v4906_v45, %v2523_v18  ;;  %v5029_v50 = vld [vmem:[%s7690_s30 + $0x20] sm:$0xff] }
 0x96f   :  { %4921 = vpow2.f32 %v2468_v48  ;;  %v2443_v37 = vmul.f32 %v5028_v51, %v6821_v1  ;;  %v2564_v31 = vmul.f32 %v5029_v50, %v4910_v16  ;;  %v2524_v5 = vmul.f32 %v5029_v50, %v4902_v25 }
 0x970   :  { %4923 = vpow2.f32 %v2470_v19  ;;  %v6946_v26 = vmul.f32 %v4904_v14, %v2442_v30  ;;  %v2444_v1 = vmul.f32 %v5029_v50, %v6881_v36  ;;  %v2565_v57 = vmul.f32 %v5030_v21, %v4912_v42 }
 0x971   :  { %4546 = vrot.lane.b32.xlu0 %v4545_v46, %s5060_s3  ;;  %4925 = vpow2.f32 %v2508_v38  ;;  %v6948_v62 = vmul.f32 %v4906_v45, %v2443_v37  ;;  %v2525_v56 = vmul.f32 %v5030_v21, %v4908_v58  ;;  %v2445_v60 = vmul.f32 %v5030_v21, %v6892_v39 }
 0x972   :  { %4927 = vpow2.f32 %v2510_v27  ;;  %v2484_v34 = vmul.f32 %v5029_v50, %v6896_v9  ;;  %v2485_v36 = vmul.f32 %v5030_v21, %v6908_v15 }
 0x973   :  { %4929 = vpow2.f32 %v2548_v61  ;;  %v4914_v44 = vpop.eup %4913 }
 0x974   :  { %4931 = vpow2.f32 %v2550_v24  ;;  %v4916_v54 = vpop.eup %4915  ;;  %v2446_v3 = vmul.f32 %v5031_v0, %v4914_v44 }
 0x975   :  { %v2447_v17 = vmul.f32 %v5032_v6, %v4916_v54 }
 0x977   :  { %v4918_v51 = vpop.eup %4917 }
 0x978   :  { %v4920_v4 = vpop.eup %4919  ;;  %v2604_v52 = vmul.f32 %v4918_v51, %v2564_v31  ;;  %v6959_v59 = vmul.f32 %v4918_v51, %v2524_v5  ;;  %v6961_v14 = vmul.f32 %v4918_v51, %v2444_v1  ;;  %v2588_v11 = vmul.f32 %v4918_v51, %v2484_v34 }
 0x979   :  { %v4922_v25 = vpop.eup %4921  ;;  %v2605_v8 = vmul.f32 %v4920_v4, %v2565_v57  ;;  %v6964_v12 = vmul.f32 %v4920_v4, %v2525_v56  ;;  %v6966_v41 = vmul.f32 %v4920_v4, %v2445_v60  ;;  %v2589_v43 = vmul.f32 %v4920_v4, %v2485_v36 }
 0x97a   :  { %v4924_v28 = vpop.eup %4923  ;;  %v2478_v45 = vadd.f32 %v4922_v25, %v4914_v44  ;;  %v2486_v13 = vmul.f32 %v5031_v0, %v4922_v25 }
 0x97b   :  { %v4926_v23 = vpop.eup %4925  ;;  %v4550_v39 = vpack.i.bf16 %v2605_v8, %v2604_v52  ;;  %v2479_v2 = vadd.f32 %v4924_v28, %v4916_v54  ;;  %v4555_v15 = vpack.i.bf16 %v2589_v43, %v2588_v11  ;;  %v2487_v61 = vmul.f32 %v5032_v6, %v4924_v28 }
 0x97c   :  { %v4928_v9 = vpop.eup %4927  ;;  %v2518_v58 = vadd.f32 %v4926_v23, %v2478_v45  ;;  %v2526_v48 = vmul.f32 %v5031_v0, %v4926_v23 }
 0x97d   :  { %v4930_v32 = vpop.eup %4929  ;;  %4551 = vrot.lane.b32.xlu0 %v4550_v39, %s5060_s3  ;;  %v2519_v29 = vadd.f32 %v4928_v9, %v2479_v2  ;;  %v2527_v19 = vmul.f32 %v5032_v6, %v4928_v9 }
 0x97e   :  { %v4932_v63 = vpop.eup %4931  ;;  %v2558_v47 = vadd.f32 %v4930_v32, %v2518_v58  ;;  %v2566_v53 = vmul.f32 %v5031_v0, %v4930_v32 }
 0x97f   :  { %v2559_v16 = vadd.f32 %v4932_v63, %v2519_v29  ;;  %v2567_v20 = vmul.f32 %v5032_v6, %v4932_v63 }
 0x980   :  { %4933 = vrcp.f32 %v2558_v47 }
 0x981   :  { %4556 = vrot.lane.b32.xlu0 %v4555_v15, %s5060_s3  ;;  %4935 = vrcp.f32 %v2559_v16 }
 0x98a   :  { %v4934_v42 = vpop.eup %4933 }
 0x98b   :  { %v4936_v38 = vpop.eup %4935  ;;  %v2606_v27 = vmul.f32 %v4934_v42, %v2566_v53  ;;  %v2598_v10 = vmul.f32 %v4934_v42, %v2526_v48  ;;  %v6976_v18 = vmul.f32 %v4934_v42, %v2446_v3  ;;  %v2590_v44 = vmul.f32 %v4934_v42, %v2486_v13  ;;  %v2875_v13 = vld [vmem:[%s7631_s14 + $0x18] sm:$0xff] }
 0x98c   :  { %v2607_v46 = vmul.f32 %v4936_v38, %v2567_v20  ;;  %v2599_v30 = vmul.f32 %v4936_v38, %v2527_v19  ;;  %v2583_v24 = vmul.f32 %v4936_v38, %v2447_v17  ;;  %v2591_v50 = vmul.f32 %v4936_v38, %v2487_v61  ;;  %v2872_v19 = vld [vmem:[%s7631_s14] sm:$0xff]  ;;  %v2873_v17 = vld [vmem:[%s7631_s14 + $0x8] sm:$0xff] }
 0x98d   :  { %v2884_v38 = vpack.c.bf16 %v2873_v17, %v2872_v19 }
 0x98e   :  { %v4560_v37 = vpack.i.bf16 %v2607_v46, %v2606_v27  ;;  %v4565_v31 = vpack.i.bf16 %v2591_v50, %v2590_v44  ;;  %v2874_v27 = vld [vmem:[%s7631_s14 + $0x10] sm:$0xff]  ;;  %v2877_v46 = vld [vmem:[%s7633_s16 + $0x8] sm:$0xff] }
 0x98f   :  { %4140 = vmatprep.subr.bf16.mxu0 %v2884_v38 }
 0x990   :  { %4561 = vrot.lane.b32.xlu0 %v4560_v37, %s5060_s3  ;;  %4141 = vmatpush3.bf16.msra.mxu0 %v2884_v38 }
 0x994   :  { %4566 = vrot.lane.b32.xlu0 %v4565_v31, %s5060_s3 }
 0x9d7   :  { %v4537_v5 = vpop.permute.xlu1 %4536  ;;  %v4532_v54 = vpop.permute.xlu0 %4531 }
 0x9d8   :  { %v4539_v1 = vunpack.i.h.bf16 %v4537_v5  ;;  %v4538_v51 = vunpack.i.l.bf16 %v4537_v5  ;;  %v4534_v21 = vunpack.i.h.bf16 %v4532_v54  ;;  %v4533_v57 = vunpack.i.l.bf16 %v4532_v54 }
 0x9da   :  { %v2673_v56 = vsel %vm858_vm1, %v6890_v33, %v4539_v1  ;;  %v2672_v60 = vsel %vm858_vm1, %v6915_v49, %v4538_v51  ;;  %v2680_v4 = vsel %vm858_vm1, %v6933_v7, %v4533_v57  ;;  %v2681_v52 = vsel %vm858_vm1, %v6936_v40, %v4534_v21 }
 0x9db   :  { %v2768_v34 = vpack.c.bf16 %v2673_v56, %v2672_v60  ;;  %v2769_v25 = vpack.c.bf16 %v2681_v52, %v2680_v4 }
 0x9dd   :  { %2831 = vmatprep.mubr.bf16.mxu1 %v2769_v25 }
 0x9de   :  { %2832 = vmatmul.mubr.bf16.vlgmr.msra.gmra.mrb[40].mxu1 %v2768_v34 }
 0x9df   :  { %v4542_v8 = vpop.permute.xlu0 %4541 }
 0x9e0   :  { %v4544_v36 = vunpack.i.h.bf16 %v4542_v8  ;;  %v4543_v28 = vunpack.i.l.bf16 %v4542_v8 }
 0x9e2   :  { %v2682_v45 = vsel %vm858_vm1, %v6939_v22, %v4543_v28  ;;  %v2683_v33 = vsel %vm858_vm1, %v6942_v55, %v4544_v36  ;;  %v2878_v28 = vld [vmem:[%s7633_s16 + $0x10] sm:$0xff] }
 0x9e3   :  { %v4547_v49 = vpop.permute.xlu0 %4546  ;;  %v2771_v23 = vpack.c.bf16 %v2683_v33, %v2682_v45  ;;  %v2879_v45 = vld [vmem:[%s7633_s16 + $0x18] sm:$0xff] }
 0x9e4   :  { %v4549_v39 = vunpack.i.h.bf16 %v4547_v49  ;;  %v4548_v7 = vunpack.i.l.bf16 %v4547_v49 }
 0x9e5   :  { %2839 = vmatprep.mubr.bf16.mxu1 %v2771_v23 }
 0x9e6   :  { %v2674_v40 = vsel %vm858_vm1, %v6946_v26, %v4548_v7  ;;  %v2675_v11 = vsel %vm858_vm1, %v6948_v62, %v4549_v39  ;;  %v2964_v39 = vpack.c.bf16 %v2879_v45, %v2878_v28 }
 0x9e7   :  { %v2770_v43 = vpack.c.bf16 %v2675_v11, %v2674_v40 }
 0x9e9   :  { %2840 = vmatmul.mubr.bf16.gmra.mrb[44].mxu1 %v2770_v43 }
 0x9ef   :  { %v4552_v2 = vpop.permute.xlu0 %4551 }
 0x9f0   :  { %v4554_v9 = vunpack.i.h.bf16 %v4552_v2  ;;  %v4553_v58 = vunpack.i.l.bf16 %v4552_v2 }
 0x9f2   :  { %v2684_v22 = vsel %vm858_vm1, %v6959_v59, %v4553_v58  ;;  %v2685_v55 = vsel %vm858_vm1, %v6964_v12, %v4554_v9 }
 0x9f3   :  { %v4557_v32 = vpop.permute.xlu0 %4556  ;;  %v2773_v29 = vpack.c.bf16 %v2685_v55, %v2684_v22 }
 0x9f4   :  { %v4559_v63 = vunpack.i.h.bf16 %v4557_v32  ;;  %v4558_v47 = vunpack.i.l.bf16 %v4557_v32 }
 0x9f5   :  { %2847 = vmatprep.mubr.bf16.mxu1 %v2773_v29 }
 0x9f6   :  { %v2676_v26 = vsel %vm858_vm1, %v6961_v14, %v4558_v47  ;;  %v2677_v62 = vsel %vm858_vm1, %v6966_v41, %v4559_v63 }
 0x9f7   :  { %v2772_v15 = vpack.c.bf16 %v2677_v62, %v2676_v26 }
 0x9f9   :  { %2848 = vmatmul.mubr.bf16.gmra.mrb[48].mxu1 %v2772_v15 }
 0xa02   :  { %v4562_v16 = vpop.permute.xlu0 %4561 }
 0xa03   :  { %v4564_v0 = vunpack.i.h.bf16 %v4562_v16  ;;  %v4563_v53 = vunpack.i.l.bf16 %v4562_v16 }
 0xa05   :  { %v2686_v59 = vsel %vm858_vm1, %v2598_v10, %v4563_v53  ;;  %v2687_v12 = vsel %vm858_vm1, %v2599_v30, %v4564_v0  ;;  %v2885_v10 = vpack.c.bf16 %v2875_v13, %v2874_v27 }
 0xa06   :  { %v4567_v48 = vpop.permute.xlu0 %4566  ;;  %v2775_v3 = vpack.c.bf16 %v2687_v12, %v2686_v59 }
 0xa07   :  { %v4569_v42 = vunpack.i.h.bf16 %v4567_v48  ;;  %v4568_v6 = vunpack.i.l.bf16 %v4567_v48  ;;  %4142 = vmatprep.subr.bf16.mxu0 %v2885_v10 }
 0xa08   :  { %2855 = vmatprep.mubr.bf16.mxu1 %v2775_v3  ;;  %4143 = vmatpush3.bf16.msra.mxu0 %v2885_v10 }
 0xa09   :  { %v2678_v14 = vsel %vm858_vm1, %v6976_v18, %v4568_v6  ;;  %v2679_v20 = vsel %vm858_vm1, %v2583_v24, %v4569_v42  ;;  %v2876_v18 = vld [vmem:[%s7633_s16] sm:$0xff]  ;;  %s3846_s16 = sld [smem:[#allocation2 + $0x180]] }
 0xa0a   :  { %v2774_v41 = vpack.c.bf16 %v2679_v20, %v2678_v14  ;;  %v2963_v61 = vpack.c.bf16 %v2877_v46, %v2876_v18  ;;  %v3837_v24 = vld [vmem:[%s7629_s12] ss:$0 sm:$0xff] }
 0xa0c   :  { %2856 = vmatmul.mubr.bf16.gmra.mrb[52].mxu1 %v2774_v41  ;;  %4152 = vmatprep.subr.bf16.mxu0 %v2963_v61 }
 0xab1   :  { %v3986_v30 = vpop.f32.mrb[40].mxu1 }
 0xab2   :  { %v3987_v37 = vpop.f32.mrb[41].mxu1 }
 0xab3   :  { %v3988_v44 = vadd.f32 %v3987_v37, %v3986_v30  ;;  %v3989_v50 = vpop.f32.mrb[42].mxu1 }
 0xab4   :  { %v3990_v31 = vpop.f32.mrb[43].mxu1 }
 0xab5   :  { %v2834_v5 = vadd.f32 %v3988_v44, %v3837_v24  ;;  %v3991_v54 = vadd.f32 %v3990_v31, %v3989_v50  ;;  %v7721_v31 = vmov 1  }
 0xab7   :  { %v2837_v1 = vadd.f32 %v3991_v54, %v3837_v24  ;;  %v2864_v51 = vmax.f32 %v2834_v5, 0.0 }
 0xab9   :  { %v2865_v21 = vmax.f32 %v2837_v1, 0.0  ;;  %v7722_v1 = vmov 0  }
 0xabb   :  { %v2880_v57 = vpack.c.bf16 %v2865_v21, %v2864_v51 }
 0xabc   :  { %v3992_v56 = vpop.f32.mrb[44].mxu1 }
 0xabd   :  { %v3993_v60 = vpop.f32.mrb[45].mxu1  ;;  %4144 = vmatprep.mubr.msk.bf16.mxu0 %vm1073_vm2, %v2880_v57 }
 0xabe   :  { %v3994_v4 = vadd.f32 %v3993_v60, %v3992_v56  ;;  %v3995_v52 = vpop.f32.mrb[46].mxu1 }
 0xabf   :  { %v3996_v34 = vpop.f32.mrb[47].mxu1 }
 0xac0   :  { %v2842_v25 = vadd.f32 %v3994_v4, %v3837_v24  ;;  %v3997_v8 = vadd.f32 %v3996_v34, %v3995_v52 }
 0xac2   :  { %v2845_v36 = vadd.f32 %v3997_v8, %v3837_v24  ;;  %v2866_v33 = vmax.f32 %v2842_v25, 0.0 }
 0xac4   :  { %v2867_v49 = vmax.f32 %v2845_v36, 0.0 }
 0xac6   :  { %v2881_v23 = vpack.c.bf16 %v2867_v49, %v2866_v33 }
 0xac8   :  { %4145 = vmatmul.mubr.msk.bf16.vlgmr.msra.gmra.mrb[48].mxu0 %vm1073_vm2, %v2881_v23 }
 0xac9   :  { %4153 = vmatpush3.bf16.msra.mxu0 %v2963_v61 }
 0xaca   :  { %4154 = vmatprep.subr.bf16.mxu0 %v2964_v39 }
 0xacc   :  { %v3998_v7 = vpop.f32.mrb[48].mxu1 }
 0xacd   :  { %v3999_v40 = vpop.f32.mrb[49].mxu1  ;;  %4155 = vmatpush3.bf16.msra.mxu0 %v2964_v39 }
 0xace   :  { %v4000_v11 = vadd.f32 %v3999_v40, %v3998_v7  ;;  %v4001_v43 = vpop.f32.mrb[50].mxu1 }
 0xacf   :  { %v4002_v2 = vpop.f32.mrb[51].mxu1 }
 0xad0   :  { %v2850_v9 = vadd.f32 %v4000_v11, %v3837_v24  ;;  %v4003_v58 = vadd.f32 %v4002_v2, %v4001_v43 }
 0xad2   :  { %v2853_v22 = vadd.f32 %v4003_v58, %v3837_v24  ;;  %v2868_v55 = vmax.f32 %v2850_v9, 0.0 }
 0xad4   :  { %v2869_v32 = vmax.f32 %v2853_v22, 0.0 }
 0xad6   :  { %v2882_v29 = vpack.c.bf16 %v2869_v32, %v2868_v55 }
 0xad8   :  { %4148 = vmatprep.mubr.msk.bf16.mxu0 %vm1073_vm2, %v2882_v29 }
 0xadf   :  { %v4004_v63 = vpop.f32.mrb[52].mxu1 }
 0xae0   :  { %v4005_v47 = vpop.f32.mrb[53].mxu1 }
 0xae1   :  { %v4006_v26 = vadd.f32 %v4005_v47, %v4004_v63  ;;  %v4007_v62 = vpop.f32.mrb[54].mxu1 }
 0xae2   :  { %v4008_v15 = vpop.f32.mrb[55].mxu1 }
 0xae3   :  { %v2858_v16 = vadd.f32 %v4006_v26, %v3837_v24  ;;  %v4009_v0 = vadd.f32 %v4008_v15, %v4007_v62 }
 0xae5   :  { %v2861_v53 = vadd.f32 %v4009_v0, %v3837_v24  ;;  %v2870_v59 = vmax.f32 %v2858_v16, 0.0 }
 0xae7   :  { %v2871_v12 = vmax.f32 %v2861_v53, 0.0 }
 0xae9   :  { %v2883_v48 = vpack.c.bf16 %v2871_v12, %v2870_v59 }
 0xaeb   :  { %4149 = vmatmul.mubr.msk.bf16.gmra.mrb[52].mxu0 %vm1073_vm2, %v2883_v48 }
 0xaec   :  { %4156 = vmatprep.mubr.msk.bf16.mxu0 %vm1073_vm2, %v2880_v57  ;;  %v7723_v57 = vmov 2  }
 0xaf3   :  { %4157 = vmatmul.mubr.msk.bf16.vlgmr.msra.gmra.mrb[56].mxu0 %vm1073_vm2, %v2881_v23 }
 0xaf4   :  { %4160 = vmatprep.mubr.msk.bf16.mxu0 %vm1073_vm2, %v2882_v29 }
 0xafb   :  { %4161 = vmatmul.mubr.msk.bf16.gmra.mrb[60].mxu0 %vm1073_vm2, %v2883_v48 }
 0xb9b   :  { %v4146_v3 = vpop.f32.mrb[48].mxu0 }
 0xb9c   :  { %v2932_v42 = vpop.f32.mrb[49].mxu0 }
 0xb9d   :  { %v4147_v6 = vpop.f32.mrb[50].mxu0 }
 0xb9e   :  { %v7044_v14 = vpack.i.bf16 %v4147_v6, %v4146_v3  ;;  %v7046_v20 = vpack.c.bf16 %v4147_v6, %v4146_v3  ;;  %v2935_v41 = vpop.f32.mrb[51].mxu0 }
 0xb9f   :  { %v7048_v19 = vpack.i.bf16 %v2935_v41, %v2932_v42  ;;  %v7050_v17 = vpack.c.bf16 %v2935_v41, %v2932_v42 }
 0xbbe   :  { %v4150_v38 = vpop.f32.mrb[52].mxu0 }
 0xbbf   :  { %v2948_v27 = vpop.f32.mrb[53].mxu0 }
 0xbc0   :  { %v4151_v13 = vpop.f32.mrb[54].mxu0 }
 0xbc1   :  { %v7052_v10 = vpack.i.bf16 %v4151_v13, %v4150_v38  ;;  %v7054_v18 = vpack.c.bf16 %v4151_v13, %v4150_v38  ;;  %v2951_v46 = vpop.f32.mrb[55].mxu0 }
 0xbc2   :  { %v7056_v61 = vpack.i.bf16 %v2951_v46, %v2948_v27  ;;  %v7058_v30 = vpack.c.bf16 %v2951_v46, %v2948_v27 }
 0xbc6   :  { %v7060_v24 = vpop.f32.mrb[56].mxu0 }
 0xbc7   :  { %3199 = vperm.xlu1 %4468, %v7060_v24   ;;  %3078 = vperm.xlu0 %4570, %v7060_v24   ;;  %v7064_v37 = vpop.f32.mrb[57].mxu0 }
 0xbc8   :  { %v7066_v44 = vpop.f32.mrb[58].mxu0 }
 0xbc9   :  { %v7068_v50 = vpop.f32.mrb[59].mxu0 }
 0xbcb   :  { %4572 = vset.pattern.permute.xlu1 %v7714_v35  ;;  %4571 = vset.pattern.permute.xlu0 %v7721_v31 }
 0xbcc   :  { %3261 = vperm.xlu1 %4572, %v7060_v24   ;;  %3137 = vperm.xlu0 %4571, %v7060_v24  }
 0xbce   :  { %v7074_v5 = vpop.f32.mrb[60].mxu0 }
 0xbcf   :  { %v7076_v54 = vpop.f32.mrb[61].mxu0 }
 0xbd0   :  { %4573 = vset.pattern.permute.xlu1 %v7722_v1  ;;  %3129 = vperm.xlu0 %4571, %v7064_v37   ;;  %v7080_v51 = vpop.f32.mrb[62].mxu0 }
 0xbd1   :  { %3068 = vperm.xlu1 %4573, %v7064_v37   ;;  %v7083_v21 = vpop.f32.mrb[63].mxu0 }
 0xbd4   :  { %4577 = vset.pattern.permute.xlu0 %v7723_v57 }
 0xbd5   :  { %4574 = vset.pattern.permute.xlu1 %v7723_v57  ;;  %3203 = vperm.xlu0 %4577, %v7066_v44  }
 0xbd6   :  { %3191 = vperm.xlu1 %4574, %v7064_v37  }
 0xbd9   :  { %4579 = vset.pattern.permute.xlu0 %v7722_v1 }
 0xbda   :  { %4575 = vset.pattern.permute.xlu1 %v7722_v1  ;;  %3073 = vperm.xlu0 %4579, %v7068_v50  }
 0xbdb   :  { %3083 = vperm.xlu1 %4575, %v7066_v44  }
 0xbde   :  { %4581 = vset.pattern.permute.xlu0 %v7723_v57 }
 0xbdf   :  { %4576 = vset.pattern.permute.xlu1 %v7721_v31  ;;  %3195 = vperm.xlu0 %4581, %v7068_v50  }
 0xbe0   :  { %3141 = vperm.xlu1 %4576, %v7066_v44  }
 0xbe3   :  { %4585 = vset.pattern.permute.xlu0 %v7722_v1 }
 0xbe4   :  { %4578 = vset.pattern.permute.xlu1 %v7714_v35  ;;  %3088 = vperm.xlu0 %4585, %v7076_v54  }
 0xbe5   :  { %3265 = vperm.xlu1 %4578, %v7066_v44  }
 0xbe8   :  { %4588 = vset.pattern.permute.xlu0 %v7714_v35 }
 0xbe9   :  { %4580 = vset.pattern.permute.xlu1 %v7721_v31  ;;  %3269 = vperm.xlu0 %4588, %v7076_v54  }
 0xbea   :  { %3133 = vperm.xlu1 %4580, %v7068_v50  }
 0xbed   :  { %4590 = vset.pattern.permute.xlu0 %v7721_v31 }
 0xbee   :  { %4582 = vset.pattern.permute.xlu1 %v7722_v1  ;;  %3157 = vperm.xlu0 %4590, %v7080_v51  }
 0xbef   :  { %3098 = vperm.xlu1 %4582, %v7074_v5  }
 0xbf2   :  { %3149 = vperm.xlu0 %4590, %v7083_v21  }
 0xbf3   :  { %4583 = vset.pattern.permute.xlu1 %v7721_v31 }
 0xbf4   :  { %3153 = vperm.xlu1 %4583, %v7074_v5  }
 0xbf6   :  { %4593 = vset.pattern.permute.xlu0 %v7714_v35 }
 0xbf7   :  { %3253 = vperm.xlu0 %4593, %v7064_v37  }
 0xbf8   :  { %4584 = vset.pattern.permute.xlu1 %v7723_v57 }
 0xbf9   :  { %3215 = vperm.xlu1 %4584, %v7074_v5  }
 0xbfb   :  { %3281 = vperm.xlu0 %4593, %v7080_v51  }
 0xbfd   :  { %4586 = vset.pattern.permute.xlu1 %v7721_v31 }
 0xbfe   :  { %3145 = vperm.xlu1 %4586, %v7076_v54  }
 0xbff   :  { %4598 = vrot.lane.b32.xlu0 %v7048_v19, %s5060_s3 }
 0xc02   :  { %4587 = vset.pattern.permute.xlu1 %v7723_v57 }
 0xc03   :  { %3207 = vperm.xlu1 %4587, %v7076_v54   ;;  %4603 = vrot.lane.b32.xlu0 %v7044_v14, %s5060_s3 }
 0xc07   :  { %4589 = vset.pattern.permute.xlu1 %v7722_v1  ;;  %4608 = vrot.lane.b32.xlu0 %v7056_v61, %s5060_s3 }
 0xc08   :  { %3103 = vperm.xlu1 %4589, %v7080_v51  }
 0xc0b   :  { %4613 = vrot.lane.b32.xlu0 %v7052_v10, %s5060_s3 }
 0xc0c   :  { %4591 = vset.pattern.permute.xlu1 %v7723_v57 }
 0xc0d   :  { %3219 = vperm.xlu1 %4591, %v7080_v51  }
 0xc0f   :  { %4618 = vrot.lane.b32.xlu0 %v7048_v19, %s5061_s1 }
 0xc11   :  { %4592 = vset.pattern.permute.xlu1 %v7722_v1 }
 0xc12   :  { %3093 = vperm.xlu1 %4592, %v7083_v21  }
 0xc13   :  { %4623 = vrot.lane.b32.xlu0 %v7048_v19, %s5062_s25 }
 0xc16   :  { %4594 = vset.pattern.permute.xlu1 %v7714_v35 }
 0xc17   :  { %4628 = vrot.lane.b32.xlu0 %v7044_v14, %s5061_s1  ;;  %3257 = vperm.xlu1 %4594, %v7068_v50  }
 0xc1b   :  { %4633 = vrot.lane.b32.xlu0 %v7044_v14, %s5062_s25  ;;  %3277 = vperm.xlu1 %4594, %v7074_v5  }
 0xc1f   :  { %4638 = vrot.lane.b32.xlu0 %v7056_v61, %s5061_s1  ;;  %4595 = vset.pattern.permute.xlu1 %v7723_v57 }
 0xc20   :  { %3211 = vperm.xlu1 %4595, %v7083_v21  }
 0xc23   :  { %4643 = vrot.lane.b32.xlu0 %v7056_v61, %s5062_s25 }
 0xc24   :  { %4596 = vset.pattern.permute.xlu1 %v7714_v35 }
 0xc25   :  { %3273 = vperm.xlu1 %4596, %v7083_v21  }
 0xc27   :  { %4648 = vrot.lane.b32.xlu0 %v7052_v10, %s5061_s1  ;;  %s3847_s1 = sld [smem:[#allocation2 + $0x181]] }
 0xc2b   :  { %4653 = vrot.lane.b32.xlu0 %v7052_v10, %s5062_s25  ;;  %s3848_s25 = sld [smem:[#allocation2 + $0x182]] }
 0xc46   :  { %v7158_v56 = vpop.permute.xlu0 %3078  ;;  %v7169_v35 = vpop.permute.xlu1 %3199 }
 0xc4b   :  { %v7160_v60 = vpop.permute.xlu0 %3137  ;;  %v7174_v25 = vpop.permute.xlu1 %3261 }
 0xc4e   :  { %3030 = vxpose.xlu1.b32.start [1/8] (short) (narrow) %v7064_v37, 8 }
 0xc4f   :  { %v7163_v4 = vpop.permute.xlu0 %3129 }
 0xc50   :  { %v7182_v28 = vpop.permute.xlu1 %3068 }
 0xc52   :  { %3031 = vxpose.xlu1.b32.cont [2/8] (short) (narrow) %v7068_v50, 8 }
 0xc54   :  { %v7166_v52 = vpop.permute.xlu0 %3203 }
 0xc55   :  { %v7187_v33 = vpop.permute.xlu1 %3191 }
 0xc56   :  { %3032 = vxpose.xlu1.b32.cont [3/8] (short) (narrow) %v7060_v24, 8 }
 0xc59   :  { %v7171_v34 = vpop.permute.xlu0 %3073 }
 0xc5a   :  { %3033 = vxpose.xlu1.b32.cont [4/8] (short) (narrow) %v7066_v44, 8  ;;  %v7192_v23 = vpop.permute.xlu1 %3083 }
 0xc5e   :  { %v7176_v8 = vpop.permute.xlu0 %3195  ;;  %3034 = vxpose.xlu1.b32.cont [5/8] (short) (narrow) %v7076_v54, 8 }
 0xc5f   :  { %v7196_v7 = vpop.permute.xlu1 %3141 }
 0xc62   :  { %3035 = vxpose.xlu1.b32.cont [6/8] (short) (narrow) %v7083_v21, 8 }
 0xc63   :  { %v7180_v36 = vpop.permute.xlu0 %3088 }
 0xc64   :  { %v7202_v43 = vpop.permute.xlu1 %3265 }
 0xc66   :  { %3036 = vxpose.xlu1.b32.cont [7/8] (short) (narrow) %v7074_v5, 8 }
 0xc68   :  { %v7185_v45 = vpop.permute.xlu0 %3269 }
 0xc69   :  { %v7204_v55 = vpop.permute.xlu1 %3133 }
 0xc6a   :  { %3037 = vxpose.xlu1.b32.end [8/8] (short) (narrow) %v7080_v51, 8 }
 0xc6d   :  { %v7190_v49 = vpop.permute.xlu0 %3157 }
 0xc6e   :  { %v7208_v16 = vpop.permute.xlu1 %3098 }
 0xc71   :  { %v7194_v39 = vpop.permute.xlu0 %3149 }
 0xc73   :  { %v7214_v3 = vpop.permute.xlu1 %3153 }
 0xc76   :  { %v7198_v40 = vpop.permute.xlu0 %3253 }
 0xc78   :  { %v7218_v38 = vpop.permute.xlu1 %3215 }
 0xc7a   :  { %v7200_v11 = vpop.permute.xlu0 %3281 }
 0xc7e   :  { %v4599_v2 = vpop.permute.xlu0 %4598 }
 0xc7f   :  { %v4601_v9 = vunpack.i.h.bf16 %v4599_v2  ;;  %v4600_v58 = vunpack.i.l.bf16 %v4599_v2 }
 0xc81   :  { %v3686_v22 = vpack.c.bf16 %v4601_v9, %v4600_v58 }
 0xc82   :  { %v4604_v32 = vpop.permute.xlu0 %4603 }
 0xc83   :  { %v4606_v29 = vunpack.i.h.bf16 %v4604_v32  ;;  %v4605_v63 = vunpack.i.l.bf16 %v4604_v32  ;;  %4022 = vmatprep.subr.bf16.mxu0 %v3686_v22  ;;  %4164 = vmatprep.subr.bf16.mxu1 %v3686_v22 }
 0xc84   :  { %4023 = vmatpush3.bf16.msra.mxu0 %v7050_v17  ;;  %4172 = vmatpush3.bf16.msra.mxu1 %v7050_v17 }
 0xc85   :  { %v3687_v47 = vpack.c.bf16 %v4606_v29, %v4605_v63 }
 0xc86   :  { %v4609_v26 = vpop.permute.xlu0 %4608 }
 0xc87   :  { %v4611_v62 = vunpack.i.h.bf16 %v4609_v26  ;;  %v4610_v15 = vunpack.i.l.bf16 %v4609_v26  ;;  %4024 = vmatprep.subr.bf16.mxu0 %v3687_v47  ;;  %4165 = vmatprep.subr.bf16.mxu1 %v3687_v47 }
 0xc88   :  { %4025 = vmatpush3.bf16.msra.mxu0 %v7046_v20  ;;  %4173 = vmatpush3.bf16.msra.mxu1 %v7046_v20 }
 0xc89   :  { %v3688_v0 = vpack.c.bf16 %v4611_v62, %v4610_v15 }
 0xc8a   :  { %v4614_v53 = vpop.permute.xlu0 %4613 }
 0xc8b   :  { %v4616_v59 = vunpack.i.h.bf16 %v4614_v53  ;;  %v4615_v12 = vunpack.i.l.bf16 %v4614_v53  ;;  %4026 = vmatprep.subr.bf16.mxu0 %v3688_v0  ;;  %4166 = vmatprep.subr.bf16.mxu1 %v3688_v0 }
 0xc8c   :  { %4027 = vmatpush3.bf16.msra.mxu0 %v7058_v30  ;;  %4174 = vmatpush3.bf16.msra.mxu1 %v7058_v30  ;;  %v7220_v30 = vpop.permute.xlu1 %3145 }
 0xc8d   :  { %v3689_v48 = vpack.c.bf16 %v4616_v59, %v4615_v12 }
 0xc8e   :  { %v4619_v42 = vpop.permute.xlu0 %4618 }
 0xc8f   :  { %v4621_v6 = vunpack.i.h.bf16 %v4619_v42  ;;  %v4620_v14 = vunpack.i.l.bf16 %v4619_v42  ;;  %4028 = vmatprep.subr.bf16.mxu0 %v3689_v48  ;;  %4167 = vmatprep.subr.bf16.mxu1 %v3689_v48 }
 0xc90   :  { %4029 = vmatpush3.bf16.msra.mxu0 %v7054_v18  ;;  %4175 = vmatpush3.bf16.msra.mxu1 %v7054_v18  ;;  %v7222_v54 = vpop.permute.xlu1 %3207 }
 0xc91   :  { %v3690_v20 = vpack.c.bf16 %v4621_v6, %v4620_v14  ;;  %v7724_v6 = vld [vmem:[#allocation13_spill] sm:$0xff] }
 0xc92   :  { %v4624_v41 = vpop.permute.xlu0 %4623 }
 0xc93   :  { %v4626_v19 = vunpack.i.h.bf16 %v4624_v41  ;;  %v4625_v17 = vunpack.i.l.bf16 %v4624_v41  ;;  %4030 = vmatprep.subr.bf16.mxu0 %v3690_v20  ;;  %4168 = vmatprep.subr.bf16.mxu1 %v3690_v20  ;;  %v7725_v20 = vld [vmem:[#allocation14_spill] sm:$0xff] }
 0xc94   :  { %v3104_v9 = vpop.permute.xlu1 %3103 }
 0xc95   :  { %v3682_v27 = vpack.c.bf16 %v4626_v19, %v4625_v17  ;;  %v7726_v19 = vld [vmem:[#allocation15_spill] sm:$0xff] }
 0xc96   :  { %v4629_v13 = vpop.permute.xlu0 %4628 }
 0xc97   :  { %v4631_v10 = vunpack.i.h.bf16 %v4629_v13  ;;  %v4630_v46 = vunpack.i.l.bf16 %v4629_v13  ;;  %4031 = vmatpush3.bf16.msra.mxu0 %v3682_v27  ;;  %4176 = vmatpush3.bf16.msra.mxu1 %v3682_v27  ;;  %v7727_v27 = vld [vmem:[#allocation16_spill] sm:$0xff] }
 0xc98   :  { %v3220_v62 = vpop.permute.xlu1 %3219 }
 0xc99   :  { %v3691_v61 = vpack.c.bf16 %v4631_v10, %v4630_v46  ;;  %v7244_v10 = vstv %s3846_s16  ;;  %v7246_v46 = vstv %s3847_s1 }
 0xc9a   :  { %v4634_v24 = vpop.permute.xlu0 %4633 }
 0xc9b   :  { %v4636_v37 = vunpack.i.h.bf16 %v4634_v24  ;;  %v4635_v18 = vunpack.i.l.bf16 %v4634_v24  ;;  %4032 = vmatprep.subr.bf16.mxu0 %v3691_v61  ;;  %4169 = vmatprep.subr.bf16.mxu1 %v3691_v61  ;;  %v7248_v61 = vstv %s3848_s25  ;;  %v7250_v24 = vstv %s3849_s4 }
 0xc9c   :  { %v7224_v0 = vpop.permute.xlu1 %3093 }
 0xc9d   :  { %v3683_v44 = vpack.c.bf16 %v4636_v37, %v4635_v18 }
 0xc9e   :  { %v4639_v50 = vpop.permute.xlu0 %4638 }
 0xc9f   :  { %v4641_v31 = vunpack.i.h.bf16 %v4639_v50  ;;  %v4640_v5 = vunpack.i.l.bf16 %v4639_v50  ;;  %4033 = vmatpush3.bf16.msra.mxu0 %v3683_v44  ;;  %4177 = vmatpush3.bf16.msra.mxu1 %v3683_v44 }
 0xca0   :  { %v7226_v53 = vpop.permute.xlu1 %3257 }
 0xca1   :  { %v3692_v1 = vpack.c.bf16 %v4641_v31, %v4640_v5 }
 0xca2   :  { %v4644_v51 = vpop.permute.xlu0 %4643 }
 0xca3   :  { %v4646_v21 = vunpack.i.h.bf16 %v4644_v51  ;;  %v4645_v57 = vunpack.i.l.bf16 %v4644_v51  ;;  %4034 = vmatprep.subr.bf16.mxu0 %v3692_v1  ;;  %4170 = vmatprep.subr.bf16.mxu1 %v3692_v1 }
 0xca4   :  { %v3278_v59 = vpop.permute.xlu1 %3277 }
 0xca5   :  { %v3684_v2 = vpack.c.bf16 %v4646_v21, %v4645_v57 }
 0xca6   :  { %v4649_v58 = vpop.permute.xlu0 %4648 }
 0xca7   :  { %v4651_v22 = vunpack.i.h.bf16 %v4649_v58  ;;  %v4650_v32 = vunpack.i.l.bf16 %v4649_v58  ;;  %4035 = vmatpush3.bf16.msra.mxu0 %v3684_v2  ;;  %4178 = vmatpush3.bf16.msra.mxu1 %v3684_v2 }
 0xca8   :  { %v7228_v12 = vpop.permute.xlu1 %3211 }
 0xca9   :  { %v3693_v29 = vpack.c.bf16 %v4651_v22, %v4650_v32 }
 0xcaa   :  { %v4654_v63 = vpop.permute.xlu0 %4653 }
 0xcab   :  { %v4656_v47 = vunpack.i.h.bf16 %v4654_v63  ;;  %v4655_v26 = vunpack.i.l.bf16 %v4654_v63  ;;  %4036 = vmatprep.subr.bf16.mxu0 %v3693_v29  ;;  %4171 = vmatprep.subr.bf16.mxu1 %v3693_v29 }
 0xcac   :  { %v7230_v48 = vpop.permute.xlu1 %3273 }
 0xcad   :  { %v3685_v15 = vpack.c.bf16 %v4656_v47, %v4655_v26 }
 0xcaf   :  { %4037 = vmatpush3.bf16.msra.mxu0 %v3685_v15  ;;  %4179 = vmatpush3.bf16.msra.mxu1 %v3685_v15 }
 0xcce   :  { %v3046_v42 = vpop.trf.xlu1 }
 0xccf   :  { %v7233_v14 = vrot.slane %v3046_v42, %v7724_v6  ;;  %v7236_v41 = vrot.slane %v3046_v42, %v7725_v20  ;;  %v7239_v17 = vrot.slane %v3046_v42, %v7726_v19  ;;  %v7242_v13 = vrot.slane %v3046_v42, %v7727_v27 }
 0xcd1   :  { %v3112_v37 = vsub.f32 %v7233_v14, %v7208_v16  ;;  %v3113_v18 = vsub.f32 %v7233_v14, %v3104_v9  ;;  %v3166_v44 = vsub.f32 %v7236_v41, %v7214_v3  ;;  %v3167_v50 = vsub.f32 %v7236_v41, %v7190_v49 }
 0xcd2   :  { %v3228_v31 = vsub.f32 %v7239_v17, %v7218_v38  ;;  %v3229_v5 = vsub.f32 %v7239_v17, %v3220_v62  ;;  %v3290_v1 = vsub.f32 %v7242_v13, %v3278_v59  ;;  %v3291_v51 = vsub.f32 %v7242_v13, %v7200_v11 }
 0xcd3   :  { %v3122_v16 = vadd.f32 %v7244_v10, %v3112_v37  ;;  %v3123_v21 = vadd.f32 %v7244_v10, %v3113_v18  ;;  %v3176_v57 = vadd.f32 %v7246_v46, %v3166_v44  ;;  %v3177_v3 = vadd.f32 %v7246_v46, %v3167_v50 }
 0xcd4   :  { %v3238_v49 = vadd.f32 %v7248_v61, %v3228_v31  ;;  %v3239_v2 = vadd.f32 %v7248_v61, %v3229_v5  ;;  %v3300_v38 = vadd.f32 %v7250_v24, %v3290_v1  ;;  %v3301_v9 = vadd.f32 %v7250_v24, %v3291_v51 }
 0xcd5   :  { %v3184_v58 = vmax.f32 %v3122_v16, %v3176_v57  ;;  %v3185_v22 = vmax.f32 %v3123_v21, %v3177_v3  ;;  %v3108_v11 = vsub.f32 %v7233_v14, %v7158_v56  ;;  %v3109_v32 = vsub.f32 %v7233_v14, %v7192_v23 }
 0xcd6   :  { %v3162_v29 = vsub.f32 %v7236_v41, %v7160_v60  ;;  %v3163_v63 = vsub.f32 %v7236_v41, %v7196_v7  ;;  %v3224_v47 = vsub.f32 %v7239_v17, %v7169_v35  ;;  %v3225_v26 = vsub.f32 %v7239_v17, %v7166_v52 }
 0xcd7   :  { %v3246_v62 = vmax.f32 %v3184_v58, %v3238_v49  ;;  %v3247_v15 = vmax.f32 %v3185_v22, %v3239_v2  ;;  %v3118_v59 = vadd.f32 %v7244_v10, %v3108_v11  ;;  %v3119_v56 = vadd.f32 %v7244_v10, %v3109_v32 }
 0xcd8   :  { %v3172_v23 = vadd.f32 %v7246_v46, %v3162_v29  ;;  %v3173_v42 = vadd.f32 %v7246_v46, %v3163_v63  ;;  %v3234_v60 = vadd.f32 %v7248_v61, %v3224_v47  ;;  %v3235_v7 = vadd.f32 %v7248_v61, %v3225_v26 }
 0xcd9   :  { %v3308_v6 = vmax.f32 %v3246_v62, %v3300_v38  ;;  %v3309_v20 = vmax.f32 %v3247_v15, %v3301_v9  ;;  %v3286_v35 = vsub.f32 %v7242_v13, %v7174_v25  ;;  %v3287_v52 = vsub.f32 %v7242_v13, %v7202_v43 }
 0xcda   :  { %v3180_v19 = vmax.f32 %v3118_v59, %v3172_v23  ;;  %v3181_v27 = vmax.f32 %v3119_v56, %v3173_v42  ;;  %v3106_v37 = vsub.f32 %v7233_v14, %v7182_v28  ;;  %v3107_v18 = vsub.f32 %v7233_v14, %v7171_v34 }
 0xcdb   :  { %v3316_v44 = vsub.f32 %v3122_v16, %v3308_v6  ;;  %v3317_v50 = vsub.f32 %v3123_v21, %v3309_v20  ;;  %v3356_v31 = vsub.f32 %v3176_v57, %v3308_v6  ;;  %v3357_v5 = vsub.f32 %v3177_v3, %v3309_v20 }
 0xcdc   :  { %v3396_v1 = vsub.f32 %v3238_v49, %v3308_v6  ;;  %v3397_v51 = vsub.f32 %v3239_v2, %v3309_v20  ;;  %v3436_v58 = vsub.f32 %v3300_v38, %v3308_v6  ;;  %v3437_v22 = vsub.f32 %v3301_v9, %v3309_v20 }
 0xcdd   :  { %v3330_v25 = vmul.f32 1.442695, %v3316_v44  ;;  %v3332_v11 = vmul.f32 1.442695, %v3317_v50  ;;  %v3370_v32 = vmul.f32 1.442695, %v3356_v31  ;;  %v3242_v43 = vmax.f32 %v3180_v19, %v3234_v60 }
 0xcde   :  { %v3372_v29 = vmul.f32 1.442695, %v3357_v5  ;;  %v3410_v63 = vmul.f32 1.442695, %v3396_v1  ;;  %v3412_v47 = vmul.f32 1.442695, %v3397_v51  ;;  %v3243_v26 = vmax.f32 %v3181_v27, %v3235_v7 }
 0xcdf   :  { %4937 = vpow2.f32 %v3330_v25  ;;  %v3450_v28 = vmul.f32 1.442695, %v3436_v58  ;;  %v3452_v62 = vmul.f32 1.442695, %v3437_v22  ;;  %v3296_v34 = vadd.f32 %v7250_v24, %v3286_v35 }
 0xce0   :  { %4939 = vpow2.f32 %v3332_v11  ;;  %v3297_v16 = vadd.f32 %v7250_v24, %v3287_v52  ;;  %v7302_v21 = vadd.f32 %v7244_v10, %v3106_v37  ;;  %v7305_v57 = vadd.f32 %v7244_v10, %v3107_v18 }
 0xce1   :  { %4941 = vpow2.f32 %v3370_v32  ;;  %v3304_v3 = vmax.f32 %v3242_v43, %v3296_v34  ;;  %v3160_v49 = vsub.f32 %v7236_v41, %v7163_v4  ;;  %v3161_v2 = vsub.f32 %v7236_v41, %v7204_v55 }
 0xce2   :  { %4943 = vpow2.f32 %v3372_v29  ;;  %v3305_v38 = vmax.f32 %v3243_v26, %v3297_v16  ;;  %v3222_v9 = vsub.f32 %v7239_v17, %v7187_v33  ;;  %v3223_v15 = vsub.f32 %v7239_v17, %v7176_v8 }
 0xce3   :  { %4945 = vpow2.f32 %v3410_v63  ;;  %v3312_v6 = vsub.f32 %v3118_v59, %v3304_v3  ;;  %v3352_v20 = vsub.f32 %v3172_v23, %v3304_v3  ;;  %v3392_v35 = vsub.f32 %v3234_v60, %v3304_v3 }
 0xce4   :  { %4947 = vpow2.f32 %v3412_v47  ;;  %v3313_v52 = vsub.f32 %v3119_v56, %v3305_v38  ;;  %v3353_v19 = vsub.f32 %v3173_v42, %v3305_v38  ;;  %v3393_v27 = vsub.f32 %v3235_v7, %v3305_v38 }
 0xce5   :  { %4949 = vpow2.f32 %v3450_v28  ;;  %v3322_v4 = vmul.f32 1.442695, %v3312_v6  ;;  %v3362_v37 = vmul.f32 1.442695, %v3352_v20  ;;  %v3402_v55 = vmul.f32 1.442695, %v3392_v35 }
 0xce6   :  { %4951 = vpow2.f32 %v3452_v62  ;;  %v3324_v18 = vmul.f32 1.442695, %v3313_v52  ;;  %v3364_v44 = vmul.f32 1.442695, %v3353_v19  ;;  %v3404_v50 = vmul.f32 1.442695, %v3393_v27 }
 0xce7   :  { %4953 = vpow2.f32 %v3322_v4  ;;  %v3432_v33 = vsub.f32 %v3296_v34, %v3304_v3  ;;  %v3433_v31 = vsub.f32 %v3297_v16, %v3305_v38  ;;  %v3170_v8 = vadd.f32 %v7246_v46, %v3160_v49 }
 0xce8   :  { %4955 = vpow2.f32 %v3324_v18  ;;  %v3171_v59 = vadd.f32 %v7246_v46, %v3161_v2  ;;  %v3232_v56 = vadd.f32 %v7248_v61, %v3222_v9  ;;  %v3233_v23 = vadd.f32 %v7248_v61, %v3223_v15 }
 0xce9   :  { %v7319_v42 = vpop.eup %4937  ;;  %4957 = vpow2.f32 %v3362_v37  ;;  %v3442_v60 = vmul.f32 1.442695, %v3432_v33  ;;  %v3444_v7 = vmul.f32 1.442695, %v3433_v31  ;;  %v3178_v5 = vmax.f32 %v7302_v21, %v3170_v8 }
 0xcea   :  { %v7322_v1 = vpop.eup %4939  ;;  %4959 = vpow2.f32 %v3364_v44  ;;  %v3179_v51 = vmax.f32 %v7305_v57, %v3171_v59  ;;  %v3284_v58 = vsub.f32 %v7242_v13, %v7198_v40  ;;  %v3285_v22 = vsub.f32 %v7242_v13, %v7226_v53 }
 0xceb   :  { %v7329_v25 = vpop.eup %4941  ;;  %4961 = vpow2.f32 %v3402_v55  ;;  %v3240_v11 = vmax.f32 %v3178_v5, %v3232_v56  ;;  %v3110_v49 = vsub.f32 %v7233_v14, %v7180_v36  ;;  %v3111_v2 = vsub.f32 %v7233_v14, %v7224_v0 }
 0xcec   :  { %v7331_v32 = vpop.eup %4943  ;;  %v3380_v43 = vadd.f32 %v7329_v25, %v7319_v42  ;;  %4963 = vpow2.f32 %v3404_v50  ;;  %v3241_v29 = vmax.f32 %v3179_v51, %v3233_v23  ;;  %v3294_v63 = vadd.f32 %v7250_v24, %v3284_v58 }
 0xced   :  { %v7336_v47 = vpop.eup %4945  ;;  %v3381_v40 = vadd.f32 %v7331_v32, %v7322_v1  ;;  %4965 = vpow2.f32 %v3442_v60  ;;  %v3295_v53 = vadd.f32 %v7250_v24, %v3285_v22  ;;  %v3164_v20 = vsub.f32 %v7236_v41, %v7220_v30 }
 0xcee   :  { %v7341_v26 = vpop.eup %4947  ;;  %v3420_v28 = vadd.f32 %v7336_v47, %v3380_v43  ;;  %4967 = vpow2.f32 %v3444_v7  ;;  %v3302_v62 = vmax.f32 %v3240_v11, %v3294_v63  ;;  %v3165_v36 = vsub.f32 %v7236_v41, %v7194_v39  ;;  %v7385_v43 = vld [vmem:[%s7690_s30 + $0x30] sm:$0xff] }
 0xcef   :  { %v4950_v34 = vpop.eup %4949  ;;  %v3421_v16 = vadd.f32 %v7341_v26, %v3381_v40  ;;  %v3303_v3 = vmax.f32 %v3241_v29, %v3295_v53  ;;  %v7364_v39 = vadd.f32 %v7244_v10, %v3110_v49  ;;  %v7377_v51 = vadd.f32 %v7246_v46, %v3164_v20  ;;  %v7405_v49 = vld [vmem:[%s7690_s30 + $0x38] sm:$0xff] }
 0xcf0   :  { %v4952_v38 = vpop.eup %4951  ;;  %v3460_v9 = vadd.f32 %v4950_v34, %v3420_v28  ;;  %v3310_v15 = vsub.f32 %v7302_v21, %v3302_v62  ;;  %v3350_v6 = vsub.f32 %v3170_v8, %v3302_v62  ;;  %v3390_v37 = vsub.f32 %v3232_v56, %v3302_v62 }
 0xcf1   :  { %v7352_v35 = vpop.eup %4953  ;;  %v3461_v52 = vadd.f32 %v4952_v38, %v3421_v16  ;;  %v3311_v19 = vsub.f32 %v7305_v57, %v3303_v3  ;;  %v3351_v27 = vsub.f32 %v3171_v59, %v3303_v3  ;;  %v3391_v18 = vsub.f32 %v3233_v23, %v3303_v3 }
 0xcf2   :  { %v7357_v4 = vpop.eup %4955  ;;  %4969 = vrcp.f32 %v3460_v9  ;;  %v3318_v0 = vmul.f32 1.442695, %v3310_v15  ;;  %v3358_v14 = vmul.f32 1.442695, %v3350_v6  ;;  %v3398_v50 = vmul.f32 1.442695, %v3390_v37 }
 0xcf3   :  { %v7359_v21 = vpop.eup %4957  ;;  %4971 = vrcp.f32 %v3461_v52  ;;  %v3320_v55 = vmul.f32 1.442695, %v3311_v19  ;;  %v3360_v30 = vmul.f32 1.442695, %v3351_v27  ;;  %v3400_v31 = vmul.f32 1.442695, %v3391_v18 }
 0xcf4   :  { %v4960_v44 = vpop.eup %4959  ;;  %v3376_v57 = vadd.f32 %v7359_v21, %v7352_v35  ;;  %4973 = vpow2.f32 %v3318_v0  ;;  %v7370_v8 = vadd.f32 %v7244_v10, %v3111_v2  ;;  %v3430_v23 = vsub.f32 %v3294_v63, %v3302_v62 }
 0xcf5   :  { %v7366_v41 = vpop.eup %4961  ;;  %v3377_v33 = vadd.f32 %v4960_v44, %v7357_v4  ;;  %4975 = vpow2.f32 %v3320_v55  ;;  %v3431_v60 = vsub.f32 %v3295_v53, %v3303_v3  ;;  %v7380_v58 = vadd.f32 %v7246_v46, %v3165_v36  ;;  %v5035_v36 = vld [vmem:[%s7690_s30 + $0x10] sm:$0xff] }
 0xcf6   :  { %v7372_v59 = vpop.eup %4963  ;;  %v3416_v56 = vadd.f32 %v7366_v41, %v3376_v57  ;;  %4977 = vpow2.f32 %v3358_v14  ;;  %v3438_v11 = vmul.f32 1.442695, %v3430_v23  ;;  %v3468_v29 = vmul.f32 %v7385_v43, %v4950_v34  ;;  %v5036_v14 = vld [vmem:[%s7690_s30 + $0x18] sm:$0xff] }
 0xcf7   :  { %v4966_v7 = vpop.eup %4965  ;;  %v3417_v5 = vadd.f32 %v7372_v59, %v3377_v33  ;;  %4979 = vpow2.f32 %v3360_v30  ;;  %v3440_v40 = vmul.f32 1.442695, %v3431_v60  ;;  %v3182_v53 = vmax.f32 %v7364_v39, %v7377_v51 }
 0xcf8   :  { %v4968_v22 = vpop.eup %4967  ;;  %v3456_v10 = vadd.f32 %v4966_v7, %v3416_v56  ;;  %4981 = vpow2.f32 %v3398_v50  ;;  %v3183_v46 = vmax.f32 %v7370_v8, %v7380_v58  ;;  %v3226_v28 = vsub.f32 %v7239_v17, %v7222_v54 }
 0xcf9   :  { %v3457_v63 = vadd.f32 %v4968_v22, %v3417_v5  ;;  %4983 = vpow2.f32 %v3400_v31  ;;  %v3227_v62 = vsub.f32 %v7239_v17, %v7228_v12  ;;  %v3288_v34 = vsub.f32 %v7242_v13, %v7185_v45 }
 0xcfa   :  { %4985 = vrcp.f32 %v3456_v10  ;;  %v3289_v16 = vsub.f32 %v7242_v13, %v7230_v48  ;;  %v3469_v2 = vmul.f32 %v7405_v49, %v4952_v38  ;;  %v7409_v54 = vadd.f32 %v7248_v61, %v3226_v28 }
 0xcfb   :  { %4987 = vrcp.f32 %v3457_v63  ;;  %v3388_v12 = vmul.f32 %v7385_v43, %v7329_v25  ;;  %v3237_v17 = vadd.f32 %v7248_v61, %v3227_v62  ;;  %v3389_v13 = vmul.f32 %v7405_v49, %v7331_v32 }
 0xcfc   :  { %v7400_v3 = vpop.eup %4969  ;;  %4989 = vpow2.f32 %v3438_v11  ;;  %v3244_v15 = vmax.f32 %v3182_v53, %v7409_v54  ;;  %v7424_v6 = vadd.f32 %v7250_v24, %v3288_v34  ;;  %v7432_v61 = vadd.f32 %v7250_v24, %v3289_v16 }
 0xcfd   :  { %v7413_v45 = vpop.eup %4971  ;;  %v3508_v48 = vmul.f32 %v7400_v3, %v3468_v29  ;;  %4991 = vpow2.f32 %v3440_v40  ;;  %v7427_v25 = vmul.f32 %v7400_v3, %v3388_v12  ;;  %v3245_v52 = vmax.f32 %v3183_v46, %v3237_v17 }
 0xcfe   :  { %v7419_v9 = vpop.eup %4973  ;;  %v3509_v38 = vmul.f32 %v7413_v45, %v3469_v2  ;;  %v7435_v32 = vmul.f32 %v7413_v45, %v3389_v13  ;;  %v3384_v0 = vmul.f32 %v5035_v36, %v7359_v21  ;;  %v3385_v37 = vmul.f32 %v5036_v14, %v4960_v44 }
 0xcff   :  { %v7429_v20 = vpop.eup %4975  ;;  %v3306_v24 = vmax.f32 %v3244_v15, %v7424_v6  ;;  %v3464_v30 = vmul.f32 %v5035_v36, %v4966_v7  ;;  %v3307_v57 = vmax.f32 %v3245_v52, %v7432_v61  ;;  %v3465_v21 = vmul.f32 %v5036_v14, %v4968_v22 }
 0xd00   :  { %v7437_v19 = vpop.eup %4977  ;;  %v4682_v27 = vpack.i.bf16 %v3509_v38, %v3508_v48  ;;  %v4692_v50 = vpack.i.bf16 %v7435_v32, %v7427_v25  ;;  %v3345_v10 = vmul.f32 %v5036_v14, %v7357_v4  ;;  %v3344_v63 = vmul.f32 %v5035_v36, %v7352_v35 }
 0xd01   :  { %v7447_v55 = vpop.eup %4979  ;;  %v3374_v18 = vadd.f32 %v7437_v19, %v7419_v9  ;;  %v3314_v31 = vsub.f32 %v7364_v39, %v3306_v24  ;;  %v3354_v56 = vsub.f32 %v7377_v51, %v3306_v24  ;;  %v3315_v7 = vsub.f32 %v7370_v8, %v3307_v57 }
 0xd02   :  { %v7454_v33 = vpop.eup %4981  ;;  %4683 = vrot.lane.b32.xlu1 %v4682_v27, %s5060_s3  ;;  %v3375_v44 = vadd.f32 %v7447_v55, %v7429_v20  ;;  %v3355_v5 = vsub.f32 %v7380_v58, %v3307_v57  ;;  %v3424_v39 = vmul.f32 %v5035_v36, %v7366_v41  ;;  %v3394_v46 = vsub.f32 %v7409_v54, %v3306_v24 }
 0xd03   :  { %v7461_v23 = vpop.eup %4983  ;;  %v3414_v60 = vadd.f32 %v7454_v33, %v3374_v18  ;;  %v3326_v29 = vmul.f32 1.442695, %v3314_v31  ;;  %v3328_v53 = vmul.f32 1.442695, %v3315_v7  ;;  %v3395_v28 = vsub.f32 %v3237_v17, %v3307_v57 }
 0xd04   :  { %v4986_v11 = vpop.eup %4985  ;;  %v3415_v22 = vadd.f32 %v7461_v23, %v3375_v44  ;;  %v3366_v58 = vmul.f32 1.442695, %v3354_v56  ;;  %v3425_v4 = vmul.f32 %v5036_v14, %v7372_v59  ;;  %v3368_v12 = vmul.f32 1.442695, %v3355_v5 }
 0xd05   :  { %v4988_v40 = vpop.eup %4987  ;;  %v3504_v51 = vmul.f32 %v4986_v11, %v3464_v30  ;;  %v3488_v34 = vmul.f32 %v4986_v11, %v3384_v0  ;;  %4993 = vpow2.f32 %v3326_v29  ;;  %v3434_v35 = vsub.f32 %v7424_v6, %v3306_v24 }
 0xd06   :  { %v4990_v62 = vpop.eup %4989  ;;  %v3505_v8 = vmul.f32 %v4988_v40, %v3465_v21  ;;  %v3489_v41 = vmul.f32 %v4988_v40, %v3385_v37  ;;  %4995 = vpow2.f32 %v3328_v53  ;;  %v3406_v38 = vmul.f32 1.442695, %v3394_v46 }
 0xd07   :  { %v4992_v16 = vpop.eup %4991  ;;  %v3454_v2 = vadd.f32 %v4990_v62, %v3414_v60  ;;  %v3408_v54 = vmul.f32 1.442695, %v3395_v28  ;;  %v3435_v17 = vsub.f32 %v7432_v61, %v3307_v57  ;;  %v7475_v15 = vmul.f32 %v4988_v40, %v3345_v10 }
 0xd08   :  { %v4657_v48 = vpack.i.bf16 %v3505_v8, %v3504_v51  ;;  %v3455_v13 = vadd.f32 %v4992_v16, %v3415_v22  ;;  %v7477_v59 = vmul.f32 %v4986_v11, %v3344_v63  ;;  %v7479_v52 = vmul.f32 %v4986_v11, %v3424_v39 }
 0xd09   :  { %4997 = vrcp.f32 %v3454_v2  ;;  %v3446_v6 = vmul.f32 1.442695, %v3434_v35  ;;  %v7481_v27 = vmul.f32 %v4988_v40, %v3425_v4  ;;  %v4662_v36 = vpack.i.bf16 %v3489_v41, %v3488_v34  ;;  %v5039_v34 = vld [vmem:[%s7690_s30 + $0x20] sm:$0xff] }
 0xd0a   :  { %4658 = vrot.lane.b32.xlu0 %v4657_v48, %s5060_s3  ;;  %4999 = vrcp.f32 %v3455_v13  ;;  %v3448_v0 = vmul.f32 1.442695, %v3435_v17  ;;  %v3428_v61 = vmul.f32 %v7385_v43, %v7336_v47  ;;  %v3429_v14 = vmul.f32 %v7405_v49, %v7341_v26 }
 0xd0b   :  { %5001 = vpow2.f32 %v3366_v58  ;;  %v3348_v37 = vmul.f32 %v7385_v43, %v7319_v42  ;;  %v3349_v24 = vmul.f32 %v7405_v49, %v7322_v1  ;;  %v5037_v1 = vld [vmem:[%s7690_s30] sm:$0xff] }
 0xd0c   :  { %5003 = vpow2.f32 %v3368_v12  ;;  %v7493_v30 = vmul.f32 %v7400_v3, %v3428_v61  ;;  %v7496_v18 = vmul.f32 %v7413_v45, %v3429_v14  ;;  %v3462_v49 = vmul.f32 %v5037_v1, %v4990_v62  ;;  %v5040_v12 = vld [vmem:[%s7690_s30 + $0x28] sm:$0xff] }
 0xd0d   :  { %5005 = vpow2.f32 %v3406_v38  ;;  %v7499_v47 = vmul.f32 %v7400_v3, %v3348_v37  ;;  %v7502_v26 = vmul.f32 %v7413_v45, %v3349_v24  ;;  %v3422_v57 = vmul.f32 %v5037_v1, %v7454_v33  ;;  %v5038_v3 = vld [vmem:[%s7690_s30 + $0x8] sm:$0xff] }
 0xd0e   :  { %4663 = vrot.lane.b32.xlu0 %v4662_v36, %s5060_s3  ;;  %5007 = vpow2.f32 %v3408_v54  ;;  %v3342_v21 = vmul.f32 %v5037_v1, %v7419_v9  ;;  %v3463_v31 = vmul.f32 %v5038_v3, %v4992_v16  ;;  %v3423_v45 = vmul.f32 %v5038_v3, %v7461_v23 }
 0xd0f   :  { %5009 = vpow2.f32 %v3446_v6  ;;  %v4994_v42 = vpop.eup %4993  ;;  %v3343_v56 = vmul.f32 %v5038_v3, %v7429_v20 }
 0xd10   :  { %5011 = vpow2.f32 %v3448_v0  ;;  %v4996_v43 = vpop.eup %4995  ;;  %v3346_v16 = vmul.f32 %v5039_v34, %v4994_v42 }
 0xd11   :  { %v3347_v41 = vmul.f32 %v5040_v12, %v4996_v43 }
 0xd13   :  { %v4998_v44 = vpop.eup %4997 }
 0xd14   :  { %v5000_v60 = vpop.eup %4999  ;;  %v3502_v7 = vmul.f32 %v4998_v44, %v3462_v49  ;;  %v7514_v5 = vmul.f32 %v4998_v44, %v3422_v57  ;;  %v7516_v10 = vmul.f32 %v4998_v44, %v3342_v21  ;;  %v3382_v49 = vmul.f32 %v5037_v1, %v7437_v19 }
 0xd15   :  { %v5002_v11 = vpop.eup %5001  ;;  %v3503_v33 = vmul.f32 %v5000_v60, %v3463_v31  ;;  %v7518_v22 = vmul.f32 %v5000_v60, %v3423_v45  ;;  %v7520_v9 = vmul.f32 %v5000_v60, %v3343_v56  ;;  %v3383_v57 = vmul.f32 %v5038_v3, %v7447_v55 }
 0xd16   :  { %v5004_v29 = vpop.eup %5003  ;;  %v3378_v63 = vadd.f32 %v5002_v11, %v4994_v42  ;;  %v3386_v54 = vmul.f32 %v5039_v34, %v5002_v11 }
 0xd17   :  { %v5006_v39 = vpop.eup %5005  ;;  %v4667_v40 = vpack.i.bf16 %v3503_v33, %v3502_v7  ;;  %v3379_v51 = vadd.f32 %v5004_v29, %v4996_v43  ;;  %v3387_v0 = vmul.f32 %v5040_v12, %v5004_v29  ;;  %v3486_v43 = vmul.f32 %v4998_v44, %v3382_v49  ;;  %v7728_v49 = vld [vmem:[#allocation5_spill] sm:$0xff] }
 0xd18   :  { %v5008_v23 = vpop.eup %5007  ;;  %v3418_v53 = vadd.f32 %v5006_v39, %v3378_v63  ;;  %v3426_v4 = vmul.f32 %v5039_v34, %v5006_v39  ;;  %v3487_v31 = vmul.f32 %v5000_v60, %v3383_v57  ;;  %v7729_v57 = vmax.f32 %v7728_v49, 0.0 }
 0xd19   :  { %v5010_v20 = vpop.eup %5009  ;;  %4668 = vrot.lane.b32.xlu0 %v4667_v40, %s5060_s3  ;;  %v3419_v46 = vadd.f32 %v5008_v23, %v3379_v51  ;;  %v3427_v48 = vmul.f32 %v5040_v12, %v5008_v23 }
 0xd1a   :  { %v5012_v28 = vpop.eup %5011  ;;  %v3458_v62 = vadd.f32 %v5010_v20, %v3418_v53  ;;  %v3466_v58 = vmul.f32 %v5039_v34, %v5010_v20  ;;  %v4687_v45 = vpack.i.bf16 %v3487_v31, %v3486_v43  ;;  %v7730_v31 = vld [vmem:[#allocation7_spill] sm:$0xff] }
 0xd1b   :  { %v3459_v8 = vadd.f32 %v5012_v28, %v3419_v46  ;;  %v3467_v35 = vmul.f32 %v5040_v12, %v5012_v28 }
 0xd1c   :  { %5013 = vrcp.f32 %v3458_v62 }
 0xd1d   :  { %5015 = vrcp.f32 %v3459_v8 }
 0xd26   :  { %v5014_v2 = vpop.eup %5013 }
 0xd27   :  { %v5016_v13 = vpop.eup %5015  ;;  %v3506_v38 = vmul.f32 %v5014_v2, %v3466_v58  ;;  %v3498_v17 = vmul.f32 %v5014_v2, %v3426_v4  ;;  %v3482_v6 = vmul.f32 %v5014_v2, %v3346_v16  ;;  %v3490_v24 = vmul.f32 %v5014_v2, %v3386_v54 }
 0xd28   :  { %v3507_v36 = vmul.f32 %v5016_v13, %v3467_v35  ;;  %v3499_v61 = vmul.f32 %v5016_v13, %v3427_v48  ;;  %v3483_v14 = vmul.f32 %v5016_v13, %v3347_v41  ;;  %v3491_v42 = vmul.f32 %v5016_v13, %v3387_v0 }
 0xd2a   :  { %v4672_v37 = vpack.i.bf16 %v3507_v36, %v3506_v38  ;;  %v4677_v21 = vpack.i.bf16 %v3491_v42, %v3490_v24 }
 0xd2c   :  { %4673 = vrot.lane.b32.xlu0 %v4672_v37, %s5060_s3 }
 0xd30   :  { %4678 = vrot.lane.b32.xlu0 %v4677_v21, %s5060_s3 }
 0xd34   :  { %4688 = vrot.lane.b32.xlu0 %v4687_v45, %s5060_s3 }
 0xd38   :  { %4693 = vrot.lane.b32.xlu0 %v4692_v50, %s5060_s3 }
 0xd74   :  { %v4684_v56 = vpop.permute.xlu1 %4683 }
 0xd75   :  { %v4686_v7 = vunpack.i.h.bf16 %v4684_v56  ;;  %v4685_v11 = vunpack.i.l.bf16 %v4684_v56 }
 0xd77   :  { %v3588_v19 = vsel %vm858_vm1, %v7493_v30, %v4685_v11  ;;  %v3589_v55 = vsel %vm858_vm1, %v7496_v18, %v4686_v7 }
 0xd78   :  { %v3677_v1 = vpack.c.bf16 %v3589_v55, %v3588_v19 }
 0xd7c   :  { %v4659_v44 = vpop.permute.xlu0 %4658 }
 0xd7d   :  { %v4661_v3 = vunpack.i.h.bf16 %v4659_v44  ;;  %v4660_v60 = vunpack.i.l.bf16 %v4659_v44 }
 0xd7f   :  { %v3584_v33 = vsel %vm858_vm1, %v7479_v52, %v4660_v60  ;;  %v3585_v25 = vsel %vm858_vm1, %v7481_v27, %v4661_v3 }
 0xd80   :  { %v4664_v32 = vpop.permute.xlu0 %4663  ;;  %v3673_v50 = vpack.c.bf16 %v3585_v25, %v3584_v33  ;;  %v7732_v25 = vld [vmem:[#allocation10_spill] sm:$0xff] }
 0xd81   :  { %v4666_v29 = vunpack.i.h.bf16 %v4664_v32  ;;  %v4665_v63 = vunpack.i.l.bf16 %v4664_v32  ;;  %v7733_v32 = vmax.f32 %v7732_v25, 0.0 }
 0xd82   :  { %3741 = vmatprep.mubr.bf16.mxu1 %v3673_v50 }
 0xd83   :  { %v3577_v30 = vsel %vm858_vm1, %v7475_v15, %v4666_v29  ;;  %v3576_v18 = vsel %vm858_vm1, %v7477_v59, %v4665_v63 }
 0xd84   :  { %v3672_v39 = vpack.c.bf16 %v3577_v30, %v3576_v18 }
 0xd86   :  { %3742 = vmatmul.mubr.bf16.vlgmr.msra.gmra.mrb[56].mxu1 %v3672_v39 }
 0xd8b   :  { %v4669_v40 = vpop.permute.xlu0 %4668 }
 0xd8c   :  { %v4671_v51 = vunpack.i.h.bf16 %v4669_v40  ;;  %v4670_v23 = vunpack.i.l.bf16 %v4669_v40  ;;  %v7734_v40 = vld [vmem:[#allocation12_spill] sm:$0xff] }
 0xd8e   :  { %v3582_v52 = vsel %vm858_vm1, %v7514_v5, %v4670_v23  ;;  %v3583_v27 = vsel %vm858_vm1, %v7518_v22, %v4671_v51  ;;  %v7735_v51 = vmax.f32 %v7734_v40, 0.0 }
 0xd8f   :  { %v3671_v53 = vpack.c.bf16 %v3583_v27, %v3582_v52 }
 0xd91   :  { %3733 = vmatprep.mubr.bf16.mxu0 %v3671_v53 }
 0xd9e   :  { %v4674_v20 = vpop.permute.xlu0 %4673 }
 0xd9f   :  { %v4676_v46 = vunpack.i.h.bf16 %v4674_v20  ;;  %v4675_v28 = vunpack.i.l.bf16 %v4674_v20 }
 0xda1   :  { %v3586_v15 = vsel %vm858_vm1, %v3498_v17, %v4675_v28  ;;  %v3587_v59 = vsel %vm858_vm1, %v3499_v61, %v4676_v46  ;;  %v7736_v28 = vld [vmem:[#allocation6_spill] sm:$0xff] }
 0xda2   :  { %v4679_v62 = vpop.permute.xlu0 %4678  ;;  %v3675_v8 = vpack.c.bf16 %v3587_v59, %v3586_v15  ;;  %v7737_v15 = vmax.f32 %v7736_v28, 0.0 }
 0xda3   :  { %v4681_v34 = vunpack.i.h.bf16 %v4679_v62  ;;  %v4680_v58 = vunpack.i.l.bf16 %v4679_v62 }
 0xda4   :  { %3749 = vmatprep.mubr.bf16.mxu1 %v3675_v8 }
 0xda5   :  { %v3578_v4 = vsel %vm858_vm1, %v3482_v6, %v4680_v58  ;;  %v3579_v5 = vsel %vm858_vm1, %v3483_v14, %v4681_v34 }
 0xda6   :  { %v4689_v16 = vpop.permute.xlu0 %4688  ;;  %v3674_v22 = vpack.c.bf16 %v3579_v5, %v3578_v4  ;;  %v7738_v5 = vld [vmem:[#allocation8_spill] sm:$0xff] }
 0xda7   :  { %v4691_v2 = vunpack.i.h.bf16 %v4689_v16  ;;  %v4690_v12 = vunpack.i.l.bf16 %v4689_v16  ;;  %v7739_v16 = vmax.f32 %v7738_v5, 0.0 }
 0xda8   :  { %3750 = vmatmul.mubr.bf16.gmra.mrb[60].mxu1 %v3674_v22 }
 0xda9   :  { %v3575_v35 = vsel %vm858_vm1, %v7520_v9, %v4691_v2  ;;  %v3574_v48 = vsel %vm858_vm1, %v7516_v10, %v4690_v12  ;;  %3757 = vmatprep.mubr.bf16.mxu1 %v3677_v1  ;;  %v3850_v9 = vld [vmem:[%s7632_s15] ss:$0 sm:$0xff] }
 0xdaa   :  { %v3670_v41 = vpack.c.bf16 %v3575_v35, %v3574_v48  ;;  %v4694_v13 = vpop.permute.xlu0 %4693  ;;  %v7740_v48 = vld [vmem:[#allocation9_spill] sm:$0xff] }
 0xdab   :  { %v4696_v38 = vunpack.i.h.bf16 %v4694_v13  ;;  %v4695_v54 = vunpack.i.l.bf16 %v4694_v13 }
 0xdac   :  { %3734 = vmatmul.mubr.bf16.vlgmr.msra.gmra.mrb[64].mxu0 %v3670_v41  ;;  %v7741_v41 = vmax.f32 %v7740_v48, 0.0 }
 0xdad   :  { %v3580_v17 = vsel %vm858_vm1, %v7499_v47, %v4695_v54  ;;  %v3581_v6 = vsel %vm858_vm1, %v7502_v26, %v4696_v38  ;;  %v7731_v26 = vmax.f32 %v7730_v31, 0.0 }
 0xdae   :  { %v3676_v36 = vpack.c.bf16 %v3581_v6, %v3580_v17  ;;  %v7742_v17 = vld [vmem:[#allocation11_spill] sm:$0xff] }
 0xdaf   :  { %v7743_v6 = vmax.f32 %v7742_v17, 0.0 }
 0xdb0   :  { %3758 = vmatmul.mubr.bf16.gmra.mrb[64].mxu1 %v3676_v36 }
 0xe59   :  { %v4044_v0 = vpop.f32.mrb[56].mxu1 }
 0xe5a   :  { %v4045_v10 = vpop.f32.mrb[57].mxu1 }
 0xe5b   :  { %v4046_v61 = vadd.f32 %v4045_v10, %v4044_v0  ;;  %v4047_v14 = vpop.f32.mrb[58].mxu1 }
 0xe5c   :  { %v4048_v37 = vpop.f32.mrb[59].mxu1 }
 0xe5d   :  { %v3744_v24 = vadd.f32 %v4046_v61, %v3850_v9  ;;  %v4049_v42 = vadd.f32 %v4048_v37, %v4047_v14 }
 0xe5f   :  { %v3768_v21 = vadd.f32 %v3744_v24, %v7729_v57  ;;  %v3747_v47 = vadd.f32 %v4049_v42, %v3850_v9 }
 0xe61   :  { %v3776_v43 = vmax.f32 %v3768_v21, 0.0  ;;  %v3769_v45 = vadd.f32 %v3747_v47, %v7731_v26 }
 0xe63   :  { %3784 = vst.msk [vmem:[%s7634_s17 + $0x10] sm:$0xff] %vm1073_vm2, %v3776_v43  ;;  %v3777_v56 = vmax.f32 %v3769_v45, 0.0 }
 0xe65   :  { %3785 = vst.msk [vmem:[%s7634_s17 + $0x18] sm:$0xff] %vm1073_vm2, %v3777_v56 }
 0xe7b   :  { %v4050_v7 = vpop.f32.mrb[60].mxu1 }
 0xe7c   :  { %v4051_v11 = vpop.f32.mrb[61].mxu1 }
 0xe7d   :  { %v4052_v19 = vadd.f32 %v4051_v11, %v4050_v7  ;;  %v4053_v55 = vpop.f32.mrb[62].mxu1 }
 0xe7e   :  { %v4054_v1 = vpop.f32.mrb[63].mxu1 }
 0xe7f   :  { %v3752_v44 = vadd.f32 %v4052_v19, %v3850_v9  ;;  %v4055_v3 = vadd.f32 %v4054_v1, %v4053_v55  ;;  %v4038_v60 = vpop.f32.mrb[64].mxu0 }
 0xe80   :  { %v4039_v33 = vpop.f32.mrb[65].mxu0 }
 0xe81   :  { %v3770_v50 = vadd.f32 %v3752_v44, %v7733_v32  ;;  %v3755_v29 = vadd.f32 %v4055_v3, %v3850_v9  ;;  %v4040_v63 = vadd.f32 %v4039_v33, %v4038_v60  ;;  %v4041_v30 = vpop.f32.mrb[66].mxu0 }
 0xe82   :  { %v4042_v18 = vpop.f32.mrb[67].mxu0 }
 0xe83   :  { %v3778_v39 = vmax.f32 %v3770_v50, 0.0  ;;  %v3771_v23 = vadd.f32 %v3755_v29, %v7735_v51  ;;  %v3736_v52 = vadd.f32 %v4040_v63, %v3850_v9  ;;  %v4043_v27 = vadd.f32 %v4042_v18, %v4041_v30  ;;  %v4056_v53 = vpop.f32.mrb[64].mxu1 }
 0xe84   :  { %v4057_v20 = vpop.f32.mrb[65].mxu1 }
 0xe85   :  { %3786 = vst.msk [vmem:[%s7634_s17 + $0x20] sm:$0xff] %vm1073_vm2, %v3778_v39  ;;  %v3779_v46 = vmax.f32 %v3771_v23, 0.0  ;;  %v3766_v59 = vadd.f32 %v3736_v52, %v7737_v15  ;;  %v3739_v62 = vadd.f32 %v4043_v27, %v3850_v9  ;;  %v4058_v8 = vadd.f32 %v4057_v20, %v4056_v53  ;;  %v4059_v34 = vpop.f32.mrb[66].mxu1 }
 0xe86   :  { %v4060_v58 = vpop.f32.mrb[67].mxu1 }
 0xe87   :  { %3787 = vst.msk [vmem:[%s7634_s17 + $0x28] sm:$0xff] %vm1073_vm2, %v3779_v46  ;;  %v3774_v4 = vmax.f32 %v3766_v59, 0.0  ;;  %v3767_v22 = vadd.f32 %v3739_v62, %v7739_v16  ;;  %v3760_v2 = vadd.f32 %v4058_v8, %v3850_v9  ;;  %v4061_v12 = vadd.f32 %v4060_v58, %v4059_v34 }
 0xe89   :  { %3782 = vst.msk [vmem:[%s7634_s17] sm:$0xff] %vm1073_vm2, %v3774_v4  ;;  %v3775_v35 = vmax.f32 %v3767_v22, 0.0  ;;  %v3772_v13 = vadd.f32 %v3760_v2, %v7741_v41  ;;  %v3763_v38 = vadd.f32 %v4061_v12, %v3850_v9 }
 0xe8b   :  { %3783 = vst.msk [vmem:[%s7634_s17 + $0x8] sm:$0xff] %vm1073_vm2, %v3775_v35  ;;  %v3780_v54 = vmax.f32 %v3772_v13, 0.0  ;;  %v3773_v36 = vadd.f32 %v3763_v38, %v7743_v6 }
 0xe8d   :  { %3788 = vst.msk [vmem:[%s7634_s17 + $0x30] sm:$0xff] %vm1073_vm2, %v3780_v54  ;;  %v3781_v0 = vmax.f32 %v3773_v36, 0.0 }
 0xe8f   :  { %3789 = vst.msk [vmem:[%s7634_s17 + $0x38] sm:$0xff] %vm1073_vm2, %v3781_v0 }
 0xe90   :  { %3794 = vsyncpa [#allocation3], 1 }

</bundles_post_ra>
